<compile_context>
chip_gen: v5e
topology: v5e:2x2
jax: 0.10.0
libtpu: 0.0.40
codegen_flags: <defaults>
</compile_context>

<pallas_src>
import jax
import jax.numpy as jnp
from jax import lax
from jax.experimental import pallas as pl
from jax.experimental.pallas import tpu as pltpu


def _round_up(x, m):
    return ((x + m - 1) // m) * m


def _sigmoid(v):
    # exact: sigmoid(x) = 0.5 * tanh(x / 2) + 0.5  (one EUP push)
    return 0.5 * jnp.tanh(0.5 * v) + 0.5


# -----------------------------------------------------------------------------
# Pallas kernel: full forward pass for one batch block
# -----------------------------------------------------------------------------
def lstm_ae_kernel(
    x_ref,        # (T_in*BB, I)    encoder input, time-major within the block
    wih_e_ref,    # (4, I, H)       encoder W_ih^T, per gate (i, f, g, o)
    whh_e_ref,    # (4, H, H)       encoder W_hh^T, per gate
    b_e_ref,      # (4, 1, H)       encoder b_ih + b_hh, per gate
    wih_d_ref,    # (4, H, I)       decoder W_ih^T, per gate
    whh_d_ref,    # (4, I, I)       decoder W_hh^T, per gate
    b_d_ref,      # (4, 1, I)       decoder b_ih + b_hh, per gate
    w_out_ref,    # (T_dec, I, OW)  last Linear W^T per decoder step, lane-padded
    w_cls_ref,    # (I, OW)         classifier W^T placed at cols [S:S+C]
    b_out_ref,    # (1, OW)         combined bias (b_last | b_cls | 0-pad)
    out_ref,      # (BB, OW)        packed output slab (recon | logits | pad)
    xproj_e_ref,  # (4, T_in*BB, H) scratch: hoisted encoder input projection
    xproj_d_ref,  # (4, BB, I)      scratch: decoder input projection
):
    TB, I = x_ref.shape
    BB, OW = out_ref.shape
    T_in = TB // BB
    T_dec = w_out_ref.shape[0]
    H = whh_e_ref.shape[1]
    cdt = whh_e_ref.dtype           # matmul operand dtype (f32 or bf16)

    # ---- hoisted encoder input projection: one batched matmul per gate ------
    x2d = x_ref[...]
    for k in range(4):
        xproj_e_ref[k] = (
            jnp.dot(x2d, wih_e_ref[k], preferred_element_type=jnp.float32)
            + b_e_ref[k]
        )

    whh_e = [whh_e_ref[k] for k in range(4)]

    # ---- encoder LSTM: per-gate matmuls keep everything at lane offset 0 ----
    def enc_step(t, carry):
        h, c = carry
        hm = h.astype(cdt)
        row = pl.multiple_of(t * BB, BB)
        g = [
            xproj_e_ref[k, pl.ds(row, BB), :]
            + jnp.dot(hm, whh_e[k], preferred_element_type=jnp.float32)
            for k in range(4)
        ]
        i_g = _sigmoid(g[0])
        f_g = _sigmoid(g[1])
        g_g = jnp.tanh(g[2])
        o_g = _sigmoid(g[3])
        c = f_g * c + i_g * g_g
        h = o_g * jnp.tanh(c)
        return h, c

    h_e, _ = lax.fori_loop(
        0, T_in, enc_step,
        (jnp.zeros((BB, H), jnp.float32), jnp.zeros((BB, H), jnp.float32)),
        unroll=True,
    )

    # ---- decoder input projection (input is constant -> compute once) -------
    h_em = h_e.astype(cdt)
    for k in range(4):
        xproj_d_ref[k] = (
            jnp.dot(h_em, wih_d_ref[k], preferred_element_type=jnp.float32)
            + b_d_ref[k]
        )
    whh_d = [whh_d_ref[k] for k in range(4)]

    # ---- decoder LSTM with fused last-Linear accumulation -------------------
    def dec_step(t, carry):
        h, c, y = carry
        hm = h.astype(cdt)
        g = [
            xproj_d_ref[k]
            + jnp.dot(hm, whh_d[k], preferred_element_type=jnp.float32)
            for k in range(4)
        ]
        i_g = _sigmoid(g[0])
        f_g = _sigmoid(g[1])
        g_g = jnp.tanh(g[2])
        o_g = _sigmoid(g[3])
        c = f_g * c + i_g * g_g
        h = o_g * jnp.tanh(c)
        # fused last Linear: y += h_t @ W_last^T[t*I:(t+1)*I, :] (lane-padded)
        y = y + jnp.dot(h.astype(cdt), w_out_ref[t],
                        preferred_element_type=jnp.float32)
        return h, c, y

    h_d, _, y_acc = lax.fori_loop(
        0, T_dec, dec_step,
        (jnp.zeros((BB, I), jnp.float32),
         jnp.zeros((BB, I), jnp.float32),
         jnp.zeros((BB, OW), jnp.float32)),
        unroll=True,
    )

    # ---- single lane-dense store: recon in cols [0:S], logits in [S:S+C] ----
    out_ref[...] = (
        y_acc
        + jnp.dot(h_d.astype(cdt), w_cls_ref[...],
                  preferred_element_type=jnp.float32)
        + b_out_ref[...]
    )


# -----------------------------------------------------------------------------
# Wrapper
# -----------------------------------------------------------------------------
def _split_gates_T(w, hdim, dtype):
    # PyTorch packs gates (i, f, g, o) along rows of (4*hdim, in_dim);
    # split per gate and transpose -> (4, in_dim, hdim).
    return jnp.stack(
        [w[k * hdim:(k + 1) * hdim].T for k in range(4)], axis=0
    ).astype(dtype)


def _split_bias(b_row, hdim):
    # (1, 4*hdim) -> (4, 1, hdim), kept in f32 (added to f32 projections)
    return jnp.stack(
        [b_row[:, k * hdim:(k + 1) * hdim] for k in range(4)], axis=0
    ).astype(jnp.float32)


def lstm_ae_forward(x, params, *, batch_block=128, matmul_dtype=jnp.float32):
    """x: (B, T_in, input_size) float32.

    Returns (reconstruction (B, relative_seq_len, input_size), logits (B, C)).
    """
    B, T_in, I = x.shape
    H = params["whh_e"].shape[1]
    S = params["w_last"].shape[0]          # seq_len
    C = params["w_cls"].shape[0]
    T_dec = S // I                          # relative_seq_len
    OW = _round_up(S + C, 128)              # lane-dense packed output width

    # ---- batch blocking: biggest block <= batch_block, multiple of 8 --------
    BB = max(8, min(_round_up(B, 8), _round_up(int(batch_block), 8)))
    B_pad = _round_up(B, BB)
    NB = B_pad // BB

    # ---- parameter prep (free layout plumbing, outside the kernel) ----------
    wih_e = _split_gates_T(params["wih_e"], H, matmul_dtype)     # (4, I, H)
    whh_e = _split_gates_T(params["whh_e"], H, matmul_dtype)     # (4, H, H)
    b_e = _split_bias(params["b_e"], H)                          # (4, 1, H)
    wih_d = _split_gates_T(params["wih_d"], I, matmul_dtype)     # (4, H, I)
    whh_d = _split_gates_T(params["whh_d"], I, matmul_dtype)     # (4, I, I)
    b_d = _split_bias(params["b_d"], I)                          # (4, 1, I)

    # last Linear, blocked per decoder step and lane-padded to OW columns
    w_out = jnp.zeros((T_dec, I, OW), jnp.float32)
    w_out = w_out.at[:, :, :S].set(params["w_last"].T.reshape(T_dec, I, S))
    w_out = w_out.astype(matmul_dtype)
    # classifier columns live at [S:S+C] of the same packed output slab
    w_cls = jnp.zeros((I, OW), jnp.float32).at[:, S:S + C].set(params["w_cls"].T)
    w_cls = w_cls.astype(matmul_dtype)
    b_out = (jnp.zeros((1, OW), jnp.float32)
             .at[:, :S].set(params["b_last"])
             .at[:, S:S + C].set(params["b_cls"]))

    # ---- contiguous, time-major-within-block input layout -------------------
    x_pad = jnp.zeros((B_pad, T_in, I), jnp.float32).at[:B].set(x)
    x_blk = (x_pad.reshape(NB, BB, T_in, I)
             .transpose(0, 2, 1, 3)
             .reshape(NB, T_in * BB, I)
             .astype(matmul_dtype))

    def _resident(shape):
        nd = len(shape)
        return pl.BlockSpec(shape, lambda b, _nd=nd: (0,) * _nd)

    out_packed = pl.pallas_call(
        lstm_ae_kernel,
        out_shape=jax.ShapeDtypeStruct((B_pad, OW), jnp.float32),
        grid=(NB,),
        in_specs=[
            pl.BlockSpec((None, T_in * BB, I), lambda b: (b, 0, 0)),  # x block
            _resident((4, I, H)),       # wih_e
            _resident((4, H, H)),       # whh_e
            _resident((4, 1, H)),       # b_e
            _resident((4, H, I)),       # wih_d
            _resident((4, I, I)),       # whh_d
            _resident((4, 1, I)),       # b_d
            _resident((T_dec, I, OW)),  # w_out (last Linear, blocked)
            _resident((I, OW)),         # w_cls (packed columns)
            _resident((1, OW)),         # b_out (combined bias)
        ],
        out_specs=pl.BlockSpec((BB, OW), lambda b: (b, 0)),
        scratch_shapes=[
            pltpu.VMEM((4, T_in * BB, H), jnp.float32),   # hoisted enc proj
            pltpu.VMEM((4, BB, I), jnp.float32),          # dec input proj
        ],
        compiler_params=pltpu.CompilerParams(
            dimension_semantics=("parallel",),
            vmem_limit_bytes=32 * 1024 * 1024,
        ),
    )(x_blk, wih_e, whh_e, b_e, wih_d, whh_d, b_d, w_out, w_cls, b_out)

    out = out_packed[:B]
    recon = out[:, :S].reshape(B, T_dec, I)
    logits = out[:, S:S + C]
    return recon, logits


# -----------------------------------------------------------------------------
# Pure-JAX reference (mirrors PyTorch nn.LSTM / nn.Linear semantics)
# -----------------------------------------------------------------------------
def lstm_ae_forward_ref(x, params):
    B, T_in, I = x.shape
    H = params["whh_e"].shape[1]
    S = params["w_last"].shape[0]
    T_dec = S // I

    def lstm(inputs, wih, whh, b, hdim):
        def step(carry, xt):
            h, c = carry
            gates = xt @ wih.T + h @ whh.T + b[0]
            i_g = jax.nn.sigmoid(gates[:, 0:hdim])
            f_g = jax.nn.sigmoid(gates[:, hdim:2 * hdim])
            g_g = jnp.tanh(gates[:, 2 * hdim:3 * hdim])
            o_g = jax.nn.sigmoid(gates[:, 3 * hdim:4 * hdim])
            c = f_g * c + i_g * g_g
            h = o_g * jnp.tanh(c)
            return (h, c), h

        h0 = jnp.zeros((inputs.shape[0], hdim), jnp.float32)
        c0 = jnp.zeros((inputs.shape[0], hdim), jnp.float32)
        (hT, _), ys = lax.scan(step, (h0, c0), jnp.transpose(inputs, (1, 0, 2)))
        return jnp.transpose(ys, (1, 0, 2)), hT

    _, h_enc = lstm(x, params["wih_e"], params["whh_e"], params["b_e"], H)
    dec_in = jnp.repeat(h_enc[:, None, :], T_dec, axis=1)      # (B, T_dec, H)
    dec_out, h_dec = lstm(dec_in, params["wih_d"], params["whh_d"],
                          params["b_d"], I)
    flat = dec_out.reshape(B, S)
    y = flat @ params["w_last"].T + params["b_last"][0]
    logits = h_dec @ params["w_cls"].T + params["b_cls"][0]
    return y.reshape(B, T_dec, I), logits


# -----------------------------------------------------------------------------
# Deterministic parameter initialization (PyTorch-style shapes / gate order)
# -----------------------------------------------------------------------------
def init_params(key, input_size, hidden_dim, seq_len, predicted_classes):
    ks = jax.random.split(key, 12)
    ke = 1.0 / jnp.sqrt(hidden_dim)
    kd = 1.0 / jnp.sqrt(input_size)
    kl = 1.0 / jnp.sqrt(seq_len)
    kc = 1.0 / jnp.sqrt(input_size)

    def u(k, shape, bound):
        return jax.random.uniform(k, shape, jnp.float32, -bound, bound)

    # encoder LSTM (input_size -> hidden_dim); combine b_ih + b_hh
    wih_e = u(ks[0], (4 * hidden_dim, input_size), ke)
    whh_e = u(ks[1], (4 * hidden_dim, hidden_dim), ke)
    b_e = u(ks[2], (4 * hidden_dim,), ke) + u(ks[3], (4 * hidden_dim,), ke)
    # decoder LSTM (hidden_dim -> input_size)
    wih_d = u(ks[4], (4 * input_size, hidden_dim), kd)
    whh_d = u(ks[5], (4 * input_size, input_size), kd)
    b_d = u(ks[6], (4 * input_size,), kd) + u(ks[7], (4 * input_size,), kd)
    # last linear (seq_len -> seq_len)
    w_last = u(ks[8], (seq_len, seq_len), kl)
    b_last = u(ks[9], (seq_len,), kl)
    # classifier (input_size -> predicted_classes)
    w_cls = u(ks[10], (predicted_classes, input_size), kc)
    b_cls = u(ks[11], (predicted_classes,), kc)

    return {
        "wih_e": wih_e, "whh_e": whh_e, "b_e": b_e[None, :],
        "wih_d": wih_d, "whh_d": whh_d, "b_d": b_d[None, :],
        "w_last": w_last, "b_last": b_last[None, :],
        "w_cls": w_cls, "b_cls": b_cls[None, :],
    }


if __name__ == "__main__":
    # Small configuration consistent with the module:
    #   input_size=8, hidden_dim=32, seq_len=64 -> relative_seq_len=8, classes=4
    input_size = 8
    hidden_dim = 32
    seq_len = 64
    predicted_classes = 4
    relative_seq_len = seq_len // input_size

    key = jax.random.PRNGKey(0)
    kx1, kx2, kp = jax.random.split(key, 3)
    params = init_params(kp, input_size, hidden_dim, seq_len, predicted_classes)

    # --- test 1: tiny batch, f32 MXU operands, tight tolerance ---------------
    x1 = jax.random.normal(kx1, (2, relative_seq_len, input_size), jnp.float32)
    recon1, logits1 = jax.block_until_ready(
        lstm_ae_forward(x1, params, batch_block=8, matmul_dtype=jnp.float32))
    recon1_ref, logits1_ref = lstm_ae_forward_ref(x1, params)
    assert recon1.shape == (2, relative_seq_len, input_size)
    assert logits1.shape == (2, predicted_classes)
    assert jnp.allclose(recon1, recon1_ref, atol=1e-4, rtol=1e-4)
    assert jnp.allclose(logits1, logits1_ref, atol=1e-4, rtol=1e-4)

    # --- test 2: multi-block grid + bf16 MXU operands (v6e/v7x path) ---------
    x2 = jax.random.normal(kx2, (48, relative_seq_len, input_size), jnp.float32)
    recon2, logits2 = jax.block_until_ready(
        lstm_ae_forward(x2, params, batch_block=16, matmul_dtype=jnp.bfloat16))
    recon2_ref, logits2_ref = lstm_ae_forward_ref(x2, params)
    assert recon2.shape == (48, relative_seq_len, input_size)
    assert logits2.shape == (48, predicted_classes)
    assert jnp.allclose(recon2, recon2_ref, atol=5e-2, rtol=5e-2)
    assert jnp.allclose(logits2, logits2_ref, atol=5e-2, rtol=5e-2)

    print("KERNEL_OK")
</pallas_src>

<mosaic_0001>
module attributes {stable_mosaic.version = 11 : i64} {
  func.func @lstm_ae_kernel(%arg0: i32, %arg1: memref<1x64x8xf32, #tpu.memory_space<vmem>>, %arg2: memref<4x8x32xf32, #tpu.memory_space<vmem>>, %arg3: memref<4x32x32xf32, #tpu.memory_space<vmem>>, %arg4: memref<4x1x32xf32, #tpu.memory_space<vmem>>, %arg5: memref<4x32x8xf32, #tpu.memory_space<vmem>>, %arg6: memref<4x8x8xf32, #tpu.memory_space<vmem>>, %arg7: memref<4x1x8xf32, #tpu.memory_space<vmem>>, %arg8: memref<8x8x128xf32, #tpu.memory_space<vmem>>, %arg9: memref<8x128xf32, #tpu.memory_space<vmem>>, %arg10: memref<1x128xf32, #tpu.memory_space<vmem>>, %arg11: memref<8x128xf32, #tpu.memory_space<vmem>>, %arg12: memref<4x64x32xf32, #tpu.memory_space<vmem>>, %arg13: memref<4x8x8xf32, #tpu.memory_space<vmem>>) attributes {dimension_semantics = [#tpu.dimension_semantics<parallel>], iteration_bounds = array<i64: 1>, scalar_prefetch = 0 : i64, scratch_operands = 2 : i64, tpu.core_type = #tpu.core_type<tc>, window_params = [{transform_indices = @transform_0, window_bounds = array<i64: 1, 64, 8>}, {pipeline_mode = #tpu.pipeline_mode<synchronous>, transform_indices = @transform_1, window_bounds = array<i64: 4, 8, 32>}, {pipeline_mode = #tpu.pipeline_mode<synchronous>, transform_indices = @transform_2, window_bounds = array<i64: 4, 32, 32>}, {pipeline_mode = #tpu.pipeline_mode<synchronous>, transform_indices = @transform_3, window_bounds = array<i64: 4, 1, 32>}, {pipeline_mode = #tpu.pipeline_mode<synchronous>, transform_indices = @transform_4, window_bounds = array<i64: 4, 32, 8>}, {pipeline_mode = #tpu.pipeline_mode<synchronous>, transform_indices = @transform_5, window_bounds = array<i64: 4, 8, 8>}, {pipeline_mode = #tpu.pipeline_mode<synchronous>, transform_indices = @transform_6, window_bounds = array<i64: 4, 1, 8>}, {pipeline_mode = #tpu.pipeline_mode<synchronous>, transform_indices = @transform_7, window_bounds = array<i64: 8, 8, 128>}, {pipeline_mode = #tpu.pipeline_mode<synchronous>, transform_indices = @transform_8, window_bounds = array<i64: 8, 128>}, {pipeline_mode = #tpu.pipeline_mode<synchronous>, transform_indices = @transform_9, window_bounds = array<i64: 1, 128>}, {transform_indices = @transform_10, window_bounds = array<i64: 8, 128>}]} {
    %c0 = arith.constant 0 : index
    %c0_0 = arith.constant 0 : index
    %c0_1 = arith.constant 0 : index
    %0 = vector.load %arg1[%c0, %c0_0, %c0_1] : memref<1x64x8xf32, #tpu.memory_space<vmem>>, vector<1x64x8xf32>
    %1 = vector.shape_cast %0 : vector<1x64x8xf32> to vector<64x8xf32>
    %c0_2 = arith.constant 0 : index
    %c0_3 = arith.constant 0 : index
    %c0_4 = arith.constant 0 : index
    %2 = vector.load %arg2[%c0_2, %c0_3, %c0_4] : memref<4x8x32xf32, #tpu.memory_space<vmem>>, vector<1x8x32xf32>
    %3 = vector.shape_cast %2 : vector<1x8x32xf32> to vector<8x32xf32>
    %cst = arith.constant dense<0.000000e+00> : vector<64x32xf32>
    %4 = tpu.matmul %1, %3, %cst {dimension_numbers = #tpu.dot_dimension_numbers<[1], [0], [0], [1], [0, 0, 1, 1], [], []>} : vector<64x8xf32>, vector<8x32xf32>, vector<64x32xf32> -> vector<64x32xf32>
    %c0_5 = arith.constant 0 : index
    %c0_6 = arith.constant 0 : index
    %c0_7 = arith.constant 0 : index
    %5 = vector.load %arg4[%c0_5, %c0_6, %c0_7] : memref<4x1x32xf32, #tpu.memory_space<vmem>>, vector<1x1x32xf32>
    %6 = vector.shape_cast %5 : vector<1x1x32xf32> to vector<1x32xf32>
    %7 = vector.broadcast %6 : vector<1x32xf32> to vector<64x32xf32>
    %8 = arith.addf %4, %7 : vector<64x32xf32>
    %c0_8 = arith.constant 0 : index
    %c0_9 = arith.constant 0 : index
    %c0_10 = arith.constant 0 : index
    %9 = vector.load %arg12[%c0_8, %c0_9, %c0_10] : memref<4x64x32xf32, #tpu.memory_space<vmem>>, vector<1x64x32xf32>
    %10 = vector.shape_cast %9 : vector<1x64x32xf32> to vector<64x32xf32>
    %11 = vector.shape_cast %8 : vector<64x32xf32> to vector<1x64x32xf32>
    tpu.vector_store %arg12[%c0_8, %c0_9, %c0_10], %11 {strides = array<i32>} : memref<4x64x32xf32, #tpu.memory_space<vmem>>, vector<1x64x32xf32>,
    %c1 = arith.constant 1 : index
    %c0_11 = arith.constant 0 : index
    %c0_12 = arith.constant 0 : index
    %12 = vector.load %arg2[%c1, %c0_11, %c0_12] : memref<4x8x32xf32, #tpu.memory_space<vmem>>, vector<1x8x32xf32>
    %13 = vector.shape_cast %12 : vector<1x8x32xf32> to vector<8x32xf32>
    %cst_13 = arith.constant dense<0.000000e+00> : vector<64x32xf32>
    %14 = tpu.matmul %1, %13, %cst_13 {dimension_numbers = #tpu.dot_dimension_numbers<[1], [0], [0], [1], [0, 0, 1, 1], [], []>} : vector<64x8xf32>, vector<8x32xf32>, vector<64x32xf32> -> vector<64x32xf32>
    %c1_14 = arith.constant 1 : index
    %c0_15 = arith.constant 0 : index
    %c0_16 = arith.constant 0 : index
    %15 = vector.load %arg4[%c1_14, %c0_15, %c0_16] : memref<4x1x32xf32, #tpu.memory_space<vmem>>, vector<1x1x32xf32>
    %16 = vector.shape_cast %15 : vector<1x1x32xf32> to vector<1x32xf32>
    %17 = vector.broadcast %16 : vector<1x32xf32> to vector<64x32xf32>
    %18 = arith.addf %14, %17 : vector<64x32xf32>
    %c1_17 = arith.constant 1 : index
    %c0_18 = arith.constant 0 : index
    %c0_19 = arith.constant 0 : index
    %19 = vector.load %arg12[%c1_17, %c0_18, %c0_19] : memref<4x64x32xf32, #tpu.memory_space<vmem>>, vector<1x64x32xf32>
    %20 = vector.shape_cast %19 : vector<1x64x32xf32> to vector<64x32xf32>
    %21 = vector.shape_cast %18 : vector<64x32xf32> to vector<1x64x32xf32>
    tpu.vector_store %arg12[%c1_17, %c0_18, %c0_19], %21 {strides = array<i32>} : memref<4x64x32xf32, #tpu.memory_space<vmem>>, vector<1x64x32xf32>,
    %c2 = arith.constant 2 : index
    %c0_20 = arith.constant 0 : index
    %c0_21 = arith.constant 0 : index
    %22 = vector.load %arg2[%c2, %c0_20, %c0_21] : memref<4x8x32xf32, #tpu.memory_space<vmem>>, vector<1x8x32xf32>
    %23 = vector.shape_cast %22 : vector<1x8x32xf32> to vector<8x32xf32>
    %cst_22 = arith.constant dense<0.000000e+00> : vector<64x32xf32>
    %24 = tpu.matmul %1, %23, %cst_22 {dimension_numbers = #tpu.dot_dimension_numbers<[1], [0], [0], [1], [0, 0, 1, 1], [], []>} : vector<64x8xf32>, vector<8x32xf32>, vector<64x32xf32> -> vector<64x32xf32>
    %c2_23 = arith.constant 2 : index
    %c0_24 = arith.constant 0 : index
    %c0_25 = arith.constant 0 : index
    %25 = vector.load %arg4[%c2_23, %c0_24, %c0_25] : memref<4x1x32xf32, #tpu.memory_space<vmem>>, vector<1x1x32xf32>
    %26 = vector.shape_cast %25 : vector<1x1x32xf32> to vector<1x32xf32>
    %27 = vector.broadcast %26 : vector<1x32xf32> to vector<64x32xf32>
    %28 = arith.addf %24, %27 : vector<64x32xf32>
    %c2_26 = arith.constant 2 : index
    %c0_27 = arith.constant 0 : index
    %c0_28 = arith.constant 0 : index
    %29 = vector.load %arg12[%c2_26, %c0_27, %c0_28] : memref<4x64x32xf32, #tpu.memory_space<vmem>>, vector<1x64x32xf32>
    %30 = vector.shape_cast %29 : vector<1x64x32xf32> to vector<64x32xf32>
    %31 = vector.shape_cast %28 : vector<64x32xf32> to vector<1x64x32xf32>
    tpu.vector_store %arg12[%c2_26, %c0_27, %c0_28], %31 {strides = array<i32>} : memref<4x64x32xf32, #tpu.memory_space<vmem>>, vector<1x64x32xf32>,
    %c3 = arith.constant 3 : index
    %c0_29 = arith.constant 0 : index
    %c0_30 = arith.constant 0 : index
    %32 = vector.load %arg2[%c3, %c0_29, %c0_30] : memref<4x8x32xf32, #tpu.memory_space<vmem>>, vector<1x8x32xf32>
    %33 = vector.shape_cast %32 : vector<1x8x32xf32> to vector<8x32xf32>
    %cst_31 = arith.constant dense<0.000000e+00> : vector<64x32xf32>
    %34 = tpu.matmul %1, %33, %cst_31 {dimension_numbers = #tpu.dot_dimension_numbers<[1], [0], [0], [1], [0, 0, 1, 1], [], []>} : vector<64x8xf32>, vector<8x32xf32>, vector<64x32xf32> -> vector<64x32xf32>
    %c3_32 = arith.constant 3 : index
    %c0_33 = arith.constant 0 : index
    %c0_34 = arith.constant 0 : index
    %35 = vector.load %arg4[%c3_32, %c0_33, %c0_34] : memref<4x1x32xf32, #tpu.memory_space<vmem>>, vector<1x1x32xf32>
    %36 = vector.shape_cast %35 : vector<1x1x32xf32> to vector<1x32xf32>
    %37 = vector.broadcast %36 : vector<1x32xf32> to vector<64x32xf32>
    %38 = arith.addf %34, %37 : vector<64x32xf32>
    %c3_35 = arith.constant 3 : index
    %c0_36 = arith.constant 0 : index
    %c0_37 = arith.constant 0 : index
    %39 = vector.load %arg12[%c3_35, %c0_36, %c0_37] : memref<4x64x32xf32, #tpu.memory_space<vmem>>, vector<1x64x32xf32>
    %40 = vector.shape_cast %39 : vector<1x64x32xf32> to vector<64x32xf32>
    %41 = vector.shape_cast %38 : vector<64x32xf32> to vector<1x64x32xf32>
    tpu.vector_store %arg12[%c3_35, %c0_36, %c0_37], %41 {strides = array<i32>} : memref<4x64x32xf32, #tpu.memory_space<vmem>>, vector<1x64x32xf32>,
    %c0_38 = arith.constant 0 : index
    %c0_39 = arith.constant 0 : index
    %c0_40 = arith.constant 0 : index
    %42 = vector.load %arg3[%c0_38, %c0_39, %c0_40] : memref<4x32x32xf32, #tpu.memory_space<vmem>>, vector<1x32x32xf32>
    %43 = vector.shape_cast %42 : vector<1x32x32xf32> to vector<32x32xf32>
    %c1_41 = arith.constant 1 : index
    %c0_42 = arith.constant 0 : index
    %c0_43 = arith.constant 0 : index
    %44 = vector.load %arg3[%c1_41, %c0_42, %c0_43] : memref<4x32x32xf32, #tpu.memory_space<vmem>>, vector<1x32x32xf32>
    %45 = vector.shape_cast %44 : vector<1x32x32xf32> to vector<32x32xf32>
    %c2_44 = arith.constant 2 : index
    %c0_45 = arith.constant 0 : index
    %c0_46 = arith.constant 0 : index
    %46 = vector.load %arg3[%c2_44, %c0_45, %c0_46] : memref<4x32x32xf32, #tpu.memory_space<vmem>>, vector<1x32x32xf32>
    %47 = vector.shape_cast %46 : vector<1x32x32xf32> to vector<32x32xf32>
    %c3_47 = arith.constant 3 : index
    %c0_48 = arith.constant 0 : index
    %c0_49 = arith.constant 0 : index
    %48 = vector.load %arg3[%c3_47, %c0_48, %c0_49] : memref<4x32x32xf32, #tpu.memory_space<vmem>>, vector<1x32x32xf32>
    %49 = vector.shape_cast %48 : vector<1x32x32xf32> to vector<32x32xf32>
    %cst_50 = arith.constant 0.000000e+00 : f32
    %50 = vector.broadcast %cst_50 : f32 to vector<8x32xf32>
    %cst_51 = arith.constant 0.000000e+00 : f32
    %51 = vector.broadcast %cst_51 : f32 to vector<8x32xf32>
    %c0_i32 = arith.constant 0 : i32
    %c8_i32 = arith.constant 8 : i32
    %52 = arith.muli %c0_i32, %c8_i32 : i32
    %53 = tpu.assume_multiple %52, 8 : i32
    %c0_52 = arith.constant 0 : index
    %54 = arith.index_cast %53 : i32 to index
    %c0_53 = arith.constant 0 : index
    %55 = vector.load %arg12[%c0_52, %54, %c0_53] : memref<4x64x32xf32, #tpu.memory_space<vmem>>, vector<1x8x32xf32>
    %56 = vector.shape_cast %55 : vector<1x8x32xf32> to vector<8x32xf32>
    %cst_54 = arith.constant dense<0.000000e+00> : vector<8x32xf32>
    %57 = tpu.matmul %50, %43, %cst_54 {dimension_numbers = #tpu.dot_dimension_numbers<[1], [0], [0], [1], [0, 0, 1, 1], [], []>} : vector<8x32xf32>, vector<32x32xf32>, vector<8x32xf32> -> vector<8x32xf32>
    %58 = arith.addf %56, %57 : vector<8x32xf32>
    %c1_55 = arith.constant 1 : index
    %59 = arith.index_cast %53 : i32 to index
    %c0_56 = arith.constant 0 : index
    %60 = vector.load %arg12[%c1_55, %59, %c0_56] : memref<4x64x32xf32, #tpu.memory_space<vmem>>, vector<1x8x32xf32>
    %61 = vector.shape_cast %60 : vector<1x8x32xf32> to vector<8x32xf32>
    %cst_57 = arith.constant dense<0.000000e+00> : vector<8x32xf32>
    %62 = tpu.matmul %50, %45, %cst_57 {dimension_numbers = #tpu.dot_dimension_numbers<[1], [0], [0], [1], [0, 0, 1, 1], [], []>} : vector<8x32xf32>, vector<32x32xf32>, vector<8x32xf32> -> vector<8x32xf32>
    %63 = arith.addf %61, %62 : vector<8x32xf32>
    %c2_58 = arith.constant 2 : index
    %64 = arith.index_cast %53 : i32 to index
    %c0_59 = arith.constant 0 : index
    %65 = vector.load %arg12[%c2_58, %64, %c0_59] : memref<4x64x32xf32, #tpu.memory_space<vmem>>, vector<1x8x32xf32>
    %66 = vector.shape_cast %65 : vector<1x8x32xf32> to vector<8x32xf32>
    %cst_60 = arith.constant dense<0.000000e+00> : vector<8x32xf32>
    %67 = tpu.matmul %50, %47, %cst_60 {dimension_numbers = #tpu.dot_dimension_numbers<[1], [0], [0], [1], [0, 0, 1, 1], [], []>} : vector<8x32xf32>, vector<32x32xf32>, vector<8x32xf32> -> vector<8x32xf32>
    %68 = arith.addf %66, %67 : vector<8x32xf32>
    %c3_61 = arith.constant 3 : index
    %69 = arith.index_cast %53 : i32 to index
    %c0_62 = arith.constant 0 : index
    %70 = vector.load %arg12[%c3_61, %69, %c0_62] : memref<4x64x32xf32, #tpu.memory_space<vmem>>, vector<1x8x32xf32>
    %71 = vector.shape_cast %70 : vector<1x8x32xf32> to vector<8x32xf32>
    %cst_63 = arith.constant dense<0.000000e+00> : vector<8x32xf32>
    %72 = tpu.matmul %50, %49, %cst_63 {dimension_numbers = #tpu.dot_dimension_numbers<[1], [0], [0], [1], [0, 0, 1, 1], [], []>} : vector<8x32xf32>, vector<32x32xf32>, vector<8x32xf32> -> vector<8x32xf32>
    %73 = arith.addf %71, %72 : vector<8x32xf32>
    %cst_64 = arith.constant 5.000000e-01 : f32
    %74 = vector.broadcast %cst_64 : f32 to vector<8x32xf32>
    %75 = arith.mulf %74, %58 : vector<8x32xf32>
    %76 = math.tanh %75 : vector<8x32xf32>
    %cst_65 = arith.constant 5.000000e-01 : f32
    %77 = vector.broadcast %cst_65 : f32 to vector<8x32xf32>
    %78 = arith.mulf %77, %76 : vector<8x32xf32>
    %cst_66 = arith.constant 5.000000e-01 : f32
    %79 = vector.broadcast %cst_66 : f32 to vector<8x32xf32>
    %80 = arith.addf %78, %79 : vector<8x32xf32>
    %cst_67 = arith.constant 5.000000e-01 : f32
    %81 = vector.broadcast %cst_67 : f32 to vector<8x32xf32>
    %82 = arith.mulf %81, %63 : vector<8x32xf32>
    %83 = math.tanh %82 : vector<8x32xf32>
    %cst_68 = arith.constant 5.000000e-01 : f32
    %84 = vector.broadcast %cst_68 : f32 to vector<8x32xf32>
    %85 = arith.mulf %84, %83 : vector<8x32xf32>
    %cst_69 = arith.constant 5.000000e-01 : f32
    %86 = vector.broadcast %cst_69 : f32 to vector<8x32xf32>
    %87 = arith.addf %85, %86 : vector<8x32xf32>
    %88 = math.tanh %68 : vector<8x32xf32>
    %cst_70 = arith.constant 5.000000e-01 : f32
    %89 = vector.broadcast %cst_70 : f32 to vector<8x32xf32>
    %90 = arith.mulf %89, %73 : vector<8x32xf32>
    %91 = math.tanh %90 : vector<8x32xf32>
    %cst_71 = arith.constant 5.000000e-01 : f32
    %92 = vector.broadcast %cst_71 : f32 to vector<8x32xf32>
    %93 = arith.mulf %92, %91 : vector<8x32xf32>
    %cst_72 = arith.constant 5.000000e-01 : f32
    %94 = vector.broadcast %cst_72 : f32 to vector<8x32xf32>
    %95 = arith.addf %93, %94 : vector<8x32xf32>
    %96 = arith.mulf %87, %51 : vector<8x32xf32>
    %97 = arith.mulf %80, %88 : vector<8x32xf32>
    %98 = arith.addf %96, %97 : vector<8x32xf32>
    %99 = math.tanh %98 : vector<8x32xf32>
    %100 = arith.mulf %95, %99 : vector<8x32xf32>
    %c1_i32 = arith.constant 1 : i32
    %c8_i32_73 = arith.constant 8 : i32
    %101 = arith.muli %c1_i32, %c8_i32_73 : i32
    %102 = tpu.assume_multiple %101, 8 : i32
    %c0_74 = arith.constant 0 : index
    %103 = arith.index_cast %102 : i32 to index
    %c0_75 = arith.constant 0 : index
    %104 = vector.load %arg12[%c0_74, %103, %c0_75] : memref<4x64x32xf32, #tpu.memory_space<vmem>>, vector<1x8x32xf32>
    %105 = vector.shape_cast %104 : vector<1x8x32xf32> to vector<8x32xf32>
    %cst_76 = arith.constant dense<0.000000e+00> : vector<8x32xf32>
    %106 = tpu.matmul %100, %43, %cst_76 {dimension_numbers = #tpu.dot_dimension_numbers<[1], [0], [0], [1], [0, 0, 1, 1], [], []>} : vector<8x32xf32>, vector<32x32xf32>, vector<8x32xf32> -> vector<8x32xf32>
    %107 = arith.addf %105, %106 : vector<8x32xf32>
    %c1_77 = arith.constant 1 : index
    %108 = arith.index_cast %102 : i32 to index
    %c0_78 = arith.constant 0 : index
    %109 = vector.load %arg12[%c1_77, %108, %c0_78] : memref<4x64x32xf32, #tpu.memory_space<vmem>>, vector<1x8x32xf32>
    %110 = vector.shape_cast %109 : vector<1x8x32xf32> to vector<8x32xf32>
    %cst_79 = arith.constant dense<0.000000e+00> : vector<8x32xf32>
    %111 = tpu.matmul %100, %45, %cst_79 {dimension_numbers = #tpu.dot_dimension_numbers<[1], [0], [0], [1], [0, 0, 1, 1], [], []>} : vector<8x32xf32>, vector<32x32xf32>, vector<8x32xf32> -> vector<8x32xf32>
    %112 = arith.addf %110, %111 : vector<8x32xf32>
    %c2_80 = arith.constant 2 : index
    %113 = arith.index_cast %102 : i32 to index
    %c0_81 = arith.constant 0 : index
    %114 = vector.load %arg12[%c2_80, %113, %c0_81] : memref<4x64x32xf32, #tpu.memory_space<vmem>>, vector<1x8x32xf32>
    %115 = vector.shape_cast %114 : vector<1x8x32xf32> to vector<8x32xf32>
    %cst_82 = arith.constant dense<0.000000e+00> : vector<8x32xf32>
    %116 = tpu.matmul %100, %47, %cst_82 {dimension_numbers = #tpu.dot_dimension_numbers<[1], [0], [0], [1], [0, 0, 1, 1], [], []>} : vector<8x32xf32>, vector<32x32xf32>, vector<8x32xf32> -> vector<8x32xf32>
    %117 = arith.addf %115, %116 : vector<8x32xf32>
    %c3_83 = arith.constant 3 : index
    %118 = arith.index_cast %102 : i32 to index
    %c0_84 = arith.constant 0 : index
    %119 = vector.load %arg12[%c3_83, %118, %c0_84] : memref<4x64x32xf32, #tpu.memory_space<vmem>>, vector<1x8x32xf32>
    %120 = vector.shape_cast %119 : vector<1x8x32xf32> to vector<8x32xf32>
    %cst_85 = arith.constant dense<0.000000e+00> : vector<8x32xf32>
    %121 = tpu.matmul %100, %49, %cst_85 {dimension_numbers = #tpu.dot_dimension_numbers<[1], [0], [0], [1], [0, 0, 1, 1], [], []>} : vector<8x32xf32>, vector<32x32xf32>, vector<8x32xf32> -> vector<8x32xf32>
    %122 = arith.addf %120, %121 : vector<8x32xf32>
    %cst_86 = arith.constant 5.000000e-01 : f32
    %123 = vector.broadcast %cst_86 : f32 to vector<8x32xf32>
    %124 = arith.mulf %123, %107 : vector<8x32xf32>
    %125 = math.tanh %124 : vector<8x32xf32>
    %cst_87 = arith.constant 5.000000e-01 : f32
    %126 = vector.broadcast %cst_87 : f32 to vector<8x32xf32>
    %127 = arith.mulf %126, %125 : vector<8x32xf32>
    %cst_88 = arith.constant 5.000000e-01 : f32
    %128 = vector.broadcast %cst_88 : f32 to vector<8x32xf32>
    %129 = arith.addf %127, %128 : vector<8x32xf32>
    %cst_89 = arith.constant 5.000000e-01 : f32
    %130 = vector.broadcast %cst_89 : f32 to vector<8x32xf32>
    %131 = arith.mulf %130, %112 : vector<8x32xf32>
    %132 = math.tanh %131 : vector<8x32xf32>
    %cst_90 = arith.constant 5.000000e-01 : f32
    %133 = vector.broadcast %cst_90 : f32 to vector<8x32xf32>
    %134 = arith.mulf %133, %132 : vector<8x32xf32>
    %cst_91 = arith.constant 5.000000e-01 : f32
    %135 = vector.broadcast %cst_91 : f32 to vector<8x32xf32>
    %136 = arith.addf %134, %135 : vector<8x32xf32>
    %137 = math.tanh %117 : vector<8x32xf32>
    %cst_92 = arith.constant 5.000000e-01 : f32
    %138 = vector.broadcast %cst_92 : f32 to vector<8x32xf32>
    %139 = arith.mulf %138, %122 : vector<8x32xf32>
    %140 = math.tanh %139 : vector<8x32xf32>
    %cst_93 = arith.constant 5.000000e-01 : f32
    %141 = vector.broadcast %cst_93 : f32 to vector<8x32xf32>
    %142 = arith.mulf %141, %140 : vector<8x32xf32>
    %cst_94 = arith.constant 5.000000e-01 : f32
    %143 = vector.broadcast %cst_94 : f32 to vector<8x32xf32>
    %144 = arith.addf %142, %143 : vector<8x32xf32>
    %145 = arith.mulf %136, %98 : vector<8x32xf32>
    %146 = arith.mulf %129, %137 : vector<8x32xf32>
    %147 = arith.addf %145, %146 : vector<8x32xf32>
    %148 = math.tanh %147 : vector<8x32xf32>
    %149 = arith.mulf %144, %148 : vector<8x32xf32>
    %c2_i32 = arith.constant 2 : i32
    %c8_i32_95 = arith.constant 8 : i32
    %150 = arith.muli %c2_i32, %c8_i32_95 : i32
    %151 = tpu.assume_multiple %150, 8 : i32
    %c0_96 = arith.constant 0 : index
    %152 = arith.index_cast %151 : i32 to index
    %c0_97 = arith.constant 0 : index
    %153 = vector.load %arg12[%c0_96, %152, %c0_97] : memref<4x64x32xf32, #tpu.memory_space<vmem>>, vector<1x8x32xf32>
    %154 = vector.shape_cast %153 : vector<1x8x32xf32> to vector<8x32xf32>
    %cst_98 = arith.constant dense<0.000000e+00> : vector<8x32xf32>
    %155 = tpu.matmul %149, %43, %cst_98 {dimension_numbers = #tpu.dot_dimension_numbers<[1], [0], [0], [1], [0, 0, 1, 1], [], []>} : vector<8x32xf32>, vector<32x32xf32>, vector<8x32xf32> -> vector<8x32xf32>
    %156 = arith.addf %154, %155 : vector<8x32xf32>
    %c1_99 = arith.constant 1 : index
    %157 = arith.index_cast %151 : i32 to index
    %c0_100 = arith.constant 0 : index
    %158 = vector.load %arg12[%c1_99, %157, %c0_100] : memref<4x64x32xf32, #tpu.memory_space<vmem>>, vector<1x8x32xf32>
    %159 = vector.shape_cast %158 : vector<1x8x32xf32> to vector<8x32xf32>
    %cst_101 = arith.constant dense<0.000000e+00> : vector<8x32xf32>
    %160 = tpu.matmul %149, %45, %cst_101 {dimension_numbers = #tpu.dot_dimension_numbers<[1], [0], [0], [1], [0, 0, 1, 1], [], []>} : vector<8x32xf32>, vector<32x32xf32>, vector<8x32xf32> -> vector<8x32xf32>
    %161 = arith.addf %159, %160 : vector<8x32xf32>
    %c2_102 = arith.constant 2 : index
    %162 = arith.index_cast %151 : i32 to index
    %c0_103 = arith.constant 0 : index
    %163 = vector.load %arg12[%c2_102, %162, %c0_103] : memref<4x64x32xf32, #tpu.memory_space<vmem>>, vector<1x8x32xf32>
    %164 = vector.shape_cast %163 : vector<1x8x32xf32> to vector<8x32xf32>
    %cst_104 = arith.constant dense<0.000000e+00> : vector<8x32xf32>
    %165 = tpu.matmul %149, %47, %cst_104 {dimension_numbers = #tpu.dot_dimension_numbers<[1], [0], [0], [1], [0, 0, 1, 1], [], []>} : vector<8x32xf32>, vector<32x32xf32>, vector<8x32xf32> -> vector<8x32xf32>
    %166 = arith.addf %164, %165 : vector<8x32xf32>
    %c3_105 = arith.constant 3 : index
    %167 = arith.index_cast %151 : i32 to index
    %c0_106 = arith.constant 0 : index
    %168 = vector.load %arg12[%c3_105, %167, %c0_106] : memref<4x64x32xf32, #tpu.memory_space<vmem>>, vector<1x8x32xf32>
    %169 = vector.shape_cast %168 : vector<1x8x32xf32> to vector<8x32xf32>
    %cst_107 = arith.constant dense<0.000000e+00> : vector<8x32xf32>
    %170 = tpu.matmul %149, %49, %cst_107 {dimension_numbers = #tpu.dot_dimension_numbers<[1], [0], [0], [1], [0, 0, 1, 1], [], []>} : vector<8x32xf32>, vector<32x32xf32>, vector<8x32xf32> -> vector<8x32xf32>
    %171 = arith.addf %169, %170 : vector<8x32xf32>
    %cst_108 = arith.constant 5.000000e-01 : f32
    %172 = vector.broadcast %cst_108 : f32 to vector<8x32xf32>
    %173 = arith.mulf %172, %156 : vector<8x32xf32>
    %174 = math.tanh %173 : vector<8x32xf32>
    %cst_109 = arith.constant 5.000000e-01 : f32
    %175 = vector.broadcast %cst_109 : f32 to vector<8x32xf32>
    %176 = arith.mulf %175, %174 : vector<8x32xf32>
    %cst_110 = arith.constant 5.000000e-01 : f32
    %177 = vector.broadcast %cst_110 : f32 to vector<8x32xf32>
    %178 = arith.addf %176, %177 : vector<8x32xf32>
    %cst_111 = arith.constant 5.000000e-01 : f32
    %179 = vector.broadcast %cst_111 : f32 to vector<8x32xf32>
    %180 = arith.mulf %179, %161 : vector<8x32xf32>
    %181 = math.tanh %180 : vector<8x32xf32>
    %cst_112 = arith.constant 5.000000e-01 : f32
    %182 = vector.broadcast %cst_112 : f32 to vector<8x32xf32>
    %183 = arith.mulf %182, %181 : vector<8x32xf32>
    %cst_113 = arith.constant 5.000000e-01 : f32
    %184 = vector.broadcast %cst_113 : f32 to vector<8x32xf32>
    %185 = arith.addf %183, %184 : vector<8x32xf32>
    %186 = math.tanh %166 : vector<8x32xf32>
    %cst_114 = arith.constant 5.000000e-01 : f32
    %187 = vector.broadcast %cst_114 : f32 to vector<8x32xf32>
    %188 = arith.mulf %187, %171 : vector<8x32xf32>
    %189 = math.tanh %188 : vector<8x32xf32>
    %cst_115 = arith.constant 5.000000e-01 : f32
    %190 = vector.broadcast %cst_115 : f32 to vector<8x32xf32>
    %191 = arith.mulf %190, %189 : vector<8x32xf32>
    %cst_116 = arith.constant 5.000000e-01 : f32
    %192 = vector.broadcast %cst_116 : f32 to vector<8x32xf32>
    %193 = arith.addf %191, %192 : vector<8x32xf32>
    %194 = arith.mulf %185, %147 : vector<8x32xf32>
    %195 = arith.mulf %178, %186 : vector<8x32xf32>
    %196 = arith.addf %194, %195 : vector<8x32xf32>
    %197 = math.tanh %196 : vector<8x32xf32>
    %198 = arith.mulf %193, %197 : vector<8x32xf32>
    %c3_i32 = arith.constant 3 : i32
    %c8_i32_117 = arith.constant 8 : i32
    %199 = arith.muli %c3_i32, %c8_i32_117 : i32
    %200 = tpu.assume_multiple %199, 8 : i32
    %c0_118 = arith.constant 0 : index
    %201 = arith.index_cast %200 : i32 to index
    %c0_119 = arith.constant 0 : index
    %202 = vector.load %arg12[%c0_118, %201, %c0_119] : memref<4x64x32xf32, #tpu.memory_space<vmem>>, vector<1x8x32xf32>
    %203 = vector.shape_cast %202 : vector<1x8x32xf32> to vector<8x32xf32>
    %cst_120 = arith.constant dense<0.000000e+00> : vector<8x32xf32>
    %204 = tpu.matmul %198, %43, %cst_120 {dimension_numbers = #tpu.dot_dimension_numbers<[1], [0], [0], [1], [0, 0, 1, 1], [], []>} : vector<8x32xf32>, vector<32x32xf32>, vector<8x32xf32> -> vector<8x32xf32>
    %205 = arith.addf %203, %204 : vector<8x32xf32>
    %c1_121 = arith.constant 1 : index
    %206 = arith.index_cast %200 : i32 to index
    %c0_122 = arith.constant 0 : index
    %207 = vector.load %arg12[%c1_121, %206, %c0_122] : memref<4x64x32xf32, #tpu.memory_space<vmem>>, vector<1x8x32xf32>
    %208 = vector.shape_cast %207 : vector<1x8x32xf32> to vector<8x32xf32>
    %cst_123 = arith.constant dense<0.000000e+00> : vector<8x32xf32>
    %209 = tpu.matmul %198, %45, %cst_123 {dimension_numbers = #tpu.dot_dimension_numbers<[1], [0], [0], [1], [0, 0, 1, 1], [], []>} : vector<8x32xf32>, vector<32x32xf32>, vector<8x32xf32> -> vector<8x32xf32>
    %210 = arith.addf %208, %209 : vector<8x32xf32>
    %c2_124 = arith.constant 2 : index
    %211 = arith.index_cast %200 : i32 to index
    %c0_125 = arith.constant 0 : index
    %212 = vector.load %arg12[%c2_124, %211, %c0_125] : memref<4x64x32xf32, #tpu.memory_space<vmem>>, vector<1x8x32xf32>
    %213 = vector.shape_cast %212 : vector<1x8x32xf32> to vector<8x32xf32>
    %cst_126 = arith.constant dense<0.000000e+00> : vector<8x32xf32>
    %214 = tpu.matmul %198, %47, %cst_126 {dimension_numbers = #tpu.dot_dimension_numbers<[1], [0], [0], [1], [0, 0, 1, 1], [], []>} : vector<8x32xf32>, vector<32x32xf32>, vector<8x32xf32> -> vector<8x32xf32>
    %215 = arith.addf %213, %214 : vector<8x32xf32>
    %c3_127 = arith.constant 3 : index
    %216 = arith.index_cast %200 : i32 to index
    %c0_128 = arith.constant 0 : index
    %217 = vector.load %arg12[%c3_127, %216, %c0_128] : memref<4x64x32xf32, #tpu.memory_space<vmem>>, vector<1x8x32xf32>
    %218 = vector.shape_cast %217 : vector<1x8x32xf32> to vector<8x32xf32>
    %cst_129 = arith.constant dense<0.000000e+00> : vector<8x32xf32>
    %219 = tpu.matmul %198, %49, %cst_129 {dimension_numbers = #tpu.dot_dimension_numbers<[1], [0], [0], [1], [0, 0, 1, 1], [], []>} : vector<8x32xf32>, vector<32x32xf32>, vector<8x32xf32> -> vector<8x32xf32>
    %220 = arith.addf %218, %219 : vector<8x32xf32>
    %cst_130 = arith.constant 5.000000e-01 : f32
    %221 = vector.broadcast %cst_130 : f32 to vector<8x32xf32>
    %222 = arith.mulf %221, %205 : vector<8x32xf32>
    %223 = math.tanh %222 : vector<8x32xf32>
    %cst_131 = arith.constant 5.000000e-01 : f32
    %224 = vector.broadcast %cst_131 : f32 to vector<8x32xf32>
    %225 = arith.mulf %224, %223 : vector<8x32xf32>
    %cst_132 = arith.constant 5.000000e-01 : f32
    %226 = vector.broadcast %cst_132 : f32 to vector<8x32xf32>
    %227 = arith.addf %225, %226 : vector<8x32xf32>
    %cst_133 = arith.constant 5.000000e-01 : f32
    %228 = vector.broadcast %cst_133 : f32 to vector<8x32xf32>
    %229 = arith.mulf %228, %210 : vector<8x32xf32>
    %230 = math.tanh %229 : vector<8x32xf32>
    %cst_134 = arith.constant 5.000000e-01 : f32
    %231 = vector.broadcast %cst_134 : f32 to vector<8x32xf32>
    %232 = arith.mulf %231, %230 : vector<8x32xf32>
    %cst_135 = arith.constant 5.000000e-01 : f32
    %233 = vector.broadcast %cst_135 : f32 to vector<8x32xf32>
    %234 = arith.addf %232, %233 : vector<8x32xf32>
    %235 = math.tanh %215 : vector<8x32xf32>
    %cst_136 = arith.constant 5.000000e-01 : f32
    %236 = vector.broadcast %cst_136 : f32 to vector<8x32xf32>
    %237 = arith.mulf %236, %220 : vector<8x32xf32>
    %238 = math.tanh %237 : vector<8x32xf32>
    %cst_137 = arith.constant 5.000000e-01 : f32
    %239 = vector.broadcast %cst_137 : f32 to vector<8x32xf32>
    %240 = arith.mulf %239, %238 : vector<8x32xf32>
    %cst_138 = arith.constant 5.000000e-01 : f32
    %241 = vector.broadcast %cst_138 : f32 to vector<8x32xf32>
    %242 = arith.addf %240, %241 : vector<8x32xf32>
    %243 = arith.mulf %234, %196 : vector<8x32xf32>
    %244 = arith.mulf %227, %235 : vector<8x32xf32>
    %245 = arith.addf %243, %244 : vector<8x32xf32>
    %246 = math.tanh %245 : vector<8x32xf32>
    %247 = arith.mulf %242, %246 : vector<8x32xf32>
    %c4_i32 = arith.constant 4 : i32
    %c8_i32_139 = arith.constant 8 : i32
    %248 = arith.muli %c4_i32, %c8_i32_139 : i32
    %249 = tpu.assume_multiple %248, 8 : i32
    %c0_140 = arith.constant 0 : index
    %250 = arith.index_cast %249 : i32 to index
    %c0_141 = arith.constant 0 : index
    %251 = vector.load %arg12[%c0_140, %250, %c0_141] : memref<4x64x32xf32, #tpu.memory_space<vmem>>, vector<1x8x32xf32>
    %252 = vector.shape_cast %251 : vector<1x8x32xf32> to vector<8x32xf32>
    %cst_142 = arith.constant dense<0.000000e+00> : vector<8x32xf32>
    %253 = tpu.matmul %247, %43, %cst_142 {dimension_numbers = #tpu.dot_dimension_numbers<[1], [0], [0], [1], [0, 0, 1, 1], [], []>} : vector<8x32xf32>, vector<32x32xf32>, vector<8x32xf32> -> vector<8x32xf32>
    %254 = arith.addf %252, %253 : vector<8x32xf32>
    %c1_143 = arith.constant 1 : index
    %255 = arith.index_cast %249 : i32 to index
    %c0_144 = arith.constant 0 : index
    %256 = vector.load %arg12[%c1_143, %255, %c0_144] : memref<4x64x32xf32, #tpu.memory_space<vmem>>, vector<1x8x32xf32>
    %257 = vector.shape_cast %256 : vector<1x8x32xf32> to vector<8x32xf32>
    %cst_145 = arith.constant dense<0.000000e+00> : vector<8x32xf32>
    %258 = tpu.matmul %247, %45, %cst_145 {dimension_numbers = #tpu.dot_dimension_numbers<[1], [0], [0], [1], [0, 0, 1, 1], [], []>} : vector<8x32xf32>, vector<32x32xf32>, vector<8x32xf32> -> vector<8x32xf32>
    %259 = arith.addf %257, %258 : vector<8x32xf32>
    %c2_146 = arith.constant 2 : index
    %260 = arith.index_cast %249 : i32 to index
    %c0_147 = arith.constant 0 : index
    %261 = vector.load %arg12[%c2_146, %260, %c0_147] : memref<4x64x32xf32, #tpu.memory_space<vmem>>, vector<1x8x32xf32>
    %262 = vector.shape_cast %261 : vector<1x8x32xf32> to vector<8x32xf32>
    %cst_148 = arith.constant dense<0.000000e+00> : vector<8x32xf32>
    %263 = tpu.matmul %247, %47, %cst_148 {dimension_numbers = #tpu.dot_dimension_numbers<[1], [0], [0], [1], [0, 0, 1, 1], [], []>} : vector<8x32xf32>, vector<32x32xf32>, vector<8x32xf32> -> vector<8x32xf32>
    %264 = arith.addf %262, %263 : vector<8x32xf32>
    %c3_149 = arith.constant 3 : index
    %265 = arith.index_cast %249 : i32 to index
    %c0_150 = arith.constant 0 : index
    %266 = vector.load %arg12[%c3_149, %265, %c0_150] : memref<4x64x32xf32, #tpu.memory_space<vmem>>, vector<1x8x32xf32>
    %267 = vector.shape_cast %266 : vector<1x8x32xf32> to vector<8x32xf32>
    %cst_151 = arith.constant dense<0.000000e+00> : vector<8x32xf32>
    %268 = tpu.matmul %247, %49, %cst_151 {dimension_numbers = #tpu.dot_dimension_numbers<[1], [0], [0], [1], [0, 0, 1, 1], [], []>} : vector<8x32xf32>, vector<32x32xf32>, vector<8x32xf32> -> vector<8x32xf32>
    %269 = arith.addf %267, %268 : vector<8x32xf32>
    %cst_152 = arith.constant 5.000000e-01 : f32
    %270 = vector.broadcast %cst_152 : f32 to vector<8x32xf32>
    %271 = arith.mulf %270, %254 : vector<8x32xf32>
    %272 = math.tanh %271 : vector<8x32xf32>
    %cst_153 = arith.constant 5.000000e-01 : f32
    %273 = vector.broadcast %cst_153 : f32 to vector<8x32xf32>
    %274 = arith.mulf %273, %272 : vector<8x32xf32>
    %cst_154 = arith.constant 5.000000e-01 : f32
    %275 = vector.broadcast %cst_154 : f32 to vector<8x32xf32>
    %276 = arith.addf %274, %275 : vector<8x32xf32>
    %cst_155 = arith.constant 5.000000e-01 : f32
    %277 = vector.broadcast %cst_155 : f32 to vector<8x32xf32>
    %278 = arith.mulf %277, %259 : vector<8x32xf32>
    %279 = math.tanh %278 : vector<8x32xf32>
    %cst_156 = arith.constant 5.000000e-01 : f32
    %280 = vector.broadcast %cst_156 : f32 to vector<8x32xf32>
    %281 = arith.mulf %280, %279 : vector<8x32xf32>
    %cst_157 = arith.constant 5.000000e-01 : f32
    %282 = vector.broadcast %cst_157 : f32 to vector<8x32xf32>
    %283 = arith.addf %281, %282 : vector<8x32xf32>
    %284 = math.tanh %264 : vector<8x32xf32>
    %cst_158 = arith.constant 5.000000e-01 : f32
    %285 = vector.broadcast %cst_158 : f32 to vector<8x32xf32>
    %286 = arith.mulf %285, %269 : vector<8x32xf32>
    %287 = math.tanh %286 : vector<8x32xf32>
    %cst_159 = arith.constant 5.000000e-01 : f32
    %288 = vector.broadcast %cst_159 : f32 to vector<8x32xf32>
    %289 = arith.mulf %288, %287 : vector<8x32xf32>
    %cst_160 = arith.constant 5.000000e-01 : f32
    %290 = vector.broadcast %cst_160 : f32 to vector<8x32xf32>
    %291 = arith.addf %289, %290 : vector<8x32xf32>
    %292 = arith.mulf %283, %245 : vector<8x32xf32>
    %293 = arith.mulf %276, %284 : vector<8x32xf32>
    %294 = arith.addf %292, %293 : vector<8x32xf32>
    %295 = math.tanh %294 : vector<8x32xf32>
    %296 = arith.mulf %291, %295 : vector<8x32xf32>
    %c5_i32 = arith.constant 5 : i32
    %c8_i32_161 = arith.constant 8 : i32
    %297 = arith.muli %c5_i32, %c8_i32_161 : i32
    %298 = tpu.assume_multiple %297, 8 : i32
    %c0_162 = arith.constant 0 : index
    %299 = arith.index_cast %298 : i32 to index
    %c0_163 = arith.constant 0 : index
    %300 = vector.load %arg12[%c0_162, %299, %c0_163] : memref<4x64x32xf32, #tpu.memory_space<vmem>>, vector<1x8x32xf32>
    %301 = vector.shape_cast %300 : vector<1x8x32xf32> to vector<8x32xf32>
    %cst_164 = arith.constant dense<0.000000e+00> : vector<8x32xf32>
    %302 = tpu.matmul %296, %43, %cst_164 {dimension_numbers = #tpu.dot_dimension_numbers<[1], [0], [0], [1], [0, 0, 1, 1], [], []>} : vector<8x32xf32>, vector<32x32xf32>, vector<8x32xf32> -> vector<8x32xf32>
    %303 = arith.addf %301, %302 : vector<8x32xf32>
    %c1_165 = arith.constant 1 : index
    %304 = arith.index_cast %298 : i32 to index
    %c0_166 = arith.constant 0 : index
    %305 = vector.load %arg12[%c1_165, %304, %c0_166] : memref<4x64x32xf32, #tpu.memory_space<vmem>>, vector<1x8x32xf32>
    %306 = vector.shape_cast %305 : vector<1x8x32xf32> to vector<8x32xf32>
    %cst_167 = arith.constant dense<0.000000e+00> : vector<8x32xf32>
    %307 = tpu.matmul %296, %45, %cst_167 {dimension_numbers = #tpu.dot_dimension_numbers<[1], [0], [0], [1], [0, 0, 1, 1], [], []>} : vector<8x32xf32>, vector<32x32xf32>, vector<8x32xf32> -> vector<8x32xf32>
    %308 = arith.addf %306, %307 : vector<8x32xf32>
    %c2_168 = arith.constant 2 : index
    %309 = arith.index_cast %298 : i32 to index
    %c0_169 = arith.constant 0 : index
    %310 = vector.load %arg12[%c2_168, %309, %c0_169] : memref<4x64x32xf32, #tpu.memory_space<vmem>>, vector<1x8x32xf32>
    %311 = vector.shape_cast %310 : vector<1x8x32xf32> to vector<8x32xf32>
    %cst_170 = arith.constant dense<0.000000e+00> : vector<8x32xf32>
    %312 = tpu.matmul %296, %47, %cst_170 {dimension_numbers = #tpu.dot_dimension_numbers<[1], [0], [0], [1], [0, 0, 1, 1], [], []>} : vector<8x32xf32>, vector<32x32xf32>, vector<8x32xf32> -> vector<8x32xf32>
    %313 = arith.addf %311, %312 : vector<8x32xf32>
    %c3_171 = arith.constant 3 : index
    %314 = arith.index_cast %298 : i32 to index
    %c0_172 = arith.constant 0 : index
    %315 = vector.load %arg12[%c3_171, %314, %c0_172] : memref<4x64x32xf32, #tpu.memory_space<vmem>>, vector<1x8x32xf32>
    %316 = vector.shape_cast %315 : vector<1x8x32xf32> to vector<8x32xf32>
    %cst_173 = arith.constant dense<0.000000e+00> : vector<8x32xf32>
    %317 = tpu.matmul %296, %49, %cst_173 {dimension_numbers = #tpu.dot_dimension_numbers<[1], [0], [0], [1], [0, 0, 1, 1], [], []>} : vector<8x32xf32>, vector<32x32xf32>, vector<8x32xf32> -> vector<8x32xf32>
    %318 = arith.addf %316, %317 : vector<8x32xf32>
    %cst_174 = arith.constant 5.000000e-01 : f32
    %319 = vector.broadcast %cst_174 : f32 to vector<8x32xf32>
    %320 = arith.mulf %319, %303 : vector<8x32xf32>
    %321 = math.tanh %320 : vector<8x32xf32>
    %cst_175 = arith.constant 5.000000e-01 : f32
    %322 = vector.broadcast %cst_175 : f32 to vector<8x32xf32>
    %323 = arith.mulf %322, %321 : vector<8x32xf32>
    %cst_176 = arith.constant 5.000000e-01 : f32
    %324 = vector.broadcast %cst_176 : f32 to vector<8x32xf32>
    %325 = arith.addf %323, %324 : vector<8x32xf32>
    %cst_177 = arith.constant 5.000000e-01 : f32
    %326 = vector.broadcast %cst_177 : f32 to vector<8x32xf32>
    %327 = arith.mulf %326, %308 : vector<8x32xf32>
    %328 = math.tanh %327 : vector<8x32xf32>
    %cst_178 = arith.constant 5.000000e-01 : f32
    %329 = vector.broadcast %cst_178 : f32 to vector<8x32xf32>
    %330 = arith.mulf %329, %328 : vector<8x32xf32>
    %cst_179 = arith.constant 5.000000e-01 : f32
    %331 = vector.broadcast %cst_179 : f32 to vector<8x32xf32>
    %332 = arith.addf %330, %331 : vector<8x32xf32>
    %333 = math.tanh %313 : vector<8x32xf32>
    %cst_180 = arith.constant 5.000000e-01 : f32
    %334 = vector.broadcast %cst_180 : f32 to vector<8x32xf32>
    %335 = arith.mulf %334, %318 : vector<8x32xf32>
    %336 = math.tanh %335 : vector<8x32xf32>
    %cst_181 = arith.constant 5.000000e-01 : f32
    %337 = vector.broadcast %cst_181 : f32 to vector<8x32xf32>
    %338 = arith.mulf %337, %336 : vector<8x32xf32>
    %cst_182 = arith.constant 5.000000e-01 : f32
    %339 = vector.broadcast %cst_182 : f32 to vector<8x32xf32>
    %340 = arith.addf %338, %339 : vector<8x32xf32>
    %341 = arith.mulf %332, %294 : vector<8x32xf32>
    %342 = arith.mulf %325, %333 : vector<8x32xf32>
    %343 = arith.addf %341, %342 : vector<8x32xf32>
    %344 = math.tanh %343 : vector<8x32xf32>
    %345 = arith.mulf %340, %344 : vector<8x32xf32>
    %c6_i32 = arith.constant 6 : i32
    %c8_i32_183 = arith.constant 8 : i32
    %346 = arith.muli %c6_i32, %c8_i32_183 : i32
    %347 = tpu.assume_multiple %346, 8 : i32
    %c0_184 = arith.constant 0 : index
    %348 = arith.index_cast %347 : i32 to index
    %c0_185 = arith.constant 0 : index
    %349 = vector.load %arg12[%c0_184, %348, %c0_185] : memref<4x64x32xf32, #tpu.memory_space<vmem>>, vector<1x8x32xf32>
    %350 = vector.shape_cast %349 : vector<1x8x32xf32> to vector<8x32xf32>
    %cst_186 = arith.constant dense<0.000000e+00> : vector<8x32xf32>
    %351 = tpu.matmul %345, %43, %cst_186 {dimension_numbers = #tpu.dot_dimension_numbers<[1], [0], [0], [1], [0, 0, 1, 1], [], []>} : vector<8x32xf32>, vector<32x32xf32>, vector<8x32xf32> -> vector<8x32xf32>
    %352 = arith.addf %350, %351 : vector<8x32xf32>
    %c1_187 = arith.constant 1 : index
    %353 = arith.index_cast %347 : i32 to index
    %c0_188 = arith.constant 0 : index
    %354 = vector.load %arg12[%c1_187, %353, %c0_188] : memref<4x64x32xf32, #tpu.memory_space<vmem>>, vector<1x8x32xf32>
    %355 = vector.shape_cast %354 : vector<1x8x32xf32> to vector<8x32xf32>
    %cst_189 = arith.constant dense<0.000000e+00> : vector<8x32xf32>
    %356 = tpu.matmul %345, %45, %cst_189 {dimension_numbers = #tpu.dot_dimension_numbers<[1], [0], [0], [1], [0, 0, 1, 1], [], []>} : vector<8x32xf32>, vector<32x32xf32>, vector<8x32xf32> -> vector<8x32xf32>
    %357 = arith.addf %355, %356 : vector<8x32xf32>
    %c2_190 = arith.constant 2 : index
    %358 = arith.index_cast %347 : i32 to index
    %c0_191 = arith.constant 0 : index
    %359 = vector.load %arg12[%c2_190, %358, %c0_191] : memref<4x64x32xf32, #tpu.memory_space<vmem>>, vector<1x8x32xf32>
    %360 = vector.shape_cast %359 : vector<1x8x32xf32> to vector<8x32xf32>
    %cst_192 = arith.constant dense<0.000000e+00> : vector<8x32xf32>
    %361 = tpu.matmul %345, %47, %cst_192 {dimension_numbers = #tpu.dot_dimension_numbers<[1], [0], [0], [1], [0, 0, 1, 1], [], []>} : vector<8x32xf32>, vector<32x32xf32>, vector<8x32xf32> -> vector<8x32xf32>
    %362 = arith.addf %360, %361 : vector<8x32xf32>
    %c3_193 = arith.constant 3 : index
    %363 = arith.index_cast %347 : i32 to index
    %c0_194 = arith.constant 0 : index
    %364 = vector.load %arg12[%c3_193, %363, %c0_194] : memref<4x64x32xf32, #tpu.memory_space<vmem>>, vector<1x8x32xf32>
    %365 = vector.shape_cast %364 : vector<1x8x32xf32> to vector<8x32xf32>
    %cst_195 = arith.constant dense<0.000000e+00> : vector<8x32xf32>
    %366 = tpu.matmul %345, %49, %cst_195 {dimension_numbers = #tpu.dot_dimension_numbers<[1], [0], [0], [1], [0, 0, 1, 1], [], []>} : vector<8x32xf32>, vector<32x32xf32>, vector<8x32xf32> -> vector<8x32xf32>
    %367 = arith.addf %365, %366 : vector<8x32xf32>
    %cst_196 = arith.constant 5.000000e-01 : f32
    %368 = vector.broadcast %cst_196 : f32 to vector<8x32xf32>
    %369 = arith.mulf %368, %352 : vector<8x32xf32>
    %370 = math.tanh %369 : vector<8x32xf32>
    %cst_197 = arith.constant 5.000000e-01 : f32
    %371 = vector.broadcast %cst_197 : f32 to vector<8x32xf32>
    %372 = arith.mulf %371, %370 : vector<8x32xf32>
    %cst_198 = arith.constant 5.000000e-01 : f32
    %373 = vector.broadcast %cst_198 : f32 to vector<8x32xf32>
    %374 = arith.addf %372, %373 : vector<8x32xf32>
    %cst_199 = arith.constant 5.000000e-01 : f32
    %375 = vector.broadcast %cst_199 : f32 to vector<8x32xf32>
    %376 = arith.mulf %375, %357 : vector<8x32xf32>
    %377 = math.tanh %376 : vector<8x32xf32>
    %cst_200 = arith.constant 5.000000e-01 : f32
    %378 = vector.broadcast %cst_200 : f32 to vector<8x32xf32>
    %379 = arith.mulf %378, %377 : vector<8x32xf32>
    %cst_201 = arith.constant 5.000000e-01 : f32
    %380 = vector.broadcast %cst_201 : f32 to vector<8x32xf32>
    %381 = arith.addf %379, %380 : vector<8x32xf32>
    %382 = math.tanh %362 : vector<8x32xf32>
    %cst_202 = arith.constant 5.000000e-01 : f32
    %383 = vector.broadcast %cst_202 : f32 to vector<8x32xf32>
    %384 = arith.mulf %383, %367 : vector<8x32xf32>
    %385 = math.tanh %384 : vector<8x32xf32>
    %cst_203 = arith.constant 5.000000e-01 : f32
    %386 = vector.broadcast %cst_203 : f32 to vector<8x32xf32>
    %387 = arith.mulf %386, %385 : vector<8x32xf32>
    %cst_204 = arith.constant 5.000000e-01 : f32
    %388 = vector.broadcast %cst_204 : f32 to vector<8x32xf32>
    %389 = arith.addf %387, %388 : vector<8x32xf32>
    %390 = arith.mulf %381, %343 : vector<8x32xf32>
    %391 = arith.mulf %374, %382 : vector<8x32xf32>
    %392 = arith.addf %390, %391 : vector<8x32xf32>
    %393 = math.tanh %392 : vector<8x32xf32>
    %394 = arith.mulf %389, %393 : vector<8x32xf32>
    %c7_i32 = arith.constant 7 : i32
    %c8_i32_205 = arith.constant 8 : i32
    %395 = arith.muli %c7_i32, %c8_i32_205 : i32
    %396 = tpu.assume_multiple %395, 8 : i32
    %c0_206 = arith.constant 0 : index
    %397 = arith.index_cast %396 : i32 to index
    %c0_207 = arith.constant 0 : index
    %398 = vector.load %arg12[%c0_206, %397, %c0_207] : memref<4x64x32xf32, #tpu.memory_space<vmem>>, vector<1x8x32xf32>
    %399 = vector.shape_cast %398 : vector<1x8x32xf32> to vector<8x32xf32>
    %cst_208 = arith.constant dense<0.000000e+00> : vector<8x32xf32>
    %400 = tpu.matmul %394, %43, %cst_208 {dimension_numbers = #tpu.dot_dimension_numbers<[1], [0], [0], [1], [0, 0, 1, 1], [], []>} : vector<8x32xf32>, vector<32x32xf32>, vector<8x32xf32> -> vector<8x32xf32>
    %401 = arith.addf %399, %400 : vector<8x32xf32>
    %c1_209 = arith.constant 1 : index
    %402 = arith.index_cast %396 : i32 to index
    %c0_210 = arith.constant 0 : index
    %403 = vector.load %arg12[%c1_209, %402, %c0_210] : memref<4x64x32xf32, #tpu.memory_space<vmem>>, vector<1x8x32xf32>
    %404 = vector.shape_cast %403 : vector<1x8x32xf32> to vector<8x32xf32>
    %cst_211 = arith.constant dense<0.000000e+00> : vector<8x32xf32>
    %405 = tpu.matmul %394, %45, %cst_211 {dimension_numbers = #tpu.dot_dimension_numbers<[1], [0], [0], [1], [0, 0, 1, 1], [], []>} : vector<8x32xf32>, vector<32x32xf32>, vector<8x32xf32> -> vector<8x32xf32>
    %406 = arith.addf %404, %405 : vector<8x32xf32>
    %c2_212 = arith.constant 2 : index
    %407 = arith.index_cast %396 : i32 to index
    %c0_213 = arith.constant 0 : index
    %408 = vector.load %arg12[%c2_212, %407, %c0_213] : memref<4x64x32xf32, #tpu.memory_space<vmem>>, vector<1x8x32xf32>
    %409 = vector.shape_cast %408 : vector<1x8x32xf32> to vector<8x32xf32>
    %cst_214 = arith.constant dense<0.000000e+00> : vector<8x32xf32>
    %410 = tpu.matmul %394, %47, %cst_214 {dimension_numbers = #tpu.dot_dimension_numbers<[1], [0], [0], [1], [0, 0, 1, 1], [], []>} : vector<8x32xf32>, vector<32x32xf32>, vector<8x32xf32> -> vector<8x32xf32>
    %411 = arith.addf %409, %410 : vector<8x32xf32>
    %c3_215 = arith.constant 3 : index
    %412 = arith.index_cast %396 : i32 to index
    %c0_216 = arith.constant 0 : index
    %413 = vector.load %arg12[%c3_215, %412, %c0_216] : memref<4x64x32xf32, #tpu.memory_space<vmem>>, vector<1x8x32xf32>
    %414 = vector.shape_cast %413 : vector<1x8x32xf32> to vector<8x32xf32>
    %cst_217 = arith.constant dense<0.000000e+00> : vector<8x32xf32>
    %415 = tpu.matmul %394, %49, %cst_217 {dimension_numbers = #tpu.dot_dimension_numbers<[1], [0], [0], [1], [0, 0, 1, 1], [], []>} : vector<8x32xf32>, vector<32x32xf32>, vector<8x32xf32> -> vector<8x32xf32>
    %416 = arith.addf %414, %415 : vector<8x32xf32>
    %cst_218 = arith.constant 5.000000e-01 : f32
    %417 = vector.broadcast %cst_218 : f32 to vector<8x32xf32>
    %418 = arith.mulf %417, %401 : vector<8x32xf32>
    %419 = math.tanh %418 : vector<8x32xf32>
    %cst_219 = arith.constant 5.000000e-01 : f32
    %420 = vector.broadcast %cst_219 : f32 to vector<8x32xf32>
    %421 = arith.mulf %420, %419 : vector<8x32xf32>
    %cst_220 = arith.constant 5.000000e-01 : f32
    %422 = vector.broadcast %cst_220 : f32 to vector<8x32xf32>
    %423 = arith.addf %421, %422 : vector<8x32xf32>
    %cst_221 = arith.constant 5.000000e-01 : f32
    %424 = vector.broadcast %cst_221 : f32 to vector<8x32xf32>
    %425 = arith.mulf %424, %406 : vector<8x32xf32>
    %426 = math.tanh %425 : vector<8x32xf32>
    %cst_222 = arith.constant 5.000000e-01 : f32
    %427 = vector.broadcast %cst_222 : f32 to vector<8x32xf32>
    %428 = arith.mulf %427, %426 : vector<8x32xf32>
    %cst_223 = arith.constant 5.000000e-01 : f32
    %429 = vector.broadcast %cst_223 : f32 to vector<8x32xf32>
    %430 = arith.addf %428, %429 : vector<8x32xf32>
    %431 = math.tanh %411 : vector<8x32xf32>
    %cst_224 = arith.constant 5.000000e-01 : f32
    %432 = vector.broadcast %cst_224 : f32 to vector<8x32xf32>
    %433 = arith.mulf %432, %416 : vector<8x32xf32>
    %434 = math.tanh %433 : vector<8x32xf32>
    %cst_225 = arith.constant 5.000000e-01 : f32
    %435 = vector.broadcast %cst_225 : f32 to vector<8x32xf32>
    %436 = arith.mulf %435, %434 : vector<8x32xf32>
    %cst_226 = arith.constant 5.000000e-01 : f32
    %437 = vector.broadcast %cst_226 : f32 to vector<8x32xf32>
    %438 = arith.addf %436, %437 : vector<8x32xf32>
    %439 = arith.mulf %430, %392 : vector<8x32xf32>
    %440 = arith.mulf %423, %431 : vector<8x32xf32>
    %441 = arith.addf %439, %440 : vector<8x32xf32>
    %442 = math.tanh %441 : vector<8x32xf32>
    %443 = arith.mulf %438, %442 : vector<8x32xf32>
    %c8_i32_227 = arith.constant 8 : i32
    %c0_228 = arith.constant 0 : index
    %c0_229 = arith.constant 0 : index
    %c0_230 = arith.constant 0 : index
    %444 = vector.load %arg5[%c0_228, %c0_229, %c0_230] : memref<4x32x8xf32, #tpu.memory_space<vmem>>, vector<1x32x8xf32>
    %445 = vector.shape_cast %444 : vector<1x32x8xf32> to vector<32x8xf32>
    %cst_231 = arith.constant dense<0.000000e+00> : vector<8x8xf32>
    %446 = tpu.matmul %443, %445, %cst_231 {dimension_numbers = #tpu.dot_dimension_numbers<[1], [0], [0], [1], [0, 0, 1, 1], [], []>} : vector<8x32xf32>, vector<32x8xf32>, vector<8x8xf32> -> vector<8x8xf32>
    %c0_232 = arith.constant 0 : index
    %c0_233 = arith.constant 0 : index
    %c0_234 = arith.constant 0 : index
    %447 = vector.load %arg7[%c0_232, %c0_233, %c0_234] : memref<4x1x8xf32, #tpu.memory_space<vmem>>, vector<1x1x8xf32>
    %448 = vector.shape_cast %447 : vector<1x1x8xf32> to vector<1x8xf32>
    %449 = vector.broadcast %448 : vector<1x8xf32> to vector<8x8xf32>
    %450 = arith.addf %446, %449 : vector<8x8xf32>
    %c0_235 = arith.constant 0 : index
    %c0_236 = arith.constant 0 : index
    %c0_237 = arith.constant 0 : index
    %451 = vector.load %arg13[%c0_235, %c0_236, %c0_237] : memref<4x8x8xf32, #tpu.memory_space<vmem>>, vector<1x8x8xf32>
    %452 = vector.shape_cast %451 : vector<1x8x8xf32> to vector<8x8xf32>
    %453 = vector.shape_cast %450 : vector<8x8xf32> to vector<1x8x8xf32>
    tpu.vector_store %arg13[%c0_235, %c0_236, %c0_237], %453 {strides = array<i32>} : memref<4x8x8xf32, #tpu.memory_space<vmem>>, vector<1x8x8xf32>,
    %c1_238 = arith.constant 1 : index
    %c0_239 = arith.constant 0 : index
    %c0_240 = arith.constant 0 : index
    %454 = vector.load %arg5[%c1_238, %c0_239, %c0_240] : memref<4x32x8xf32, #tpu.memory_space<vmem>>, vector<1x32x8xf32>
    %455 = vector.shape_cast %454 : vector<1x32x8xf32> to vector<32x8xf32>
    %cst_241 = arith.constant dense<0.000000e+00> : vector<8x8xf32>
    %456 = tpu.matmul %443, %455, %cst_241 {dimension_numbers = #tpu.dot_dimension_numbers<[1], [0], [0], [1], [0, 0, 1, 1], [], []>} : vector<8x32xf32>, vector<32x8xf32>, vector<8x8xf32> -> vector<8x8xf32>
    %c1_242 = arith.constant 1 : index
    %c0_243 = arith.constant 0 : index
    %c0_244 = arith.constant 0 : index
    %457 = vector.load %arg7[%c1_242, %c0_243, %c0_244] : memref<4x1x8xf32, #tpu.memory_space<vmem>>, vector<1x1x8xf32>
    %458 = vector.shape_cast %457 : vector<1x1x8xf32> to vector<1x8xf32>
    %459 = vector.broadcast %458 : vector<1x8xf32> to vector<8x8xf32>
    %460 = arith.addf %456, %459 : vector<8x8xf32>
    %c1_245 = arith.constant 1 : index
    %c0_246 = arith.constant 0 : index
    %c0_247 = arith.constant 0 : index
    %461 = vector.load %arg13[%c1_245, %c0_246, %c0_247] : memref<4x8x8xf32, #tpu.memory_space<vmem>>, vector<1x8x8xf32>
    %462 = vector.shape_cast %461 : vector<1x8x8xf32> to vector<8x8xf32>
    %463 = vector.shape_cast %460 : vector<8x8xf32> to vector<1x8x8xf32>
    tpu.vector_store %arg13[%c1_245, %c0_246, %c0_247], %463 {strides = array<i32>} : memref<4x8x8xf32, #tpu.memory_space<vmem>>, vector<1x8x8xf32>,
    %c2_248 = arith.constant 2 : index
    %c0_249 = arith.constant 0 : index
    %c0_250 = arith.constant 0 : index
    %464 = vector.load %arg5[%c2_248, %c0_249, %c0_250] : memref<4x32x8xf32, #tpu.memory_space<vmem>>, vector<1x32x8xf32>
    %465 = vector.shape_cast %464 : vector<1x32x8xf32> to vector<32x8xf32>
    %cst_251 = arith.constant dense<0.000000e+00> : vector<8x8xf32>
    %466 = tpu.matmul %443, %465, %cst_251 {dimension_numbers = #tpu.dot_dimension_numbers<[1], [0], [0], [1], [0, 0, 1, 1], [], []>} : vector<8x32xf32>, vector<32x8xf32>, vector<8x8xf32> -> vector<8x8xf32>
    %c2_252 = arith.constant 2 : index
    %c0_253 = arith.constant 0 : index
    %c0_254 = arith.constant 0 : index
    %467 = vector.load %arg7[%c2_252, %c0_253, %c0_254] : memref<4x1x8xf32, #tpu.memory_space<vmem>>, vector<1x1x8xf32>
    %468 = vector.shape_cast %467 : vector<1x1x8xf32> to vector<1x8xf32>
    %469 = vector.broadcast %468 : vector<1x8xf32> to vector<8x8xf32>
    %470 = arith.addf %466, %469 : vector<8x8xf32>
    %c2_255 = arith.constant 2 : index
    %c0_256 = arith.constant 0 : index
    %c0_257 = arith.constant 0 : index
    %471 = vector.load %arg13[%c2_255, %c0_256, %c0_257] : memref<4x8x8xf32, #tpu.memory_space<vmem>>, vector<1x8x8xf32>
    %472 = vector.shape_cast %471 : vector<1x8x8xf32> to vector<8x8xf32>
    %473 = vector.shape_cast %470 : vector<8x8xf32> to vector<1x8x8xf32>
    tpu.vector_store %arg13[%c2_255, %c0_256, %c0_257], %473 {strides = array<i32>} : memref<4x8x8xf32, #tpu.memory_space<vmem>>, vector<1x8x8xf32>,
    %c3_258 = arith.constant 3 : index
    %c0_259 = arith.constant 0 : index
    %c0_260 = arith.constant 0 : index
    %474 = vector.load %arg5[%c3_258, %c0_259, %c0_260] : memref<4x32x8xf32, #tpu.memory_space<vmem>>, vector<1x32x8xf32>
    %475 = vector.shape_cast %474 : vector<1x32x8xf32> to vector<32x8xf32>
    %cst_261 = arith.constant dense<0.000000e+00> : vector<8x8xf32>
    %476 = tpu.matmul %443, %475, %cst_261 {dimension_numbers = #tpu.dot_dimension_numbers<[1], [0], [0], [1], [0, 0, 1, 1], [], []>} : vector<8x32xf32>, vector<32x8xf32>, vector<8x8xf32> -> vector<8x8xf32>
    %c3_262 = arith.constant 3 : index
    %c0_263 = arith.constant 0 : index
    %c0_264 = arith.constant 0 : index
    %477 = vector.load %arg7[%c3_262, %c0_263, %c0_264] : memref<4x1x8xf32, #tpu.memory_space<vmem>>, vector<1x1x8xf32>
    %478 = vector.shape_cast %477 : vector<1x1x8xf32> to vector<1x8xf32>
    %479 = vector.broadcast %478 : vector<1x8xf32> to vector<8x8xf32>
    %480 = arith.addf %476, %479 : vector<8x8xf32>
    %c3_265 = arith.constant 3 : index
    %c0_266 = arith.constant 0 : index
    %c0_267 = arith.constant 0 : index
    %481 = vector.load %arg13[%c3_265, %c0_266, %c0_267] : memref<4x8x8xf32, #tpu.memory_space<vmem>>, vector<1x8x8xf32>
    %482 = vector.shape_cast %481 : vector<1x8x8xf32> to vector<8x8xf32>
    %483 = vector.shape_cast %480 : vector<8x8xf32> to vector<1x8x8xf32>
    tpu.vector_store %arg13[%c3_265, %c0_266, %c0_267], %483 {strides = array<i32>} : memref<4x8x8xf32, #tpu.memory_space<vmem>>, vector<1x8x8xf32>,
    %c0_268 = arith.constant 0 : index
    %c0_269 = arith.constant 0 : index
    %c0_270 = arith.constant 0 : index
    %484 = vector.load %arg6[%c0_268, %c0_269, %c0_270] : memref<4x8x8xf32, #tpu.memory_space<vmem>>, vector<1x8x8xf32>
    %485 = vector.shape_cast %484 : vector<1x8x8xf32> to vector<8x8xf32>
    %c1_271 = arith.constant 1 : index
    %c0_272 = arith.constant 0 : index
    %c0_273 = arith.constant 0 : index
    %486 = vector.load %arg6[%c1_271, %c0_272, %c0_273] : memref<4x8x8xf32, #tpu.memory_space<vmem>>, vector<1x8x8xf32>
    %487 = vector.shape_cast %486 : vector<1x8x8xf32> to vector<8x8xf32>
    %c2_274 = arith.constant 2 : index
    %c0_275 = arith.constant 0 : index
    %c0_276 = arith.constant 0 : index
    %488 = vector.load %arg6[%c2_274, %c0_275, %c0_276] : memref<4x8x8xf32, #tpu.memory_space<vmem>>, vector<1x8x8xf32>
    %489 = vector.shape_cast %488 : vector<1x8x8xf32> to vector<8x8xf32>
    %c3_277 = arith.constant 3 : index
    %c0_278 = arith.constant 0 : index
    %c0_279 = arith.constant 0 : index
    %490 = vector.load %arg6[%c3_277, %c0_278, %c0_279] : memref<4x8x8xf32, #tpu.memory_space<vmem>>, vector<1x8x8xf32>
    %491 = vector.shape_cast %490 : vector<1x8x8xf32> to vector<8x8xf32>
    %cst_280 = arith.constant 0.000000e+00 : f32
    %492 = vector.broadcast %cst_280 : f32 to vector<8x8xf32>
    %cst_281 = arith.constant 0.000000e+00 : f32
    %493 = vector.broadcast %cst_281 : f32 to vector<8x8xf32>
    %cst_282 = arith.constant 0.000000e+00 : f32
    %494 = vector.broadcast %cst_282 : f32 to vector<8x128xf32>
    %c0_i32_283 = arith.constant 0 : i32
    %c0_284 = arith.constant 0 : index
    %c0_285 = arith.constant 0 : index
    %c0_286 = arith.constant 0 : index
    %495 = vector.load %arg13[%c0_284, %c0_285, %c0_286] : memref<4x8x8xf32, #tpu.memory_space<vmem>>, vector<1x8x8xf32>
    %496 = vector.shape_cast %495 : vector<1x8x8xf32> to vector<8x8xf32>
    %cst_287 = arith.constant dense<0.000000e+00> : vector<8x8xf32>
    %497 = tpu.matmul %492, %485, %cst_287 {dimension_numbers = #tpu.dot_dimension_numbers<[1], [0], [0], [1], [0, 0, 1, 1], [], []>} : vector<8x8xf32>, vector<8x8xf32>, vector<8x8xf32> -> vector<8x8xf32>
    %498 = arith.addf %496, %497 : vector<8x8xf32>
    %c1_288 = arith.constant 1 : index
    %c0_289 = arith.constant 0 : index
    %c0_290 = arith.constant 0 : index
    %499 = vector.load %arg13[%c1_288, %c0_289, %c0_290] : memref<4x8x8xf32, #tpu.memory_space<vmem>>, vector<1x8x8xf32>
    %500 = vector.shape_cast %499 : vector<1x8x8xf32> to vector<8x8xf32>
    %cst_291 = arith.constant dense<0.000000e+00> : vector<8x8xf32>
    %501 = tpu.matmul %492, %487, %cst_291 {dimension_numbers = #tpu.dot_dimension_numbers<[1], [0], [0], [1], [0, 0, 1, 1], [], []>} : vector<8x8xf32>, vector<8x8xf32>, vector<8x8xf32> -> vector<8x8xf32>
    %502 = arith.addf %500, %501 : vector<8x8xf32>
    %c2_292 = arith.constant 2 : index
    %c0_293 = arith.constant 0 : index
    %c0_294 = arith.constant 0 : index
    %503 = vector.load %arg13[%c2_292, %c0_293, %c0_294] : memref<4x8x8xf32, #tpu.memory_space<vmem>>, vector<1x8x8xf32>
    %504 = vector.shape_cast %503 : vector<1x8x8xf32> to vector<8x8xf32>
    %cst_295 = arith.constant dense<0.000000e+00> : vector<8x8xf32>
    %505 = tpu.matmul %492, %489, %cst_295 {dimension_numbers = #tpu.dot_dimension_numbers<[1], [0], [0], [1], [0, 0, 1, 1], [], []>} : vector<8x8xf32>, vector<8x8xf32>, vector<8x8xf32> -> vector<8x8xf32>
    %506 = arith.addf %504, %505 : vector<8x8xf32>
    %c3_296 = arith.constant 3 : index
    %c0_297 = arith.constant 0 : index
    %c0_298 = arith.constant 0 : index
    %507 = vector.load %arg13[%c3_296, %c0_297, %c0_298] : memref<4x8x8xf32, #tpu.memory_space<vmem>>, vector<1x8x8xf32>
    %508 = vector.shape_cast %507 : vector<1x8x8xf32> to vector<8x8xf32>
    %cst_299 = arith.constant dense<0.000000e+00> : vector<8x8xf32>
    %509 = tpu.matmul %492, %491, %cst_299 {dimension_numbers = #tpu.dot_dimension_numbers<[1], [0], [0], [1], [0, 0, 1, 1], [], []>} : vector<8x8xf32>, vector<8x8xf32>, vector<8x8xf32> -> vector<8x8xf32>
    %510 = arith.addf %508, %509 : vector<8x8xf32>
    %cst_300 = arith.constant 5.000000e-01 : f32
    %511 = vector.broadcast %cst_300 : f32 to vector<8x8xf32>
    %512 = arith.mulf %511, %498 : vector<8x8xf32>
    %513 = math.tanh %512 : vector<8x8xf32>
    %cst_301 = arith.constant 5.000000e-01 : f32
    %514 = vector.broadcast %cst_301 : f32 to vector<8x8xf32>
    %515 = arith.mulf %514, %513 : vector<8x8xf32>
    %cst_302 = arith.constant 5.000000e-01 : f32
    %516 = vector.broadcast %cst_302 : f32 to vector<8x8xf32>
    %517 = arith.addf %515, %516 : vector<8x8xf32>
    %cst_303 = arith.constant 5.000000e-01 : f32
    %518 = vector.broadcast %cst_303 : f32 to vector<8x8xf32>
    %519 = arith.mulf %518, %502 : vector<8x8xf32>
    %520 = math.tanh %519 : vector<8x8xf32>
    %cst_304 = arith.constant 5.000000e-01 : f32
    %521 = vector.broadcast %cst_304 : f32 to vector<8x8xf32>
    %522 = arith.mulf %521, %520 : vector<8x8xf32>
    %cst_305 = arith.constant 5.000000e-01 : f32
    %523 = vector.broadcast %cst_305 : f32 to vector<8x8xf32>
    %524 = arith.addf %522, %523 : vector<8x8xf32>
    %525 = math.tanh %506 : vector<8x8xf32>
    %cst_306 = arith.constant 5.000000e-01 : f32
    %526 = vector.broadcast %cst_306 : f32 to vector<8x8xf32>
    %527 = arith.mulf %526, %510 : vector<8x8xf32>
    %528 = math.tanh %527 : vector<8x8xf32>
    %cst_307 = arith.constant 5.000000e-01 : f32
    %529 = vector.broadcast %cst_307 : f32 to vector<8x8xf32>
    %530 = arith.mulf %529, %528 : vector<8x8xf32>
    %cst_308 = arith.constant 5.000000e-01 : f32
    %531 = vector.broadcast %cst_308 : f32 to vector<8x8xf32>
    %532 = arith.addf %530, %531 : vector<8x8xf32>
    %533 = arith.mulf %524, %493 : vector<8x8xf32>
    %534 = arith.mulf %517, %525 : vector<8x8xf32>
    %535 = arith.addf %533, %534 : vector<8x8xf32>
    %536 = math.tanh %535 : vector<8x8xf32>
    %537 = arith.mulf %532, %536 : vector<8x8xf32>
    %538 = arith.index_cast %c0_i32_283 : i32 to index
    %c0_309 = arith.constant 0 : index
    %c0_310 = arith.constant 0 : index
    %539 = vector.load %arg8[%538, %c0_309, %c0_310] : memref<8x8x128xf32, #tpu.memory_space<vmem>>, vector<1x8x128xf32>
    %540 = vector.shape_cast %539 : vector<1x8x128xf32> to vector<8x128xf32>
    %cst_311 = arith.constant dense<0.000000e+00> : vector<8x128xf32>
    %541 = tpu.matmul %537, %540, %cst_311 {dimension_numbers = #tpu.dot_dimension_numbers<[1], [0], [0], [1], [0, 0, 1, 1], [], []>} : vector<8x8xf32>, vector<8x128xf32>, vector<8x128xf32> -> vector<8x128xf32>
    %542 = arith.addf %494, %541 : vector<8x128xf32>
    %c1_i32_312 = arith.constant 1 : i32
    %c0_313 = arith.constant 0 : index
    %c0_314 = arith.constant 0 : index
    %c0_315 = arith.constant 0 : index
    %543 = vector.load %arg13[%c0_313, %c0_314, %c0_315] : memref<4x8x8xf32, #tpu.memory_space<vmem>>, vector<1x8x8xf32>
    %544 = vector.shape_cast %543 : vector<1x8x8xf32> to vector<8x8xf32>
    %cst_316 = arith.constant dense<0.000000e+00> : vector<8x8xf32>
    %545 = tpu.matmul %537, %485, %cst_316 {dimension_numbers = #tpu.dot_dimension_numbers<[1], [0], [0], [1], [0, 0, 1, 1], [], []>} : vector<8x8xf32>, vector<8x8xf32>, vector<8x8xf32> -> vector<8x8xf32>
    %546 = arith.addf %544, %545 : vector<8x8xf32>
    %c1_317 = arith.constant 1 : index
    %c0_318 = arith.constant 0 : index
    %c0_319 = arith.constant 0 : index
    %547 = vector.load %arg13[%c1_317, %c0_318, %c0_319] : memref<4x8x8xf32, #tpu.memory_space<vmem>>, vector<1x8x8xf32>
    %548 = vector.shape_cast %547 : vector<1x8x8xf32> to vector<8x8xf32>
    %cst_320 = arith.constant dense<0.000000e+00> : vector<8x8xf32>
    %549 = tpu.matmul %537, %487, %cst_320 {dimension_numbers = #tpu.dot_dimension_numbers<[1], [0], [0], [1], [0, 0, 1, 1], [], []>} : vector<8x8xf32>, vector<8x8xf32>, vector<8x8xf32> -> vector<8x8xf32>
    %550 = arith.addf %548, %549 : vector<8x8xf32>
    %c2_321 = arith.constant 2 : index
    %c0_322 = arith.constant 0 : index
    %c0_323 = arith.constant 0 : index
    %551 = vector.load %arg13[%c2_321, %c0_322, %c0_323] : memref<4x8x8xf32, #tpu.memory_space<vmem>>, vector<1x8x8xf32>
    %552 = vector.shape_cast %551 : vector<1x8x8xf32> to vector<8x8xf32>
    %cst_324 = arith.constant dense<0.000000e+00> : vector<8x8xf32>
    %553 = tpu.matmul %537, %489, %cst_324 {dimension_numbers = #tpu.dot_dimension_numbers<[1], [0], [0], [1], [0, 0, 1, 1], [], []>} : vector<8x8xf32>, vector<8x8xf32>, vector<8x8xf32> -> vector<8x8xf32>
    %554 = arith.addf %552, %553 : vector<8x8xf32>
    %c3_325 = arith.constant 3 : index
    %c0_326 = arith.constant 0 : index
    %c0_327 = arith.constant 0 : index
    %555 = vector.load %arg13[%c3_325, %c0_326, %c0_327] : memref<4x8x8xf32, #tpu.memory_space<vmem>>, vector<1x8x8xf32>
    %556 = vector.shape_cast %555 : vector<1x8x8xf32> to vector<8x8xf32>
    %cst_328 = arith.constant dense<0.000000e+00> : vector<8x8xf32>
    %557 = tpu.matmul %537, %491, %cst_328 {dimension_numbers = #tpu.dot_dimension_numbers<[1], [0], [0], [1], [0, 0, 1, 1], [], []>} : vector<8x8xf32>, vector<8x8xf32>, vector<8x8xf32> -> vector<8x8xf32>
    %558 = arith.addf %556, %557 : vector<8x8xf32>
    %cst_329 = arith.constant 5.000000e-01 : f32
    %559 = vector.broadcast %cst_329 : f32 to vector<8x8xf32>
    %560 = arith.mulf %559, %546 : vector<8x8xf32>
    %561 = math.tanh %560 : vector<8x8xf32>
    %cst_330 = arith.constant 5.000000e-01 : f32
    %562 = vector.broadcast %cst_330 : f32 to vector<8x8xf32>
    %563 = arith.mulf %562, %561 : vector<8x8xf32>
    %cst_331 = arith.constant 5.000000e-01 : f32
    %564 = vector.broadcast %cst_331 : f32 to vector<8x8xf32>
    %565 = arith.addf %563, %564 : vector<8x8xf32>
    %cst_332 = arith.constant 5.000000e-01 : f32
    %566 = vector.broadcast %cst_332 : f32 to vector<8x8xf32>
    %567 = arith.mulf %566, %550 : vector<8x8xf32>
    %568 = math.tanh %567 : vector<8x8xf32>
    %cst_333 = arith.constant 5.000000e-01 : f32
    %569 = vector.broadcast %cst_333 : f32 to vector<8x8xf32>
    %570 = arith.mulf %569, %568 : vector<8x8xf32>
    %cst_334 = arith.constant 5.000000e-01 : f32
    %571 = vector.broadcast %cst_334 : f32 to vector<8x8xf32>
    %572 = arith.addf %570, %571 : vector<8x8xf32>
    %573 = math.tanh %554 : vector<8x8xf32>
    %cst_335 = arith.constant 5.000000e-01 : f32
    %574 = vector.broadcast %cst_335 : f32 to vector<8x8xf32>
    %575 = arith.mulf %574, %558 : vector<8x8xf32>
    %576 = math.tanh %575 : vector<8x8xf32>
    %cst_336 = arith.constant 5.000000e-01 : f32
    %577 = vector.broadcast %cst_336 : f32 to vector<8x8xf32>
    %578 = arith.mulf %577, %576 : vector<8x8xf32>
    %cst_337 = arith.constant 5.000000e-01 : f32
    %579 = vector.broadcast %cst_337 : f32 to vector<8x8xf32>
    %580 = arith.addf %578, %579 : vector<8x8xf32>
    %581 = arith.mulf %572, %535 : vector<8x8xf32>
    %582 = arith.mulf %565, %573 : vector<8x8xf32>
    %583 = arith.addf %581, %582 : vector<8x8xf32>
    %584 = math.tanh %583 : vector<8x8xf32>
    %585 = arith.mulf %580, %584 : vector<8x8xf32>
    %586 = arith.index_cast %c1_i32_312 : i32 to index
    %c0_338 = arith.constant 0 : index
    %c0_339 = arith.constant 0 : index
    %587 = vector.load %arg8[%586, %c0_338, %c0_339] : memref<8x8x128xf32, #tpu.memory_space<vmem>>, vector<1x8x128xf32>
    %588 = vector.shape_cast %587 : vector<1x8x128xf32> to vector<8x128xf32>
    %cst_340 = arith.constant dense<0.000000e+00> : vector<8x128xf32>
    %589 = tpu.matmul %585, %588, %cst_340 {dimension_numbers = #tpu.dot_dimension_numbers<[1], [0], [0], [1], [0, 0, 1, 1], [], []>} : vector<8x8xf32>, vector<8x128xf32>, vector<8x128xf32> -> vector<8x128xf32>
    %590 = arith.addf %542, %589 : vector<8x128xf32>
    %c2_i32_341 = arith.constant 2 : i32
    %c0_342 = arith.constant 0 : index
    %c0_343 = arith.constant 0 : index
    %c0_344 = arith.constant 0 : index
    %591 = vector.load %arg13[%c0_342, %c0_343, %c0_344] : memref<4x8x8xf32, #tpu.memory_space<vmem>>, vector<1x8x8xf32>
    %592 = vector.shape_cast %591 : vector<1x8x8xf32> to vector<8x8xf32>
    %cst_345 = arith.constant dense<0.000000e+00> : vector<8x8xf32>
    %593 = tpu.matmul %585, %485, %cst_345 {dimension_numbers = #tpu.dot_dimension_numbers<[1], [0], [0], [1], [0, 0, 1, 1], [], []>} : vector<8x8xf32>, vector<8x8xf32>, vector<8x8xf32> -> vector<8x8xf32>
    %594 = arith.addf %592, %593 : vector<8x8xf32>
    %c1_346 = arith.constant 1 : index
    %c0_347 = arith.constant 0 : index
    %c0_348 = arith.constant 0 : index
    %595 = vector.load %arg13[%c1_346, %c0_347, %c0_348] : memref<4x8x8xf32, #tpu.memory_space<vmem>>, vector<1x8x8xf32>
    %596 = vector.shape_cast %595 : vector<1x8x8xf32> to vector<8x8xf32>
    %cst_349 = arith.constant dense<0.000000e+00> : vector<8x8xf32>
    %597 = tpu.matmul %585, %487, %cst_349 {dimension_numbers = #tpu.dot_dimension_numbers<[1], [0], [0], [1], [0, 0, 1, 1], [], []>} : vector<8x8xf32>, vector<8x8xf32>, vector<8x8xf32> -> vector<8x8xf32>
    %598 = arith.addf %596, %597 : vector<8x8xf32>
    %c2_350 = arith.constant 2 : index
    %c0_351 = arith.constant 0 : index
    %c0_352 = arith.constant 0 : index
    %599 = vector.load %arg13[%c2_350, %c0_351, %c0_352] : memref<4x8x8xf32, #tpu.memory_space<vmem>>, vector<1x8x8xf32>
    %600 = vector.shape_cast %599 : vector<1x8x8xf32> to vector<8x8xf32>
    %cst_353 = arith.constant dense<0.000000e+00> : vector<8x8xf32>
    %601 = tpu.matmul %585, %489, %cst_353 {dimension_numbers = #tpu.dot_dimension_numbers<[1], [0], [0], [1], [0, 0, 1, 1], [], []>} : vector<8x8xf32>, vector<8x8xf32>, vector<8x8xf32> -> vector<8x8xf32>
    %602 = arith.addf %600, %601 : vector<8x8xf32>
    %c3_354 = arith.constant 3 : index
    %c0_355 = arith.constant 0 : index
    %c0_356 = arith.constant 0 : index
    %603 = vector.load %arg13[%c3_354, %c0_355, %c0_356] : memref<4x8x8xf32, #tpu.memory_space<vmem>>, vector<1x8x8xf32>
    %604 = vector.shape_cast %603 : vector<1x8x8xf32> to vector<8x8xf32>
    %cst_357 = arith.constant dense<0.000000e+00> : vector<8x8xf32>
    %605 = tpu.matmul %585, %491, %cst_357 {dimension_numbers = #tpu.dot_dimension_numbers<[1], [0], [0], [1], [0, 0, 1, 1], [], []>} : vector<8x8xf32>, vector<8x8xf32>, vector<8x8xf32> -> vector<8x8xf32>
    %606 = arith.addf %604, %605 : vector<8x8xf32>
    %cst_358 = arith.constant 5.000000e-01 : f32
    %607 = vector.broadcast %cst_358 : f32 to vector<8x8xf32>
    %608 = arith.mulf %607, %594 : vector<8x8xf32>
    %609 = math.tanh %608 : vector<8x8xf32>
    %cst_359 = arith.constant 5.000000e-01 : f32
    %610 = vector.broadcast %cst_359 : f32 to vector<8x8xf32>
    %611 = arith.mulf %610, %609 : vector<8x8xf32>
    %cst_360 = arith.constant 5.000000e-01 : f32
    %612 = vector.broadcast %cst_360 : f32 to vector<8x8xf32>
    %613 = arith.addf %611, %612 : vector<8x8xf32>
    %cst_361 = arith.constant 5.000000e-01 : f32
    %614 = vector.broadcast %cst_361 : f32 to vector<8x8xf32>
    %615 = arith.mulf %614, %598 : vector<8x8xf32>
    %616 = math.tanh %615 : vector<8x8xf32>
    %cst_362 = arith.constant 5.000000e-01 : f32
    %617 = vector.broadcast %cst_362 : f32 to vector<8x8xf32>
    %618 = arith.mulf %617, %616 : vector<8x8xf32>
    %cst_363 = arith.constant 5.000000e-01 : f32
    %619 = vector.broadcast %cst_363 : f32 to vector<8x8xf32>
    %620 = arith.addf %618, %619 : vector<8x8xf32>
    %621 = math.tanh %602 : vector<8x8xf32>
    %cst_364 = arith.constant 5.000000e-01 : f32
    %622 = vector.broadcast %cst_364 : f32 to vector<8x8xf32>
    %623 = arith.mulf %622, %606 : vector<8x8xf32>
    %624 = math.tanh %623 : vector<8x8xf32>
    %cst_365 = arith.constant 5.000000e-01 : f32
    %625 = vector.broadcast %cst_365 : f32 to vector<8x8xf32>
    %626 = arith.mulf %625, %624 : vector<8x8xf32>
    %cst_366 = arith.constant 5.000000e-01 : f32
    %627 = vector.broadcast %cst_366 : f32 to vector<8x8xf32>
    %628 = arith.addf %626, %627 : vector<8x8xf32>
    %629 = arith.mulf %620, %583 : vector<8x8xf32>
    %630 = arith.mulf %613, %621 : vector<8x8xf32>
    %631 = arith.addf %629, %630 : vector<8x8xf32>
    %632 = math.tanh %631 : vector<8x8xf32>
    %633 = arith.mulf %628, %632 : vector<8x8xf32>
    %634 = arith.index_cast %c2_i32_341 : i32 to index
    %c0_367 = arith.constant 0 : index
    %c0_368 = arith.constant 0 : index
    %635 = vector.load %arg8[%634, %c0_367, %c0_368] : memref<8x8x128xf32, #tpu.memory_space<vmem>>, vector<1x8x128xf32>
    %636 = vector.shape_cast %635 : vector<1x8x128xf32> to vector<8x128xf32>
    %cst_369 = arith.constant dense<0.000000e+00> : vector<8x128xf32>
    %637 = tpu.matmul %633, %636, %cst_369 {dimension_numbers = #tpu.dot_dimension_numbers<[1], [0], [0], [1], [0, 0, 1, 1], [], []>} : vector<8x8xf32>, vector<8x128xf32>, vector<8x128xf32> -> vector<8x128xf32>
    %638 = arith.addf %590, %637 : vector<8x128xf32>
    %c3_i32_370 = arith.constant 3 : i32
    %c0_371 = arith.constant 0 : index
    %c0_372 = arith.constant 0 : index
    %c0_373 = arith.constant 0 : index
    %639 = vector.load %arg13[%c0_371, %c0_372, %c0_373] : memref<4x8x8xf32, #tpu.memory_space<vmem>>, vector<1x8x8xf32>
    %640 = vector.shape_cast %639 : vector<1x8x8xf32> to vector<8x8xf32>
    %cst_374 = arith.constant dense<0.000000e+00> : vector<8x8xf32>
    %641 = tpu.matmul %633, %485, %cst_374 {dimension_numbers = #tpu.dot_dimension_numbers<[1], [0], [0], [1], [0, 0, 1, 1], [], []>} : vector<8x8xf32>, vector<8x8xf32>, vector<8x8xf32> -> vector<8x8xf32>
    %642 = arith.addf %640, %641 : vector<8x8xf32>
    %c1_375 = arith.constant 1 : index
    %c0_376 = arith.constant 0 : index
    %c0_377 = arith.constant 0 : index
    %643 = vector.load %arg13[%c1_375, %c0_376, %c0_377] : memref<4x8x8xf32, #tpu.memory_space<vmem>>, vector<1x8x8xf32>
    %644 = vector.shape_cast %643 : vector<1x8x8xf32> to vector<8x8xf32>
    %cst_378 = arith.constant dense<0.000000e+00> : vector<8x8xf32>
    %645 = tpu.matmul %633, %487, %cst_378 {dimension_numbers = #tpu.dot_dimension_numbers<[1], [0], [0], [1], [0, 0, 1, 1], [], []>} : vector<8x8xf32>, vector<8x8xf32>, vector<8x8xf32> -> vector<8x8xf32>
    %646 = arith.addf %644, %645 : vector<8x8xf32>
    %c2_379 = arith.constant 2 : index
    %c0_380 = arith.constant 0 : index
    %c0_381 = arith.constant 0 : index
    %647 = vector.load %arg13[%c2_379, %c0_380, %c0_381] : memref<4x8x8xf32, #tpu.memory_space<vmem>>, vector<1x8x8xf32>
    %648 = vector.shape_cast %647 : vector<1x8x8xf32> to vector<8x8xf32>
    %cst_382 = arith.constant dense<0.000000e+00> : vector<8x8xf32>
    %649 = tpu.matmul %633, %489, %cst_382 {dimension_numbers = #tpu.dot_dimension_numbers<[1], [0], [0], [1], [0, 0, 1, 1], [], []>} : vector<8x8xf32>, vector<8x8xf32>, vector<8x8xf32> -> vector<8x8xf32>
    %650 = arith.addf %648, %649 : vector<8x8xf32>
    %c3_383 = arith.constant 3 : index
    %c0_384 = arith.constant 0 : index
    %c0_385 = arith.constant 0 : index
    %651 = vector.load %arg13[%c3_383, %c0_384, %c0_385] : memref<4x8x8xf32, #tpu.memory_space<vmem>>, vector<1x8x8xf32>
    %652 = vector.shape_cast %651 : vector<1x8x8xf32> to vector<8x8xf32>
    %cst_386 = arith.constant dense<0.000000e+00> : vector<8x8xf32>
    %653 = tpu.matmul %633, %491, %cst_386 {dimension_numbers = #tpu.dot_dimension_numbers<[1], [0], [0], [1], [0, 0, 1, 1], [], []>} : vector<8x8xf32>, vector<8x8xf32>, vector<8x8xf32> -> vector<8x8xf32>
    %654 = arith.addf %652, %653 : vector<8x8xf32>
    %cst_387 = arith.constant 5.000000e-01 : f32
    %655 = vector.broadcast %cst_387 : f32 to vector<8x8xf32>
    %656 = arith.mulf %655, %642 : vector<8x8xf32>
    %657 = math.tanh %656 : vector<8x8xf32>
    %cst_388 = arith.constant 5.000000e-01 : f32
    %658 = vector.broadcast %cst_388 : f32 to vector<8x8xf32>
    %659 = arith.mulf %658, %657 : vector<8x8xf32>
    %cst_389 = arith.constant 5.000000e-01 : f32
    %660 = vector.broadcast %cst_389 : f32 to vector<8x8xf32>
    %661 = arith.addf %659, %660 : vector<8x8xf32>
    %cst_390 = arith.constant 5.000000e-01 : f32
    %662 = vector.broadcast %cst_390 : f32 to vector<8x8xf32>
    %663 = arith.mulf %662, %646 : vector<8x8xf32>
    %664 = math.tanh %663 : vector<8x8xf32>
    %cst_391 = arith.constant 5.000000e-01 : f32
    %665 = vector.broadcast %cst_391 : f32 to vector<8x8xf32>
    %666 = arith.mulf %665, %664 : vector<8x8xf32>
    %cst_392 = arith.constant 5.000000e-01 : f32
    %667 = vector.broadcast %cst_392 : f32 to vector<8x8xf32>
    %668 = arith.addf %666, %667 : vector<8x8xf32>
    %669 = math.tanh %650 : vector<8x8xf32>
    %cst_393 = arith.constant 5.000000e-01 : f32
    %670 = vector.broadcast %cst_393 : f32 to vector<8x8xf32>
    %671 = arith.mulf %670, %654 : vector<8x8xf32>
    %672 = math.tanh %671 : vector<8x8xf32>
    %cst_394 = arith.constant 5.000000e-01 : f32
    %673 = vector.broadcast %cst_394 : f32 to vector<8x8xf32>
    %674 = arith.mulf %673, %672 : vector<8x8xf32>
    %cst_395 = arith.constant 5.000000e-01 : f32
    %675 = vector.broadcast %cst_395 : f32 to vector<8x8xf32>
    %676 = arith.addf %674, %675 : vector<8x8xf32>
    %677 = arith.mulf %668, %631 : vector<8x8xf32>
    %678 = arith.mulf %661, %669 : vector<8x8xf32>
    %679 = arith.addf %677, %678 : vector<8x8xf32>
    %680 = math.tanh %679 : vector<8x8xf32>
    %681 = arith.mulf %676, %680 : vector<8x8xf32>
    %682 = arith.index_cast %c3_i32_370 : i32 to index
    %c0_396 = arith.constant 0 : index
    %c0_397 = arith.constant 0 : index
    %683 = vector.load %arg8[%682, %c0_396, %c0_397] : memref<8x8x128xf32, #tpu.memory_space<vmem>>, vector<1x8x128xf32>
    %684 = vector.shape_cast %683 : vector<1x8x128xf32> to vector<8x128xf32>
    %cst_398 = arith.constant dense<0.000000e+00> : vector<8x128xf32>
    %685 = tpu.matmul %681, %684, %cst_398 {dimension_numbers = #tpu.dot_dimension_numbers<[1], [0], [0], [1], [0, 0, 1, 1], [], []>} : vector<8x8xf32>, vector<8x128xf32>, vector<8x128xf32> -> vector<8x128xf32>
    %686 = arith.addf %638, %685 : vector<8x128xf32>
    %c4_i32_399 = arith.constant 4 : i32
    %c0_400 = arith.constant 0 : index
    %c0_401 = arith.constant 0 : index
    %c0_402 = arith.constant 0 : index
    %687 = vector.load %arg13[%c0_400, %c0_401, %c0_402] : memref<4x8x8xf32, #tpu.memory_space<vmem>>, vector<1x8x8xf32>
    %688 = vector.shape_cast %687 : vector<1x8x8xf32> to vector<8x8xf32>
    %cst_403 = arith.constant dense<0.000000e+00> : vector<8x8xf32>
    %689 = tpu.matmul %681, %485, %cst_403 {dimension_numbers = #tpu.dot_dimension_numbers<[1], [0], [0], [1], [0, 0, 1, 1], [], []>} : vector<8x8xf32>, vector<8x8xf32>, vector<8x8xf32> -> vector<8x8xf32>
    %690 = arith.addf %688, %689 : vector<8x8xf32>
    %c1_404 = arith.constant 1 : index
    %c0_405 = arith.constant 0 : index
    %c0_406 = arith.constant 0 : index
    %691 = vector.load %arg13[%c1_404, %c0_405, %c0_406] : memref<4x8x8xf32, #tpu.memory_space<vmem>>, vector<1x8x8xf32>
    %692 = vector.shape_cast %691 : vector<1x8x8xf32> to vector<8x8xf32>
    %cst_407 = arith.constant dense<0.000000e+00> : vector<8x8xf32>
    %693 = tpu.matmul %681, %487, %cst_407 {dimension_numbers = #tpu.dot_dimension_numbers<[1], [0], [0], [1], [0, 0, 1, 1], [], []>} : vector<8x8xf32>, vector<8x8xf32>, vector<8x8xf32> -> vector<8x8xf32>
    %694 = arith.addf %692, %693 : vector<8x8xf32>
    %c2_408 = arith.constant 2 : index
    %c0_409 = arith.constant 0 : index
    %c0_410 = arith.constant 0 : index
    %695 = vector.load %arg13[%c2_408, %c0_409, %c0_410] : memref<4x8x8xf32, #tpu.memory_space<vmem>>, vector<1x8x8xf32>
    %696 = vector.shape_cast %695 : vector<1x8x8xf32> to vector<8x8xf32>
    %cst_411 = arith.constant dense<0.000000e+00> : vector<8x8xf32>
    %697 = tpu.matmul %681, %489, %cst_411 {dimension_numbers = #tpu.dot_dimension_numbers<[1], [0], [0], [1], [0, 0, 1, 1], [], []>} : vector<8x8xf32>, vector<8x8xf32>, vector<8x8xf32> -> vector<8x8xf32>
    %698 = arith.addf %696, %697 : vector<8x8xf32>
    %c3_412 = arith.constant 3 : index
    %c0_413 = arith.constant 0 : index
    %c0_414 = arith.constant 0 : index
    %699 = vector.load %arg13[%c3_412, %c0_413, %c0_414] : memref<4x8x8xf32, #tpu.memory_space<vmem>>, vector<1x8x8xf32>
    %700 = vector.shape_cast %699 : vector<1x8x8xf32> to vector<8x8xf32>
    %cst_415 = arith.constant dense<0.000000e+00> : vector<8x8xf32>
    %701 = tpu.matmul %681, %491, %cst_415 {dimension_numbers = #tpu.dot_dimension_numbers<[1], [0], [0], [1], [0, 0, 1, 1], [], []>} : vector<8x8xf32>, vector<8x8xf32>, vector<8x8xf32> -> vector<8x8xf32>
    %702 = arith.addf %700, %701 : vector<8x8xf32>
    %cst_416 = arith.constant 5.000000e-01 : f32
    %703 = vector.broadcast %cst_416 : f32 to vector<8x8xf32>
    %704 = arith.mulf %703, %690 : vector<8x8xf32>
    %705 = math.tanh %704 : vector<8x8xf32>
    %cst_417 = arith.constant 5.000000e-01 : f32
    %706 = vector.broadcast %cst_417 : f32 to vector<8x8xf32>
    %707 = arith.mulf %706, %705 : vector<8x8xf32>
    %cst_418 = arith.constant 5.000000e-01 : f32
    %708 = vector.broadcast %cst_418 : f32 to vector<8x8xf32>
    %709 = arith.addf %707, %708 : vector<8x8xf32>
    %cst_419 = arith.constant 5.000000e-01 : f32
    %710 = vector.broadcast %cst_419 : f32 to vector<8x8xf32>
    %711 = arith.mulf %710, %694 : vector<8x8xf32>
    %712 = math.tanh %711 : vector<8x8xf32>
    %cst_420 = arith.constant 5.000000e-01 : f32
    %713 = vector.broadcast %cst_420 : f32 to vector<8x8xf32>
    %714 = arith.mulf %713, %712 : vector<8x8xf32>
    %cst_421 = arith.constant 5.000000e-01 : f32
    %715 = vector.broadcast %cst_421 : f32 to vector<8x8xf32>
    %716 = arith.addf %714, %715 : vector<8x8xf32>
    %717 = math.tanh %698 : vector<8x8xf32>
    %cst_422 = arith.constant 5.000000e-01 : f32
    %718 = vector.broadcast %cst_422 : f32 to vector<8x8xf32>
    %719 = arith.mulf %718, %702 : vector<8x8xf32>
    %720 = math.tanh %719 : vector<8x8xf32>
    %cst_423 = arith.constant 5.000000e-01 : f32
    %721 = vector.broadcast %cst_423 : f32 to vector<8x8xf32>
    %722 = arith.mulf %721, %720 : vector<8x8xf32>
    %cst_424 = arith.constant 5.000000e-01 : f32
    %723 = vector.broadcast %cst_424 : f32 to vector<8x8xf32>
    %724 = arith.addf %722, %723 : vector<8x8xf32>
    %725 = arith.mulf %716, %679 : vector<8x8xf32>
    %726 = arith.mulf %709, %717 : vector<8x8xf32>
    %727 = arith.addf %725, %726 : vector<8x8xf32>
    %728 = math.tanh %727 : vector<8x8xf32>
    %729 = arith.mulf %724, %728 : vector<8x8xf32>
    %730 = arith.index_cast %c4_i32_399 : i32 to index
    %c0_425 = arith.constant 0 : index
    %c0_426 = arith.constant 0 : index
    %731 = vector.load %arg8[%730, %c0_425, %c0_426] : memref<8x8x128xf32, #tpu.memory_space<vmem>>, vector<1x8x128xf32>
    %732 = vector.shape_cast %731 : vector<1x8x128xf32> to vector<8x128xf32>
    %cst_427 = arith.constant dense<0.000000e+00> : vector<8x128xf32>
    %733 = tpu.matmul %729, %732, %cst_427 {dimension_numbers = #tpu.dot_dimension_numbers<[1], [0], [0], [1], [0, 0, 1, 1], [], []>} : vector<8x8xf32>, vector<8x128xf32>, vector<8x128xf32> -> vector<8x128xf32>
    %734 = arith.addf %686, %733 : vector<8x128xf32>
    %c5_i32_428 = arith.constant 5 : i32
    %c0_429 = arith.constant 0 : index
    %c0_430 = arith.constant 0 : index
    %c0_431 = arith.constant 0 : index
    %735 = vector.load %arg13[%c0_429, %c0_430, %c0_431] : memref<4x8x8xf32, #tpu.memory_space<vmem>>, vector<1x8x8xf32>
    %736 = vector.shape_cast %735 : vector<1x8x8xf32> to vector<8x8xf32>
    %cst_432 = arith.constant dense<0.000000e+00> : vector<8x8xf32>
    %737 = tpu.matmul %729, %485, %cst_432 {dimension_numbers = #tpu.dot_dimension_numbers<[1], [0], [0], [1], [0, 0, 1, 1], [], []>} : vector<8x8xf32>, vector<8x8xf32>, vector<8x8xf32> -> vector<8x8xf32>
    %738 = arith.addf %736, %737 : vector<8x8xf32>
    %c1_433 = arith.constant 1 : index
    %c0_434 = arith.constant 0 : index
    %c0_435 = arith.constant 0 : index
    %739 = vector.load %arg13[%c1_433, %c0_434, %c0_435] : memref<4x8x8xf32, #tpu.memory_space<vmem>>, vector<1x8x8xf32>
    %740 = vector.shape_cast %739 : vector<1x8x8xf32> to vector<8x8xf32>
    %cst_436 = arith.constant dense<0.000000e+00> : vector<8x8xf32>
    %741 = tpu.matmul %729, %487, %cst_436 {dimension_numbers = #tpu.dot_dimension_numbers<[1], [0], [0], [1], [0, 0, 1, 1], [], []>} : vector<8x8xf32>, vector<8x8xf32>, vector<8x8xf32> -> vector<8x8xf32>
    %742 = arith.addf %740, %741 : vector<8x8xf32>
    %c2_437 = arith.constant 2 : index
    %c0_438 = arith.constant 0 : index
    %c0_439 = arith.constant 0 : index
    %743 = vector.load %arg13[%c2_437, %c0_438, %c0_439] : memref<4x8x8xf32, #tpu.memory_space<vmem>>, vector<1x8x8xf32>
    %744 = vector.shape_cast %743 : vector<1x8x8xf32> to vector<8x8xf32>
    %cst_440 = arith.constant dense<0.000000e+00> : vector<8x8xf32>
    %745 = tpu.matmul %729, %489, %cst_440 {dimension_numbers = #tpu.dot_dimension_numbers<[1], [0], [0], [1], [0, 0, 1, 1], [], []>} : vector<8x8xf32>, vector<8x8xf32>, vector<8x8xf32> -> vector<8x8xf32>
    %746 = arith.addf %744, %745 : vector<8x8xf32>
    %c3_441 = arith.constant 3 : index
    %c0_442 = arith.constant 0 : index
    %c0_443 = arith.constant 0 : index
    %747 = vector.load %arg13[%c3_441, %c0_442, %c0_443] : memref<4x8x8xf32, #tpu.memory_space<vmem>>, vector<1x8x8xf32>
    %748 = vector.shape_cast %747 : vector<1x8x8xf32> to vector<8x8xf32>
    %cst_444 = arith.constant dense<0.000000e+00> : vector<8x8xf32>
    %749 = tpu.matmul %729, %491, %cst_444 {dimension_numbers = #tpu.dot_dimension_numbers<[1], [0], [0], [1], [0, 0, 1, 1], [], []>} : vector<8x8xf32>, vector<8x8xf32>, vector<8x8xf32> -> vector<8x8xf32>
    %750 = arith.addf %748, %749 : vector<8x8xf32>
    %cst_445 = arith.constant 5.000000e-01 : f32
    %751 = vector.broadcast %cst_445 : f32 to vector<8x8xf32>
    %752 = arith.mulf %751, %738 : vector<8x8xf32>
    %753 = math.tanh %752 : vector<8x8xf32>
    %cst_446 = arith.constant 5.000000e-01 : f32
    %754 = vector.broadcast %cst_446 : f32 to vector<8x8xf32>
    %755 = arith.mulf %754, %753 : vector<8x8xf32>
    %cst_447 = arith.constant 5.000000e-01 : f32
    %756 = vector.broadcast %cst_447 : f32 to vector<8x8xf32>
    %757 = arith.addf %755, %756 : vector<8x8xf32>
    %cst_448 = arith.constant 5.000000e-01 : f32
    %758 = vector.broadcast %cst_448 : f32 to vector<8x8xf32>
    %759 = arith.mulf %758, %742 : vector<8x8xf32>
    %760 = math.tanh %759 : vector<8x8xf32>
    %cst_449 = arith.constant 5.000000e-01 : f32
    %761 = vector.broadcast %cst_449 : f32 to vector<8x8xf32>
    %762 = arith.mulf %761, %760 : vector<8x8xf32>
    %cst_450 = arith.constant 5.000000e-01 : f32
    %763 = vector.broadcast %cst_450 : f32 to vector<8x8xf32>
    %764 = arith.addf %762, %763 : vector<8x8xf32>
    %765 = math.tanh %746 : vector<8x8xf32>
    %cst_451 = arith.constant 5.000000e-01 : f32
    %766 = vector.broadcast %cst_451 : f32 to vector<8x8xf32>
    %767 = arith.mulf %766, %750 : vector<8x8xf32>
    %768 = math.tanh %767 : vector<8x8xf32>
    %cst_452 = arith.constant 5.000000e-01 : f32
    %769 = vector.broadcast %cst_452 : f32 to vector<8x8xf32>
    %770 = arith.mulf %769, %768 : vector<8x8xf32>
    %cst_453 = arith.constant 5.000000e-01 : f32
    %771 = vector.broadcast %cst_453 : f32 to vector<8x8xf32>
    %772 = arith.addf %770, %771 : vector<8x8xf32>
    %773 = arith.mulf %764, %727 : vector<8x8xf32>
    %774 = arith.mulf %757, %765 : vector<8x8xf32>
    %775 = arith.addf %773, %774 : vector<8x8xf32>
    %776 = math.tanh %775 : vector<8x8xf32>
    %777 = arith.mulf %772, %776 : vector<8x8xf32>
    %778 = arith.index_cast %c5_i32_428 : i32 to index
    %c0_454 = arith.constant 0 : index
    %c0_455 = arith.constant 0 : index
    %779 = vector.load %arg8[%778, %c0_454, %c0_455] : memref<8x8x128xf32, #tpu.memory_space<vmem>>, vector<1x8x128xf32>
    %780 = vector.shape_cast %779 : vector<1x8x128xf32> to vector<8x128xf32>
    %cst_456 = arith.constant dense<0.000000e+00> : vector<8x128xf32>
    %781 = tpu.matmul %777, %780, %cst_456 {dimension_numbers = #tpu.dot_dimension_numbers<[1], [0], [0], [1], [0, 0, 1, 1], [], []>} : vector<8x8xf32>, vector<8x128xf32>, vector<8x128xf32> -> vector<8x128xf32>
    %782 = arith.addf %734, %781 : vector<8x128xf32>
    %c6_i32_457 = arith.constant 6 : i32
    %c0_458 = arith.constant 0 : index
    %c0_459 = arith.constant 0 : index
    %c0_460 = arith.constant 0 : index
    %783 = vector.load %arg13[%c0_458, %c0_459, %c0_460] : memref<4x8x8xf32, #tpu.memory_space<vmem>>, vector<1x8x8xf32>
    %784 = vector.shape_cast %783 : vector<1x8x8xf32> to vector<8x8xf32>
    %cst_461 = arith.constant dense<0.000000e+00> : vector<8x8xf32>
    %785 = tpu.matmul %777, %485, %cst_461 {dimension_numbers = #tpu.dot_dimension_numbers<[1], [0], [0], [1], [0, 0, 1, 1], [], []>} : vector<8x8xf32>, vector<8x8xf32>, vector<8x8xf32> -> vector<8x8xf32>
    %786 = arith.addf %784, %785 : vector<8x8xf32>
    %c1_462 = arith.constant 1 : index
    %c0_463 = arith.constant 0 : index
    %c0_464 = arith.constant 0 : index
    %787 = vector.load %arg13[%c1_462, %c0_463, %c0_464] : memref<4x8x8xf32, #tpu.memory_space<vmem>>, vector<1x8x8xf32>
    %788 = vector.shape_cast %787 : vector<1x8x8xf32> to vector<8x8xf32>
    %cst_465 = arith.constant dense<0.000000e+00> : vector<8x8xf32>
    %789 = tpu.matmul %777, %487, %cst_465 {dimension_numbers = #tpu.dot_dimension_numbers<[1], [0], [0], [1], [0, 0, 1, 1], [], []>} : vector<8x8xf32>, vector<8x8xf32>, vector<8x8xf32> -> vector<8x8xf32>
    %790 = arith.addf %788, %789 : vector<8x8xf32>
    %c2_466 = arith.constant 2 : index
    %c0_467 = arith.constant 0 : index
    %c0_468 = arith.constant 0 : index
    %791 = vector.load %arg13[%c2_466, %c0_467, %c0_468] : memref<4x8x8xf32, #tpu.memory_space<vmem>>, vector<1x8x8xf32>
    %792 = vector.shape_cast %791 : vector<1x8x8xf32> to vector<8x8xf32>
    %cst_469 = arith.constant dense<0.000000e+00> : vector<8x8xf32>
    %793 = tpu.matmul %777, %489, %cst_469 {dimension_numbers = #tpu.dot_dimension_numbers<[1], [0], [0], [1], [0, 0, 1, 1], [], []>} : vector<8x8xf32>, vector<8x8xf32>, vector<8x8xf32> -> vector<8x8xf32>
    %794 = arith.addf %792, %793 : vector<8x8xf32>
    %c3_470 = arith.constant 3 : index
    %c0_471 = arith.constant 0 : index
    %c0_472 = arith.constant 0 : index
    %795 = vector.load %arg13[%c3_470, %c0_471, %c0_472] : memref<4x8x8xf32, #tpu.memory_space<vmem>>, vector<1x8x8xf32>
    %796 = vector.shape_cast %795 : vector<1x8x8xf32> to vector<8x8xf32>
    %cst_473 = arith.constant dense<0.000000e+00> : vector<8x8xf32>
    %797 = tpu.matmul %777, %491, %cst_473 {dimension_numbers = #tpu.dot_dimension_numbers<[1], [0], [0], [1], [0, 0, 1, 1], [], []>} : vector<8x8xf32>, vector<8x8xf32>, vector<8x8xf32> -> vector<8x8xf32>
    %798 = arith.addf %796, %797 : vector<8x8xf32>
    %cst_474 = arith.constant 5.000000e-01 : f32
    %799 = vector.broadcast %cst_474 : f32 to vector<8x8xf32>
    %800 = arith.mulf %799, %786 : vector<8x8xf32>
    %801 = math.tanh %800 : vector<8x8xf32>
    %cst_475 = arith.constant 5.000000e-01 : f32
    %802 = vector.broadcast %cst_475 : f32 to vector<8x8xf32>
    %803 = arith.mulf %802, %801 : vector<8x8xf32>
    %cst_476 = arith.constant 5.000000e-01 : f32
    %804 = vector.broadcast %cst_476 : f32 to vector<8x8xf32>
    %805 = arith.addf %803, %804 : vector<8x8xf32>
    %cst_477 = arith.constant 5.000000e-01 : f32
    %806 = vector.broadcast %cst_477 : f32 to vector<8x8xf32>
    %807 = arith.mulf %806, %790 : vector<8x8xf32>
    %808 = math.tanh %807 : vector<8x8xf32>
    %cst_478 = arith.constant 5.000000e-01 : f32
    %809 = vector.broadcast %cst_478 : f32 to vector<8x8xf32>
    %810 = arith.mulf %809, %808 : vector<8x8xf32>
    %cst_479 = arith.constant 5.000000e-01 : f32
    %811 = vector.broadcast %cst_479 : f32 to vector<8x8xf32>
    %812 = arith.addf %810, %811 : vector<8x8xf32>
    %813 = math.tanh %794 : vector<8x8xf32>
    %cst_480 = arith.constant 5.000000e-01 : f32
    %814 = vector.broadcast %cst_480 : f32 to vector<8x8xf32>
    %815 = arith.mulf %814, %798 : vector<8x8xf32>
    %816 = math.tanh %815 : vector<8x8xf32>
    %cst_481 = arith.constant 5.000000e-01 : f32
    %817 = vector.broadcast %cst_481 : f32 to vector<8x8xf32>
    %818 = arith.mulf %817, %816 : vector<8x8xf32>
    %cst_482 = arith.constant 5.000000e-01 : f32
    %819 = vector.broadcast %cst_482 : f32 to vector<8x8xf32>
    %820 = arith.addf %818, %819 : vector<8x8xf32>
    %821 = arith.mulf %812, %775 : vector<8x8xf32>
    %822 = arith.mulf %805, %813 : vector<8x8xf32>
    %823 = arith.addf %821, %822 : vector<8x8xf32>
    %824 = math.tanh %823 : vector<8x8xf32>
    %825 = arith.mulf %820, %824 : vector<8x8xf32>
    %826 = arith.index_cast %c6_i32_457 : i32 to index
    %c0_483 = arith.constant 0 : index
    %c0_484 = arith.constant 0 : index
    %827 = vector.load %arg8[%826, %c0_483, %c0_484] : memref<8x8x128xf32, #tpu.memory_space<vmem>>, vector<1x8x128xf32>
    %828 = vector.shape_cast %827 : vector<1x8x128xf32> to vector<8x128xf32>
    %cst_485 = arith.constant dense<0.000000e+00> : vector<8x128xf32>
    %829 = tpu.matmul %825, %828, %cst_485 {dimension_numbers = #tpu.dot_dimension_numbers<[1], [0], [0], [1], [0, 0, 1, 1], [], []>} : vector<8x8xf32>, vector<8x128xf32>, vector<8x128xf32> -> vector<8x128xf32>
    %830 = arith.addf %782, %829 : vector<8x128xf32>
    %c7_i32_486 = arith.constant 7 : i32
    %c0_487 = arith.constant 0 : index
    %c0_488 = arith.constant 0 : index
    %c0_489 = arith.constant 0 : index
    %831 = vector.load %arg13[%c0_487, %c0_488, %c0_489] : memref<4x8x8xf32, #tpu.memory_space<vmem>>, vector<1x8x8xf32>
    %832 = vector.shape_cast %831 : vector<1x8x8xf32> to vector<8x8xf32>
    %cst_490 = arith.constant dense<0.000000e+00> : vector<8x8xf32>
    %833 = tpu.matmul %825, %485, %cst_490 {dimension_numbers = #tpu.dot_dimension_numbers<[1], [0], [0], [1], [0, 0, 1, 1], [], []>} : vector<8x8xf32>, vector<8x8xf32>, vector<8x8xf32> -> vector<8x8xf32>
    %834 = arith.addf %832, %833 : vector<8x8xf32>
    %c1_491 = arith.constant 1 : index
    %c0_492 = arith.constant 0 : index
    %c0_493 = arith.constant 0 : index
    %835 = vector.load %arg13[%c1_491, %c0_492, %c0_493] : memref<4x8x8xf32, #tpu.memory_space<vmem>>, vector<1x8x8xf32>
    %836 = vector.shape_cast %835 : vector<1x8x8xf32> to vector<8x8xf32>
    %cst_494 = arith.constant dense<0.000000e+00> : vector<8x8xf32>
    %837 = tpu.matmul %825, %487, %cst_494 {dimension_numbers = #tpu.dot_dimension_numbers<[1], [0], [0], [1], [0, 0, 1, 1], [], []>} : vector<8x8xf32>, vector<8x8xf32>, vector<8x8xf32> -> vector<8x8xf32>
    %838 = arith.addf %836, %837 : vector<8x8xf32>
    %c2_495 = arith.constant 2 : index
    %c0_496 = arith.constant 0 : index
    %c0_497 = arith.constant 0 : index
    %839 = vector.load %arg13[%c2_495, %c0_496, %c0_497] : memref<4x8x8xf32, #tpu.memory_space<vmem>>, vector<1x8x8xf32>
    %840 = vector.shape_cast %839 : vector<1x8x8xf32> to vector<8x8xf32>
    %cst_498 = arith.constant dense<0.000000e+00> : vector<8x8xf32>
    %841 = tpu.matmul %825, %489, %cst_498 {dimension_numbers = #tpu.dot_dimension_numbers<[1], [0], [0], [1], [0, 0, 1, 1], [], []>} : vector<8x8xf32>, vector<8x8xf32>, vector<8x8xf32> -> vector<8x8xf32>
    %842 = arith.addf %840, %841 : vector<8x8xf32>
    %c3_499 = arith.constant 3 : index
    %c0_500 = arith.constant 0 : index
    %c0_501 = arith.constant 0 : index
    %843 = vector.load %arg13[%c3_499, %c0_500, %c0_501] : memref<4x8x8xf32, #tpu.memory_space<vmem>>, vector<1x8x8xf32>
    %844 = vector.shape_cast %843 : vector<1x8x8xf32> to vector<8x8xf32>
    %cst_502 = arith.constant dense<0.000000e+00> : vector<8x8xf32>
    %845 = tpu.matmul %825, %491, %cst_502 {dimension_numbers = #tpu.dot_dimension_numbers<[1], [0], [0], [1], [0, 0, 1, 1], [], []>} : vector<8x8xf32>, vector<8x8xf32>, vector<8x8xf32> -> vector<8x8xf32>
    %846 = arith.addf %844, %845 : vector<8x8xf32>
    %cst_503 = arith.constant 5.000000e-01 : f32
    %847 = vector.broadcast %cst_503 : f32 to vector<8x8xf32>
    %848 = arith.mulf %847, %834 : vector<8x8xf32>
    %849 = math.tanh %848 : vector<8x8xf32>
    %cst_504 = arith.constant 5.000000e-01 : f32
    %850 = vector.broadcast %cst_504 : f32 to vector<8x8xf32>
    %851 = arith.mulf %850, %849 : vector<8x8xf32>
    %cst_505 = arith.constant 5.000000e-01 : f32
    %852 = vector.broadcast %cst_505 : f32 to vector<8x8xf32>
    %853 = arith.addf %851, %852 : vector<8x8xf32>
    %cst_506 = arith.constant 5.000000e-01 : f32
    %854 = vector.broadcast %cst_506 : f32 to vector<8x8xf32>
    %855 = arith.mulf %854, %838 : vector<8x8xf32>
    %856 = math.tanh %855 : vector<8x8xf32>
    %cst_507 = arith.constant 5.000000e-01 : f32
    %857 = vector.broadcast %cst_507 : f32 to vector<8x8xf32>
    %858 = arith.mulf %857, %856 : vector<8x8xf32>
    %cst_508 = arith.constant 5.000000e-01 : f32
    %859 = vector.broadcast %cst_508 : f32 to vector<8x8xf32>
    %860 = arith.addf %858, %859 : vector<8x8xf32>
    %861 = math.tanh %842 : vector<8x8xf32>
    %cst_509 = arith.constant 5.000000e-01 : f32
    %862 = vector.broadcast %cst_509 : f32 to vector<8x8xf32>
    %863 = arith.mulf %862, %846 : vector<8x8xf32>
    %864 = math.tanh %863 : vector<8x8xf32>
    %cst_510 = arith.constant 5.000000e-01 : f32
    %865 = vector.broadcast %cst_510 : f32 to vector<8x8xf32>
    %866 = arith.mulf %865, %864 : vector<8x8xf32>
    %cst_511 = arith.constant 5.000000e-01 : f32
    %867 = vector.broadcast %cst_511 : f32 to vector<8x8xf32>
    %868 = arith.addf %866, %867 : vector<8x8xf32>
    %869 = arith.mulf %860, %823 : vector<8x8xf32>
    %870 = arith.mulf %853, %861 : vector<8x8xf32>
    %871 = arith.addf %869, %870 : vector<8x8xf32>
    %872 = math.tanh %871 : vector<8x8xf32>
    %873 = arith.mulf %868, %872 : vector<8x8xf32>
    %874 = arith.index_cast %c7_i32_486 : i32 to index
    %c0_512 = arith.constant 0 : index
    %c0_513 = arith.constant 0 : index
    %875 = vector.load %arg8[%874, %c0_512, %c0_513] : memref<8x8x128xf32, #tpu.memory_space<vmem>>, vector<1x8x128xf32>
    %876 = vector.shape_cast %875 : vector<1x8x128xf32> to vector<8x128xf32>
    %cst_514 = arith.constant dense<0.000000e+00> : vector<8x128xf32>
    %877 = tpu.matmul %873, %876, %cst_514 {dimension_numbers = #tpu.dot_dimension_numbers<[1], [0], [0], [1], [0, 0, 1, 1], [], []>} : vector<8x8xf32>, vector<8x128xf32>, vector<8x128xf32> -> vector<8x128xf32>
    %878 = arith.addf %830, %877 : vector<8x128xf32>
    %c8_i32_515 = arith.constant 8 : i32
    %c0_516 = arith.constant 0 : index
    %c0_517 = arith.constant 0 : index
    %879 = vector.load %arg9[%c0_516, %c0_517] : memref<8x128xf32, #tpu.memory_space<vmem>>, vector<8x128xf32>
    %cst_518 = arith.constant dense<0.000000e+00> : vector<8x128xf32>
    %880 = tpu.matmul %873, %879, %cst_518 {dimension_numbers = #tpu.dot_dimension_numbers<[1], [0], [0], [1], [0, 0, 1, 1], [], []>} : vector<8x8xf32>, vector<8x128xf32>, vector<8x128xf32> -> vector<8x128xf32>
    %881 = arith.addf %878, %880 : vector<8x128xf32>
    %c0_519 = arith.constant 0 : index
    %c0_520 = arith.constant 0 : index
    %882 = vector.load %arg10[%c0_519, %c0_520] : memref<1x128xf32, #tpu.memory_space<vmem>>, vector<1x128xf32>
    %883 = vector.broadcast %882 : vector<1x128xf32> to vector<8x128xf32>
    %884 = arith.addf %881, %883 : vector<8x128xf32>
    %c0_521 = arith.constant 0 : index
    %c0_522 = arith.constant 0 : index
    %885 = vector.load %arg11[%c0_521, %c0_522] : memref<8x128xf32, #tpu.memory_space<vmem>>, vector<8x128xf32>
    tpu.vector_store %arg11[%c0_521, %c0_522], %884 {strides = array<i32>} : memref<8x128xf32, #tpu.memory_space<vmem>>, vector<8x128xf32>,
    return
  }
  func.func @transform_0(%arg0: i32) -> (i32, i32, i32) {
    %c0_i32 = arith.constant 0 : i32
    %c0_i32_0 = arith.constant 0 : i32
    %c0_i32_1 = arith.constant 0 : i32
    return %arg0, %c0_i32, %c0_i32_0 : i32, i32, i32
  }
  func.func @transform_1(%arg0: i32) -> (i32, i32, i32) {
    %c0_i32 = arith.constant 0 : i32
    %c0_i32_0 = arith.constant 0 : i32
    %c0_i32_1 = arith.constant 0 : i32
    %c0_i32_2 = arith.constant 0 : i32
    return %c0_i32, %c0_i32_0, %c0_i32_1 : i32, i32, i32
  }
  func.func @transform_2(%arg0: i32) -> (i32, i32, i32) {
    %c0_i32 = arith.constant 0 : i32
    %c0_i32_0 = arith.constant 0 : i32
    %c0_i32_1 = arith.constant 0 : i32
    %c0_i32_2 = arith.constant 0 : i32
    return %c0_i32, %c0_i32_0, %c0_i32_1 : i32, i32, i32
  }
  func.func @transform_3(%arg0: i32) -> (i32, i32, i32) {
    %c0_i32 = arith.constant 0 : i32
    %c0_i32_0 = arith.constant 0 : i32
    %c0_i32_1 = arith.constant 0 : i32
    %c0_i32_2 = arith.constant 0 : i32
    return %c0_i32, %c0_i32_0, %c0_i32_1 : i32, i32, i32
  }
  func.func @transform_4(%arg0: i32) -> (i32, i32, i32) {
    %c0_i32 = arith.constant 0 : i32
    %c0_i32_0 = arith.constant 0 : i32
    %c0_i32_1 = arith.constant 0 : i32
    %c0_i32_2 = arith.constant 0 : i32
    return %c0_i32, %c0_i32_0, %c0_i32_1 : i32, i32, i32
  }
  func.func @transform_5(%arg0: i32) -> (i32, i32, i32) {
    %c0_i32 = arith.constant 0 : i32
    %c0_i32_0 = arith.constant 0 : i32
    %c0_i32_1 = arith.constant 0 : i32
    %c0_i32_2 = arith.constant 0 : i32
    return %c0_i32, %c0_i32_0, %c0_i32_1 : i32, i32, i32
  }
  func.func @transform_6(%arg0: i32) -> (i32, i32, i32) {
    %c0_i32 = arith.constant 0 : i32
    %c0_i32_0 = arith.constant 0 : i32
    %c0_i32_1 = arith.constant 0 : i32
    %c0_i32_2 = arith.constant 0 : i32
    return %c0_i32, %c0_i32_0, %c0_i32_1 : i32, i32, i32
  }
  func.func @transform_7(%arg0: i32) -> (i32, i32, i32) {
    %c0_i32 = arith.constant 0 : i32
    %c0_i32_0 = arith.constant 0 : i32
    %c0_i32_1 = arith.constant 0 : i32
    %c0_i32_2 = arith.constant 0 : i32
    return %c0_i32, %c0_i32_0, %c0_i32_1 : i32, i32, i32
  }
  func.func @transform_8(%arg0: i32) -> (i32, i32) {
    %c0_i32 = arith.constant 0 : i32
    %c0_i32_0 = arith.constant 0 : i32
    %c0_i32_1 = arith.constant 0 : i32
    return %c0_i32, %c0_i32_0 : i32, i32
  }
  func.func @transform_9(%arg0: i32) -> (i32, i32) {
    %c0_i32 = arith.constant 0 : i32
    %c0_i32_0 = arith.constant 0 : i32
    %c0_i32_1 = arith.constant 0 : i32
    return %c0_i32, %c0_i32_0 : i32, i32
  }
  func.func @transform_10(%arg0: i32) -> (i32, i32) {
    %c0_i32 = arith.constant 0 : i32
    %c0_i32_0 = arith.constant 0 : i32
    return %arg0, %c0_i32 : i32, i32
  }
}

</mosaic_0001>

<bundles_post_ra>
// kernel: tpu_custom_call.1
= control target key start
LH: loop header
LB: loop body
LE: loop exit
PB: predicated region body
PF: predicated region fallthrough
CT: control target
= control target key end

     0   :  { %15 = vsyncpa [#allocation5], 0  ;;  %s3602_s0 = inlined_call_operand.vmem [shape: f32[1,64,8], index: 0, kind: input, shape index: {}]   ;;  %s3603_s1 = inlined_call_operand.hbm [shape: f32[4,8,32], index: 1, kind: input, shape index: {}]   ;;  %s3604_s2 = inlined_call_operand.vmem [shape: f32[4,32,32], index: 2, kind: input, shape index: {}]   ;;  %s3605_s3 = inlined_call_operand.hbm [shape: f32[4,1,32], index: 3, kind: input, shape index: {}]   ;;  %s3606_s4 = inlined_call_operand.vmem [shape: f32[4,32,8], index: 4, kind: input, shape index: {}]   ;;  %s3607_s5 = inlined_call_operand.hbm [shape: f32[4,8,8], index: 5, kind: input, shape index: {}]   ;;  %s3608_s6 = inlined_call_operand.vmem [shape: f32[4,1,8], index: 6, kind: input, shape index: {}]   ;;  %s3609_s7 = inlined_call_operand.vmem [shape: f32[8,8,128], index: 7, kind: input, shape index: {}]   ;;  %s3610_s8 = inlined_call_operand.vmem [shape: f32[8,128], index: 8, kind: input, shape index: {}]   ;;  %s3611_s9 = inlined_call_operand.vmem [shape: f32[1,128], index: 9, kind: input, shape index: {}]   ;;  %s3612_s10 = inlined_call_operand.hbm [shape: f32[8,128], index: 10, kind: output, shape index: {}]  }
   0x1   :  { %16 = vsyncpa [#allocation8], 0  ;;  %s39_s15 = sshll.u32 %s3605_s3, 4  ;;  %s40_s15 = int_to_ptr.hbm [resolvable:$true] %s39_s15 }
   0x2   :  { %17 = vsyncpa [#allocation6], 0  ;;  %s2935_s16 = smov [#allocation7]   ;;  %s24_s20 = sshll.u32 %s3603_s1, 4  ;;  %s25_s20 = int_to_ptr.hbm [resolvable:$true] %s24_s20 }
   0x3   :  { %s41_s17 = sshll.u32 %s2935_s16, 4  ;;  %s2936_s21 = smov 16   ;;  %s42_s17 = int_to_ptr.vmem [resolvable:$true] %s41_s17 }
   0x4   :  { %s2937_s22 = smov 1   ;;  %s2938_s23 = smov [#allocation4]  }
   0x5   :  { %47 = dma.hbm_to_vmem [thread:$0]  %s40_s15, 64, %s42_s17, [#allocation8], %s2936_s21, %s2936_s21, %s2937_s22  }
   0x6   :  { %s26_s24 = sshll.u32 %s2938_s23, 4  ;;  %s2939_s25 = smov 128   ;;  %s27_s24 = int_to_ptr.vmem [resolvable:$true] %s26_s24 }
   0x7   :  { %s2940_s26 = smov 8   ;;  %s54_s28 = sshll.u32 %s3607_s5, 4  ;;  %s55_s28 = int_to_ptr.hbm [resolvable:$true] %s54_s28 }
   0x8   :  { %32 = dma.hbm_to_vmem [thread:$0]  %s25_s20, 512, %s27_s24, [#allocation5], %s2939_s25, %s2939_s25, %s2940_s26  }
   0x9   :  { %s2941_s29 = smov [#allocation9]  }
   0xa   :  { %s56_s30 = sshll.u32 %s2941_s29, 4  ;;  %s57_s30 = int_to_ptr.vmem [resolvable:$true] %s56_s30 }
   0xb   :  { %62 = dma.hbm_to_vmem [thread:$0]  %s55_s28, 512, %s57_s30, [#allocation8], %s2939_s25, %s2939_s25, %s2940_s26  }
   0xc   :  { %2929 = dma.done.wait [#allocation5], 512  }
   0xd   :  { %2930 = vsyncadd [#allocation5], 4294966784 }
   0xe   :  { %2931 = dma.done.wait [#allocation8], 576  }
   0xf   :  { %2932 = vsyncadd [#allocation8], 4294966720  ;;  %v91_v0 = vld [vmem:[#allocation4] sm:$0xff]  ;;  %v172_v1 = vld [vmem:[#allocation4 + $0x8] sm:$0xff]  ;;  %vm96_vm0 = vcmask 64512   ;;  %v2942_v28 = vmov 0.0  }
  0x10   :  { %v229_v2 = vld [vmem:[#allocation4 + $0x10] sm:$0xff]  ;;  %136 = vmatpush.msra.mxu0 %v91_v0  ;;  %193 = vmatpush.msra.mxu1 %v172_v1  ;;  %v286_v3 = vld [vmem:[#allocation4 + $0x18] sm:$0xff]  ;;  %v83_v4 = vld [vmem:[%s3602_s0] sm:$0xff]  ;;  %vm162_vm1 = vcmask 261120   ;;  %s2943_s15 = smov [#allocation10]   ;;  %s2485_s18 = sshll.u32 %s3612_s10, 4  ;;  %s2486_s18 = int_to_ptr.hbm [resolvable:$true] %s2485_s18 }
  0x11   :  { %250 = vmatpush.msra.mxu2 %v229_v2  ;;  %307 = vmatpush.msra.mxu3 %v286_v3  ;;  %v3014_v5 = vld [vmem:[%s3604_s2 + $0x18] sm:$0xff]  ;;  %v3038_v9 = vld [vmem:[%s3604_s2 + $0x10] sm:$0xff]  ;;  %v84_v13 = vld [vmem:[%s3602_s0 + $0x8] sm:$0xff] }
  0x12   :  { %v3019_v6 = vld [vmem:[%s3604_s2 + $0x38] sm:$0xff]  ;;  %2520 = vmatmul.msk.f32.vlgmr.msra.gmra.mxu0 %vm96_vm0, %v83_v4  ;;  %2528 = vmatmul.msk.f32.vlgmr.msra.gmra.mxu1 %vm96_vm0, %v83_v4  ;;  %v3043_v10 = vld [vmem:[%s3604_s2 + $0x30] sm:$0xff]  ;;  %v3065_v14 = vld [vmem:[%s3604_s2 + $0x8] sm:$0xff] }
  0x13   :  { %v3026_v7 = vld [vmem:[%s3604_s2 + $0x58] sm:$0xff]  ;;  %2536 = vmatmul.msk.f32.vlgmr.msra.gmra.mxu2 %vm96_vm0, %v83_v4  ;;  %2544 = vmatmul.msk.f32.vlgmr.msra.gmra.mxu3 %vm96_vm0, %v83_v4  ;;  %v3050_v11 = vld [vmem:[%s3604_s2 + $0x50] sm:$0xff]  ;;  %v3070_v15 = vld [vmem:[%s3604_s2 + $0x28] sm:$0xff] }
  0x14   :  { %v3031_v8 = vld [vmem:[%s3604_s2 + $0x78] sm:$0xff]  ;;  %377 = vmatpush.msrb.mxu0 %v3014_v5  ;;  %401 = vmatpush.msrb.mxu1 %v3019_v6  ;;  %v3055_v12 = vld [vmem:[%s3604_s2 + $0x70] sm:$0xff]  ;;  %v3075_v16 = vld [vmem:[%s3604_s2 + $0x48] sm:$0xff] }
  0x15   :  { %425 = vmatpush.msrb.mxu2 %v3026_v7  ;;  %449 = vmatpush.msrb.mxu3 %v3031_v8  ;;  %v3082_v17 = vld [vmem:[%s3604_s2 + $0x68] sm:$0xff]  ;;  %v85_v18 = vld [vmem:[%s3602_s0 + $0x10] sm:$0xff]  ;;  %v3104_v19 = vld [vmem:[%s3604_s2] sm:$0xff] }
  0x16   :  { %378 = vmatpush.msrb.mxu0 %v3038_v9  ;;  %402 = vmatpush.msrb.mxu1 %v3043_v10  ;;  %v3109_v20 = vld [vmem:[%s3604_s2 + $0x20] sm:$0xff]  ;;  %v86_v23 = vld [vmem:[%s3602_s0 + $0x18] sm:$0xff]  ;;  %v88_v25 = vld [vmem:[%s3602_s0 + $0x28] sm:$0xff] }
  0x17   :  { %426 = vmatpush.msrb.mxu2 %v3050_v11  ;;  %450 = vmatpush.msrb.mxu3 %v3055_v12  ;;  %v3114_v21 = vld [vmem:[%s3604_s2 + $0x40] sm:$0xff]  ;;  %v89_v26 = vld [vmem:[%s3602_s0 + $0x30] sm:$0xff]  ;;  %v90_v27 = vld [vmem:[%s3602_s0 + $0x38] sm:$0xff] }
  0x18   :  { %379 = vmatpush.msrb.mxu0 %v3065_v14  ;;  %403 = vmatpush.msrb.mxu1 %v3070_v15  ;;  %v3121_v22 = vld [vmem:[%s3604_s2 + $0x60] sm:$0xff] }
  0x19   :  { %427 = vmatpush.msrb.mxu2 %v3075_v16  ;;  %451 = vmatpush.msrb.mxu3 %v3082_v17  ;;  %v87_v24 = vld [vmem:[%s3602_s0 + $0x20] sm:$0xff] }
  0x1a   :  { %2521 = vmatmul.msk.f32.gmra.mxu0 %vm96_vm0, %v84_v13  ;;  %2529 = vmatmul.msk.f32.gmra.mxu1 %vm96_vm0, %v84_v13  ;;  %v3196_v29 = vld [vmem:[#allocation7] ss:$0 sm:$0xff]  ;;  %v3198_v30 = vld [vmem:[#allocation7 + $0x1] ss:$0 sm:$0xff]  ;;  %v3204_v35 = vld [vmem:[#allocation7 + $0x2] ss:$0 sm:$0xff] }
  0x1b   :  { %2537 = vmatmul.msk.f32.gmra.mxu2 %vm96_vm0, %v84_v13  ;;  %2545 = vmatmul.msk.f32.gmra.mxu3 %vm96_vm0, %v84_v13  ;;  %v3206_v36 = vld [vmem:[#allocation7 + $0x3] ss:$0 sm:$0xff] }
  0x1c   :  { %380 = vmatpush.msrb.mxu0 %v3104_v19  ;;  %404 = vmatpush.msrb.mxu1 %v3109_v20 }
  0x1d   :  { %428 = vmatpush.msrb.mxu2 %v3114_v21  ;;  %452 = vmatpush.msrb.mxu3 %v3121_v22 }
  0x1e   :  { %493 = vmatpush.msra.mxu0 %v3014_v5  ;;  %517 = vmatpush.msra.mxu1 %v3019_v6 }
  0x1f   :  { %541 = vmatpush.msra.mxu2 %v3026_v7  ;;  %565 = vmatpush.msra.mxu3 %v3031_v8 }
  0x20   :  { %494 = vmatpush.msra.mxu0 %v3038_v9  ;;  %518 = vmatpush.msra.mxu1 %v3043_v10 }
  0x21   :  { %542 = vmatpush.msra.mxu2 %v3050_v11  ;;  %566 = vmatpush.msra.mxu3 %v3055_v12 }
  0x22   :  { %2522 = vmatmul.msk.f32.gmra.mxu0 %vm96_vm0, %v85_v18  ;;  %2530 = vmatmul.msk.f32.gmra.mxu1 %vm96_vm0, %v85_v18 }
  0x23   :  { %2538 = vmatmul.msk.f32.gmra.mxu2 %vm96_vm0, %v85_v18  ;;  %2546 = vmatmul.msk.f32.gmra.mxu3 %vm96_vm0, %v85_v18 }
  0x24   :  { %495 = vmatpush.msra.mxu0 %v3065_v14  ;;  %519 = vmatpush.msra.mxu1 %v3070_v15 }
  0x25   :  { %543 = vmatpush.msra.mxu2 %v3075_v16  ;;  %567 = vmatpush.msra.mxu3 %v3082_v17 }
  0x26   :  { %496 = vmatpush.msra.mxu0 %v3104_v19  ;;  %520 = vmatpush.msra.mxu1 %v3109_v20 }
  0x27   :  { %544 = vmatpush.msra.mxu2 %v3114_v21  ;;  %568 = vmatpush.msra.mxu3 %v3121_v22 }
  0x2a   :  { %2523 = vmatmul.msk.f32.gmra.mxu0 %vm96_vm0, %v86_v23  ;;  %2531 = vmatmul.msk.f32.gmra.mxu1 %vm96_vm0, %v86_v23 }
  0x2b   :  { %2539 = vmatmul.msk.f32.gmra.mxu2 %vm96_vm0, %v86_v23  ;;  %2547 = vmatmul.msk.f32.gmra.mxu3 %vm96_vm0, %v86_v23 }
  0x32   :  { %2524 = vmatmul.msk.f32.gmra.mxu0 %vm96_vm0, %v87_v24  ;;  %2532 = vmatmul.msk.f32.gmra.mxu1 %vm96_vm0, %v87_v24 }
  0x33   :  { %2540 = vmatmul.msk.f32.gmra.mxu2 %vm96_vm0, %v87_v24  ;;  %2548 = vmatmul.msk.f32.gmra.mxu3 %vm96_vm0, %v87_v24 }
  0x3a   :  { %2525 = vmatmul.msk.f32.gmra.mxu0 %vm96_vm0, %v88_v25  ;;  %2533 = vmatmul.msk.f32.gmra.mxu1 %vm96_vm0, %v88_v25 }
  0x3b   :  { %2541 = vmatmul.msk.f32.gmra.mxu2 %vm96_vm0, %v88_v25  ;;  %2549 = vmatmul.msk.f32.gmra.mxu3 %vm96_vm0, %v88_v25 }
  0x42   :  { %2526 = vmatmul.msk.f32.gmra.mxu0 %vm96_vm0, %v89_v26  ;;  %2534 = vmatmul.msk.f32.gmra.mxu1 %vm96_vm0, %v89_v26 }
  0x43   :  { %2542 = vmatmul.msk.f32.gmra.mxu2 %vm96_vm0, %v89_v26  ;;  %2550 = vmatmul.msk.f32.gmra.mxu3 %vm96_vm0, %v89_v26 }
  0x4a   :  { %2527 = vmatmul.msk.f32.gmra.mxu0 %vm96_vm0, %v90_v27  ;;  %2535 = vmatmul.msk.f32.gmra.mxu1 %vm96_vm0, %v90_v27 }
  0x4b   :  { %2543 = vmatmul.msk.f32.gmra.mxu2 %vm96_vm0, %v90_v27  ;;  %2551 = vmatmul.msk.f32.gmra.mxu3 %vm96_vm0, %v90_v27 }
  0x52   :  { %381 = vmatmul.f32.vlgmr.msrb.gmra.mxu0 %v2942_v28  ;;  %405 = vmatmul.f32.vlgmr.msrb.gmra.mxu1 %v2942_v28 }
  0x53   :  { %429 = vmatmul.f32.vlgmr.msrb.gmra.mxu2 %v2942_v28  ;;  %453 = vmatmul.f32.vlgmr.msrb.gmra.mxu3 %v2942_v28 }
  0x54   :  { %609 = vmatpush.msrb.mxu0 %v3014_v5  ;;  %633 = vmatpush.msrb.mxu1 %v3019_v6 }
  0x55   :  { %657 = vmatpush.msrb.mxu2 %v3026_v7  ;;  %681 = vmatpush.msrb.mxu3 %v3031_v8 }
  0x56   :  { %610 = vmatpush.msrb.mxu0 %v3038_v9  ;;  %634 = vmatpush.msrb.mxu1 %v3043_v10 }
  0x57   :  { %658 = vmatpush.msrb.mxu2 %v3050_v11  ;;  %682 = vmatpush.msrb.mxu3 %v3055_v12 }
  0x58   :  { %611 = vmatpush.msrb.mxu0 %v3065_v14  ;;  %635 = vmatpush.msrb.mxu1 %v3070_v15 }
  0x59   :  { %659 = vmatpush.msrb.mxu2 %v3075_v16  ;;  %683 = vmatpush.msrb.mxu3 %v3082_v17 }
  0x5a   :  { %612 = vmatpush.msrb.mxu0 %v3104_v19  ;;  %636 = vmatpush.msrb.mxu1 %v3109_v20 }
  0x5b   :  { %660 = vmatpush.msrb.mxu2 %v3114_v21  ;;  %684 = vmatpush.msrb.mxu3 %v3121_v22 }
  0x8f   :  { %v138_v31 = vpop.f32.mrf.mxu0  ;;  %v195_v32 = vpop.f32.mrf.mxu1 }
  0x90   :  { %v139_v33 = vadd.f32 %v3196_v29, %v138_v31  ;;  %v196_v34 = vadd.f32 %v3198_v30, %v195_v32 }
  0x92   :  { %163 = vst.msk [vmem:[#allocation2] sm:$0xff] %vm162_vm1, %v139_v33 }
  0x93   :  { %220 = vst.msk [vmem:[#allocation2 + $0x40] sm:$0xff] %vm162_vm1, %v196_v34 }
  0x96   :  { %v252_v37 = vpop.f32.mrf.mxu2  ;;  %v309_v38 = vpop.f32.mrf.mxu3 }
  0x97   :  { %v253_v39 = vadd.f32 %v3204_v35, %v252_v37  ;;  %v310_v40 = vadd.f32 %v3206_v36, %v309_v38  ;;  %v141_v41 = vpop.f32.mrf.mxu0  ;;  %v198_v42 = vpop.f32.mrf.mxu1 }
  0x98   :  { %v142_v43 = vadd.f32 %v3196_v29, %v141_v41  ;;  %v199_v44 = vadd.f32 %v3198_v30, %v198_v42 }
  0x99   :  { %277 = vst.msk [vmem:[#allocation2 + $0x80] sm:$0xff] %vm162_vm1, %v253_v39 }
  0x9a   :  { %334 = vst.msk [vmem:[#allocation2 + $0xc0] sm:$0xff] %vm162_vm1, %v310_v40 }
  0x9b   :  { %164 = vst.msk [vmem:[#allocation2 + $0x8] sm:$0xff] %vm162_vm1, %v142_v43 }
  0x9c   :  { %221 = vst.msk [vmem:[#allocation2 + $0x48] sm:$0xff] %vm162_vm1, %v199_v44 }
  0x9e   :  { %v255_v45 = vpop.f32.mrf.mxu2  ;;  %v312_v46 = vpop.f32.mrf.mxu3 }
  0x9f   :  { %v256_v47 = vadd.f32 %v3204_v35, %v255_v45  ;;  %v313_v48 = vadd.f32 %v3206_v36, %v312_v46  ;;  %v144_v49 = vpop.f32.mrf.mxu0  ;;  %v201_v50 = vpop.f32.mrf.mxu1 }
  0xa0   :  { %v145_v51 = vadd.f32 %v3196_v29, %v144_v49  ;;  %v202_v52 = vadd.f32 %v3198_v30, %v201_v50 }
  0xa1   :  { %278 = vst.msk [vmem:[#allocation2 + $0x88] sm:$0xff] %vm162_vm1, %v256_v47 }
  0xa2   :  { %335 = vst.msk [vmem:[#allocation2 + $0xc8] sm:$0xff] %vm162_vm1, %v313_v48 }
  0xa3   :  { %165 = vst.msk [vmem:[#allocation2 + $0x10] sm:$0xff] %vm162_vm1, %v145_v51 }
  0xa4   :  { %222 = vst.msk [vmem:[#allocation2 + $0x50] sm:$0xff] %vm162_vm1, %v202_v52 }
  0xa6   :  { %v258_v53 = vpop.f32.mrf.mxu2  ;;  %v315_v54 = vpop.f32.mrf.mxu3 }
  0xa7   :  { %v259_v55 = vadd.f32 %v3204_v35, %v258_v53  ;;  %v316_v56 = vadd.f32 %v3206_v36, %v315_v54  ;;  %v147_v57 = vpop.f32.mrf.mxu0  ;;  %v204_v58 = vpop.f32.mrf.mxu1  ;;  %v361_v54 = vld [vmem:[#allocation2] sm:$0xff] }
  0xa8   :  { %v148_v59 = vadd.f32 %v3196_v29, %v147_v57  ;;  %v205_v60 = vadd.f32 %v3198_v30, %v204_v58 }
  0xa9   :  { %279 = vst.msk [vmem:[#allocation2 + $0x90] sm:$0xff] %vm162_vm1, %v259_v55 }
  0xaa   :  { %336 = vst.msk [vmem:[#allocation2 + $0xd0] sm:$0xff] %vm162_vm1, %v316_v56  ;;  %v388_v56 = vld [vmem:[#allocation2 + $0x40] sm:$0xff] }
  0xab   :  { %166 = vst.msk [vmem:[#allocation2 + $0x18] sm:$0xff] %vm162_vm1, %v148_v59 }
  0xac   :  { %223 = vst.msk [vmem:[#allocation2 + $0x58] sm:$0xff] %vm162_vm1, %v205_v60  ;;  %v412_v60 = vld [vmem:[#allocation2 + $0x80] sm:$0xff] }
  0xae   :  { %v261_v61 = vpop.f32.mrf.mxu2  ;;  %v318_v62 = vpop.f32.mrf.mxu3 }
  0xaf   :  { %v262_v63 = vadd.f32 %v3204_v35, %v261_v61  ;;  %v319_v0 = vadd.f32 %v3206_v36, %v318_v62  ;;  %v150_v1 = vpop.f32.mrf.mxu0  ;;  %v207_v2 = vpop.f32.mrf.mxu1  ;;  %v436_v62 = vld [vmem:[#allocation2 + $0xc0] sm:$0xff] }
  0xb0   :  { %v151_v3 = vadd.f32 %v3196_v29, %v150_v1  ;;  %v208_v4 = vadd.f32 %v3198_v30, %v207_v2 }
  0xb1   :  { %280 = vst.msk [vmem:[#allocation2 + $0x98] sm:$0xff] %vm162_vm1, %v262_v63 }
  0xb2   :  { %337 = vst.msk [vmem:[#allocation2 + $0xd8] sm:$0xff] %vm162_vm1, %v319_v0 }
  0xb3   :  { %167 = vst.msk [vmem:[#allocation2 + $0x20] sm:$0xff] %vm162_vm1, %v151_v3 }
  0xb4   :  { %224 = vst.msk [vmem:[#allocation2 + $0x60] sm:$0xff] %vm162_vm1, %v208_v4 }
  0xb6   :  { %v264_v13 = vpop.f32.mrf.mxu2  ;;  %v321_v18 = vpop.f32.mrf.mxu3 }
  0xb7   :  { %v265_v23 = vadd.f32 %v3204_v35, %v264_v13  ;;  %v322_v24 = vadd.f32 %v3206_v36, %v321_v18  ;;  %v153_v25 = vpop.f32.mrf.mxu0  ;;  %v210_v26 = vpop.f32.mrf.mxu1 }
  0xb8   :  { %v154_v27 = vadd.f32 %v3196_v29, %v153_v25  ;;  %v211_v31 = vadd.f32 %v3198_v30, %v210_v26 }
  0xb9   :  { %281 = vst.msk [vmem:[#allocation2 + $0xa0] sm:$0xff] %vm162_vm1, %v265_v23 }
  0xba   :  { %338 = vst.msk [vmem:[#allocation2 + $0xe0] sm:$0xff] %vm162_vm1, %v322_v24 }
  0xbb   :  { %168 = vst.msk [vmem:[#allocation2 + $0x28] sm:$0xff] %vm162_vm1, %v154_v27 }
  0xbc   :  { %225 = vst.msk [vmem:[#allocation2 + $0x68] sm:$0xff] %vm162_vm1, %v211_v31 }
  0xbe   :  { %v267_v32 = vpop.f32.mrf.mxu2  ;;  %v324_v33 = vpop.f32.mrf.mxu3 }
  0xbf   :  { %v268_v34 = vadd.f32 %v3204_v35, %v267_v32  ;;  %v325_v37 = vadd.f32 %v3206_v36, %v324_v33  ;;  %v156_v38 = vpop.f32.mrf.mxu0  ;;  %v213_v39 = vpop.f32.mrf.mxu1 }
  0xc0   :  { %v157_v40 = vadd.f32 %v3196_v29, %v156_v38  ;;  %v214_v41 = vadd.f32 %v3198_v30, %v213_v39  ;;  %v504_v39 = vld [vmem:[#allocation2 + $0x48] sm:$0xff] }
  0xc1   :  { %282 = vst.msk [vmem:[#allocation2 + $0xa8] sm:$0xff] %vm162_vm1, %v268_v34 }
  0xc2   :  { %339 = vst.msk [vmem:[#allocation2 + $0xe8] sm:$0xff] %vm162_vm1, %v325_v37  ;;  %v477_v37 = vld [vmem:[#allocation2 + $0x8] sm:$0xff] }
  0xc3   :  { %169 = vst.msk [vmem:[#allocation2 + $0x30] sm:$0xff] %vm162_vm1, %v157_v40 }
  0xc4   :  { %226 = vst.msk [vmem:[#allocation2 + $0x70] sm:$0xff] %vm162_vm1, %v214_v41 }
  0xc6   :  { %v270_v42 = vpop.f32.mrf.mxu2  ;;  %v327_v43 = vpop.f32.mrf.mxu3 }
  0xc7   :  { %v271_v44 = vadd.f32 %v3204_v35, %v270_v42  ;;  %v328_v45 = vadd.f32 %v3206_v36, %v327_v43  ;;  %v159_v46 = vpop.f32.mrf.mxu0  ;;  %v216_v47 = vpop.f32.mrf.mxu1 }
  0xc8   :  { %v160_v48 = vadd.f32 %v3196_v29, %v159_v46  ;;  %v217_v49 = vadd.f32 %v3198_v30, %v216_v47  ;;  %v552_v47 = vld [vmem:[#allocation2 + $0xc8] sm:$0xff] }
  0xc9   :  { %283 = vst.msk [vmem:[#allocation2 + $0xb0] sm:$0xff] %vm162_vm1, %v271_v44 }
  0xca   :  { %340 = vst.msk [vmem:[#allocation2 + $0xf0] sm:$0xff] %vm162_vm1, %v328_v45  ;;  %v528_v45 = vld [vmem:[#allocation2 + $0x88] sm:$0xff] }
  0xcb   :  { %170 = vst.msk [vmem:[#allocation2 + $0x38] sm:$0xff] %vm162_vm1, %v160_v48 }
  0xcc   :  { %227 = vst.msk [vmem:[#allocation2 + $0x78] sm:$0xff] %vm162_vm1, %v217_v49 }
  0xce   :  { %v273_v50 = vpop.f32.mrf.mxu2  ;;  %v330_v51 = vpop.f32.mrf.mxu3 }
  0xcf   :  { %v274_v52 = vadd.f32 %v3204_v35, %v273_v50  ;;  %v331_v53 = vadd.f32 %v3206_v36, %v330_v51  ;;  %v382_v55 = vpop.f32.mrf.mxu0  ;;  %v406_v29 = vpop.f32.mrf.mxu1 }
  0xd0   :  { %v385_v57 = vadd.f32 %v382_v55, %v361_v54  ;;  %v409_v30 = vadd.f32 %v406_v29, %v388_v56 }
  0xd1   :  { %284 = vst.msk [vmem:[#allocation2 + $0xb8] sm:$0xff] %vm162_vm1, %v274_v52 }
  0xd2   :  { %341 = vst.msk [vmem:[#allocation2 + $0xf8] sm:$0xff] %vm162_vm1, %v331_v53  ;;  %v458_v58 = vmul.f32 0.5, %v385_v57  ;;  %v462_v59 = vmul.f32 0.5, %v409_v30 }
  0xd4   :  { %2673 = vtanh.f32 %v458_v58 }
  0xd5   :  { %2675 = vtanh.f32 %v462_v59 }
  0xd6   :  { %v430_v61 = vpop.f32.mrf.mxu2  ;;  %v454_v35 = vpop.f32.mrf.mxu3 }
  0xd7   :  { %v433_v63 = vadd.f32 %v430_v61, %v412_v60  ;;  %v457_v36 = vadd.f32 %v454_v35, %v436_v62 }
  0xd9   :  { %2677 = vtanh.f32 %v433_v63  ;;  %v467_v0 = vmul.f32 0.5, %v457_v36  ;;  %v593_v36 = vld [vmem:[#allocation2 + $0x10] sm:$0xff] }
  0xda   :  { %v2674_v1 = vpop.eup %2673 }
  0xdb   :  { %v2676_v2 = vpop.eup %2675  ;;  %v460_v3 = vmul.f32 0.5, %v2674_v1  ;;  %2679 = vtanh.f32 %v467_v0  ;;  %v620_v1 = vld [vmem:[#allocation2 + $0x50] sm:$0xff] }
  0xdc   :  { %v464_v4 = vmul.f32 0.5, %v2676_v2 }
  0xdd   :  { %v461_v13 = vadd.f32 0.5, %v460_v3 }
  0xde   :  { %v465_v18 = vadd.f32 0.5, %v464_v4 }
  0xdf   :  { %v2678_v23 = vpop.eup %2677 }
  0xe0   :  { %v471_v24 = vmul.f32 0.0, %v465_v18  ;;  %v472_v25 = vmul.f32 %v2678_v23, %v461_v13  ;;  %v644_v23 = vld [vmem:[#allocation2 + $0x90] sm:$0xff] }
  0xe1   :  { %v2680_v26 = vpop.eup %2679 }
  0xe2   :  { %v473_v27 = vadd.f32 %v472_v25, %v471_v24  ;;  %v469_v31 = vmul.f32 0.5, %v2680_v26  ;;  %v668_v25 = vld [vmem:[#allocation2 + $0xd0] sm:$0xff] }
  0xe4   :  { %2681 = vtanh.f32 %v473_v27  ;;  %v470_v32 = vadd.f32 0.5, %v469_v31 }
  0xea   :  { %v2682_v33 = vpop.eup %2681 }
  0xeb   :  { %v475_v34 = vmul.f32 %v2682_v33, %v470_v32 }
  0xed   :  { %2564 = vmatmul.msk.f32.vlgmr.msra.gmra.mxu0 %vm162_vm1, %v475_v34  ;;  %2565 = vmatmul.msk.f32.vlgmr.msra.gmra.mxu1 %vm162_vm1, %v475_v34 }
  0xee   :  { %2566 = vmatmul.msk.f32.vlgmr.msra.gmra.mxu2 %vm162_vm1, %v475_v34  ;;  %2567 = vmatmul.msk.f32.vlgmr.msra.gmra.mxu3 %vm162_vm1, %v475_v34 }
  0xef   :  { %725 = vmatpush.msra.mxu0 %v3014_v5  ;;  %749 = vmatpush.msra.mxu1 %v3019_v6 }
  0xf0   :  { %773 = vmatpush.msra.mxu2 %v3026_v7  ;;  %797 = vmatpush.msra.mxu3 %v3031_v8 }
  0xf1   :  { %726 = vmatpush.msra.mxu0 %v3038_v9  ;;  %750 = vmatpush.msra.mxu1 %v3043_v10 }
  0xf2   :  { %774 = vmatpush.msra.mxu2 %v3050_v11  ;;  %798 = vmatpush.msra.mxu3 %v3055_v12 }
  0xf3   :  { %727 = vmatpush.msra.mxu0 %v3065_v14  ;;  %751 = vmatpush.msra.mxu1 %v3070_v15 }
  0xf4   :  { %775 = vmatpush.msra.mxu2 %v3075_v16  ;;  %799 = vmatpush.msra.mxu3 %v3082_v17 }
  0xf5   :  { %728 = vmatpush.msra.mxu0 %v3104_v19  ;;  %752 = vmatpush.msra.mxu1 %v3109_v20 }
  0xf6   :  { %776 = vmatpush.msra.mxu2 %v3114_v21  ;;  %800 = vmatpush.msra.mxu3 %v3121_v22 }
 0x16a   :  { %v498_v38 = vpop.f32.mrf.mxu0  ;;  %v522_v40 = vpop.f32.mrf.mxu1 }
 0x16b   :  { %v501_v41 = vadd.f32 %v498_v38, %v477_v37  ;;  %v525_v42 = vadd.f32 %v522_v40, %v504_v39 }
 0x16d   :  { %v574_v43 = vmul.f32 0.5, %v501_v41  ;;  %v578_v44 = vmul.f32 0.5, %v525_v42 }
 0x16f   :  { %2683 = vtanh.f32 %v574_v43 }
 0x170   :  { %2685 = vtanh.f32 %v578_v44 }
 0x171   :  { %v546_v46 = vpop.f32.mrf.mxu2  ;;  %v570_v48 = vpop.f32.mrf.mxu3 }
 0x172   :  { %v549_v49 = vadd.f32 %v546_v46, %v528_v45  ;;  %v573_v50 = vadd.f32 %v570_v48, %v552_v47 }
 0x174   :  { %2687 = vtanh.f32 %v549_v49  ;;  %v583_v51 = vmul.f32 0.5, %v573_v50  ;;  %v709_v50 = vld [vmem:[#allocation2 + $0x18] sm:$0xff] }
 0x175   :  { %v2684_v52 = vpop.eup %2683 }
 0x176   :  { %v2686_v53 = vpop.eup %2685  ;;  %v576_v54 = vmul.f32 0.5, %v2684_v52  ;;  %2689 = vtanh.f32 %v583_v51  ;;  %v736_v52 = vld [vmem:[#allocation2 + $0x58] sm:$0xff] }
 0x177   :  { %v580_v55 = vmul.f32 0.5, %v2686_v53 }
 0x178   :  { %v577_v56 = vadd.f32 0.5, %v576_v54 }
 0x179   :  { %v581_v29 = vadd.f32 0.5, %v580_v55 }
 0x17a   :  { %v2688_v57 = vpop.eup %2687 }
 0x17b   :  { %v587_v30 = vmul.f32 %v581_v29, %v473_v27  ;;  %v588_v58 = vmul.f32 %v2688_v57, %v577_v56  ;;  %v760_v57 = vld [vmem:[#allocation2 + $0x98] sm:$0xff] }
 0x17c   :  { %v2690_v59 = vpop.eup %2689 }
 0x17d   :  { %v589_v60 = vadd.f32 %v588_v58, %v587_v30  ;;  %v585_v61 = vmul.f32 0.5, %v2690_v59  ;;  %v784_v58 = vld [vmem:[#allocation2 + $0xd8] sm:$0xff] }
 0x17f   :  { %2691 = vtanh.f32 %v589_v60  ;;  %v586_v62 = vadd.f32 0.5, %v585_v61 }
 0x185   :  { %v2692_v35 = vpop.eup %2691 }
 0x186   :  { %v591_v63 = vmul.f32 %v2692_v35, %v586_v62 }
 0x188   :  { %2568 = vmatmul.msk.f32.vlgmr.msrb.gmra.mxu0 %vm162_vm1, %v591_v63  ;;  %2569 = vmatmul.msk.f32.vlgmr.msrb.gmra.mxu1 %vm162_vm1, %v591_v63 }
 0x189   :  { %2570 = vmatmul.msk.f32.vlgmr.msrb.gmra.mxu2 %vm162_vm1, %v591_v63  ;;  %2571 = vmatmul.msk.f32.vlgmr.msrb.gmra.mxu3 %vm162_vm1, %v591_v63 }
 0x18a   :  { %841 = vmatpush.msrb.mxu0 %v3014_v5  ;;  %865 = vmatpush.msrb.mxu1 %v3019_v6 }
 0x18b   :  { %889 = vmatpush.msrb.mxu2 %v3026_v7  ;;  %913 = vmatpush.msrb.mxu3 %v3031_v8 }
 0x18c   :  { %842 = vmatpush.msrb.mxu0 %v3038_v9  ;;  %866 = vmatpush.msrb.mxu1 %v3043_v10 }
 0x18d   :  { %890 = vmatpush.msrb.mxu2 %v3050_v11  ;;  %914 = vmatpush.msrb.mxu3 %v3055_v12 }
 0x18e   :  { %843 = vmatpush.msrb.mxu0 %v3065_v14  ;;  %867 = vmatpush.msrb.mxu1 %v3070_v15 }
 0x18f   :  { %891 = vmatpush.msrb.mxu2 %v3075_v16  ;;  %915 = vmatpush.msrb.mxu3 %v3082_v17 }
 0x190   :  { %844 = vmatpush.msrb.mxu0 %v3104_v19  ;;  %868 = vmatpush.msrb.mxu1 %v3109_v20 }
 0x191   :  { %892 = vmatpush.msrb.mxu2 %v3114_v21  ;;  %916 = vmatpush.msrb.mxu3 %v3121_v22 }
 0x205   :  { %v614_v0 = vpop.f32.mrf.mxu0  ;;  %v638_v2 = vpop.f32.mrf.mxu1 }
 0x206   :  { %v617_v3 = vadd.f32 %v614_v0, %v593_v36  ;;  %v641_v4 = vadd.f32 %v638_v2, %v620_v1 }
 0x208   :  { %v690_v13 = vmul.f32 0.5, %v617_v3  ;;  %v694_v18 = vmul.f32 0.5, %v641_v4 }
 0x20a   :  { %2693 = vtanh.f32 %v690_v13 }
 0x20b   :  { %2695 = vtanh.f32 %v694_v18 }
 0x20c   :  { %v662_v24 = vpop.f32.mrf.mxu2  ;;  %v686_v26 = vpop.f32.mrf.mxu3 }
 0x20d   :  { %v665_v27 = vadd.f32 %v662_v24, %v644_v23  ;;  %v689_v31 = vadd.f32 %v686_v26, %v668_v25 }
 0x20f   :  { %2697 = vtanh.f32 %v665_v27  ;;  %v699_v32 = vmul.f32 0.5, %v689_v31  ;;  %v825_v31 = vld [vmem:[#allocation2 + $0x20] sm:$0xff] }
 0x210   :  { %v2694_v33 = vpop.eup %2693 }
 0x211   :  { %v2696_v34 = vpop.eup %2695  ;;  %v692_v37 = vmul.f32 0.5, %v2694_v33  ;;  %2699 = vtanh.f32 %v699_v32  ;;  %v852_v33 = vld [vmem:[#allocation2 + $0x60] sm:$0xff] }
 0x212   :  { %v696_v38 = vmul.f32 0.5, %v2696_v34 }
 0x213   :  { %v693_v39 = vadd.f32 0.5, %v692_v37 }
 0x214   :  { %v697_v40 = vadd.f32 0.5, %v696_v38 }
 0x215   :  { %v2698_v41 = vpop.eup %2697 }
 0x216   :  { %v703_v42 = vmul.f32 %v697_v40, %v589_v60  ;;  %v704_v43 = vmul.f32 %v2698_v41, %v693_v39  ;;  %v876_v41 = vld [vmem:[#allocation2 + $0xa0] sm:$0xff] }
 0x217   :  { %v2700_v44 = vpop.eup %2699 }
 0x218   :  { %v705_v45 = vadd.f32 %v704_v43, %v703_v42  ;;  %v701_v46 = vmul.f32 0.5, %v2700_v44  ;;  %v900_v43 = vld [vmem:[#allocation2 + $0xe0] sm:$0xff] }
 0x21a   :  { %2701 = vtanh.f32 %v705_v45  ;;  %v702_v47 = vadd.f32 0.5, %v701_v46 }
 0x220   :  { %v2702_v48 = vpop.eup %2701 }
 0x221   :  { %v707_v49 = vmul.f32 %v2702_v48, %v702_v47 }
 0x223   :  { %2572 = vmatmul.msk.f32.vlgmr.msra.gmra.mxu0 %vm162_vm1, %v707_v49  ;;  %2573 = vmatmul.msk.f32.vlgmr.msra.gmra.mxu1 %vm162_vm1, %v707_v49 }
 0x224   :  { %2574 = vmatmul.msk.f32.vlgmr.msra.gmra.mxu2 %vm162_vm1, %v707_v49  ;;  %2575 = vmatmul.msk.f32.vlgmr.msra.gmra.mxu3 %vm162_vm1, %v707_v49 }
 0x225   :  { %957 = vmatpush.msra.mxu0 %v3014_v5  ;;  %981 = vmatpush.msra.mxu1 %v3019_v6 }
 0x226   :  { %1005 = vmatpush.msra.mxu2 %v3026_v7  ;;  %1029 = vmatpush.msra.mxu3 %v3031_v8 }
 0x227   :  { %958 = vmatpush.msra.mxu0 %v3038_v9  ;;  %982 = vmatpush.msra.mxu1 %v3043_v10 }
 0x228   :  { %1006 = vmatpush.msra.mxu2 %v3050_v11  ;;  %1030 = vmatpush.msra.mxu3 %v3055_v12 }
 0x229   :  { %959 = vmatpush.msra.mxu0 %v3065_v14  ;;  %983 = vmatpush.msra.mxu1 %v3070_v15 }
 0x22a   :  { %1007 = vmatpush.msra.mxu2 %v3075_v16  ;;  %1031 = vmatpush.msra.mxu3 %v3082_v17 }
 0x22b   :  { %960 = vmatpush.msra.mxu0 %v3104_v19  ;;  %984 = vmatpush.msra.mxu1 %v3109_v20 }
 0x22c   :  { %1008 = vmatpush.msra.mxu2 %v3114_v21  ;;  %1032 = vmatpush.msra.mxu3 %v3121_v22 }
 0x2a0   :  { %v730_v51 = vpop.f32.mrf.mxu0  ;;  %v754_v53 = vpop.f32.mrf.mxu1 }
 0x2a1   :  { %v733_v54 = vadd.f32 %v730_v51, %v709_v50  ;;  %v757_v55 = vadd.f32 %v754_v53, %v736_v52 }
 0x2a3   :  { %v806_v56 = vmul.f32 0.5, %v733_v54  ;;  %v810_v29 = vmul.f32 0.5, %v757_v55 }
 0x2a5   :  { %2703 = vtanh.f32 %v806_v56 }
 0x2a6   :  { %2705 = vtanh.f32 %v810_v29 }
 0x2a7   :  { %v778_v30 = vpop.f32.mrf.mxu2  ;;  %v802_v59 = vpop.f32.mrf.mxu3 }
 0x2a8   :  { %v781_v60 = vadd.f32 %v778_v30, %v760_v57  ;;  %v805_v61 = vadd.f32 %v802_v59, %v784_v58 }
 0x2aa   :  { %2707 = vtanh.f32 %v781_v60  ;;  %v815_v62 = vmul.f32 0.5, %v805_v61 }
 0x2ab   :  { %v2704_v35 = vpop.eup %2703 }
 0x2ac   :  { %v2706_v63 = vpop.eup %2705  ;;  %v808_v36 = vmul.f32 0.5, %v2704_v35  ;;  %2709 = vtanh.f32 %v815_v62 }
 0x2ad   :  { %v812_v0 = vmul.f32 0.5, %v2706_v63 }
 0x2ae   :  { %v809_v1 = vadd.f32 0.5, %v808_v36 }
 0x2af   :  { %v813_v2 = vadd.f32 0.5, %v812_v0 }
 0x2b0   :  { %v2708_v3 = vpop.eup %2707 }
 0x2b1   :  { %v819_v4 = vmul.f32 %v813_v2, %v705_v45  ;;  %v820_v13 = vmul.f32 %v2708_v3, %v809_v1 }
 0x2b2   :  { %v2710_v18 = vpop.eup %2709 }
 0x2b3   :  { %v821_v23 = vadd.f32 %v820_v13, %v819_v4  ;;  %v817_v24 = vmul.f32 0.5, %v2710_v18 }
 0x2b5   :  { %2711 = vtanh.f32 %v821_v23  ;;  %v818_v25 = vadd.f32 0.5, %v817_v24 }
 0x2bb   :  { %v2712_v26 = vpop.eup %2711 }
 0x2bc   :  { %v823_v27 = vmul.f32 %v2712_v26, %v818_v25  ;;  %v1057_v25 = vld [vmem:[#allocation2 + $0x30] sm:$0xff] }
 0x2be   :  { %2576 = vmatmul.msk.f32.vlgmr.msrb.gmra.mxu0 %vm162_vm1, %v823_v27  ;;  %2577 = vmatmul.msk.f32.vlgmr.msrb.gmra.mxu1 %vm162_vm1, %v823_v27 }
 0x2bf   :  { %2578 = vmatmul.msk.f32.vlgmr.msrb.gmra.mxu2 %vm162_vm1, %v823_v27  ;;  %2579 = vmatmul.msk.f32.vlgmr.msrb.gmra.mxu3 %vm162_vm1, %v823_v27  ;;  %v1084_v27 = vld [vmem:[#allocation2 + $0x70] sm:$0xff] }
 0x2c0   :  { %1073 = vmatpush.msrb.mxu0 %v3014_v5  ;;  %1097 = vmatpush.msrb.mxu1 %v3019_v6 }
 0x2c1   :  { %1121 = vmatpush.msrb.mxu2 %v3026_v7  ;;  %1145 = vmatpush.msrb.mxu3 %v3031_v8 }
 0x2c2   :  { %1074 = vmatpush.msrb.mxu0 %v3038_v9  ;;  %1098 = vmatpush.msrb.mxu1 %v3043_v10 }
 0x2c3   :  { %1122 = vmatpush.msrb.mxu2 %v3050_v11  ;;  %1146 = vmatpush.msrb.mxu3 %v3055_v12 }
 0x2c4   :  { %1075 = vmatpush.msrb.mxu0 %v3065_v14  ;;  %1099 = vmatpush.msrb.mxu1 %v3070_v15 }
 0x2c5   :  { %1123 = vmatpush.msrb.mxu2 %v3075_v16  ;;  %1147 = vmatpush.msrb.mxu3 %v3082_v17 }
 0x2c6   :  { %1076 = vmatpush.msrb.mxu0 %v3104_v19  ;;  %1100 = vmatpush.msrb.mxu1 %v3109_v20 }
 0x2c7   :  { %1124 = vmatpush.msrb.mxu2 %v3114_v21  ;;  %1148 = vmatpush.msrb.mxu3 %v3121_v22 }
 0x33b   :  { %v846_v32 = vpop.f32.mrf.mxu0  ;;  %v870_v34 = vpop.f32.mrf.mxu1 }
 0x33c   :  { %v849_v37 = vadd.f32 %v846_v32, %v825_v31  ;;  %v873_v38 = vadd.f32 %v870_v34, %v852_v33 }
 0x33e   :  { %v922_v39 = vmul.f32 0.5, %v849_v37  ;;  %v926_v40 = vmul.f32 0.5, %v873_v38  ;;  %v1108_v38 = vld [vmem:[#allocation2 + $0xb0] sm:$0xff] }
 0x340   :  { %2713 = vtanh.f32 %v922_v39 }
 0x341   :  { %2715 = vtanh.f32 %v926_v40  ;;  %v1132_v40 = vld [vmem:[#allocation2 + $0xf0] sm:$0xff] }
 0x342   :  { %v894_v42 = vpop.f32.mrf.mxu2  ;;  %v918_v44 = vpop.f32.mrf.mxu3 }
 0x343   :  { %v897_v45 = vadd.f32 %v894_v42, %v876_v41  ;;  %v921_v46 = vadd.f32 %v918_v44, %v900_v43 }
 0x345   :  { %2717 = vtanh.f32 %v897_v45  ;;  %v931_v47 = vmul.f32 0.5, %v921_v46 }
 0x346   :  { %v2714_v48 = vpop.eup %2713 }
 0x347   :  { %v2716_v49 = vpop.eup %2715  ;;  %v924_v50 = vmul.f32 0.5, %v2714_v48  ;;  %2719 = vtanh.f32 %v931_v47 }
 0x348   :  { %v928_v51 = vmul.f32 0.5, %v2716_v49 }
 0x349   :  { %v925_v52 = vadd.f32 0.5, %v924_v50 }
 0x34a   :  { %v929_v53 = vadd.f32 0.5, %v928_v51 }
 0x34b   :  { %v2718_v54 = vpop.eup %2717 }
 0x34c   :  { %v935_v55 = vmul.f32 %v929_v53, %v821_v23  ;;  %v936_v56 = vmul.f32 %v2718_v54, %v925_v52 }
 0x34d   :  { %v2720_v29 = vpop.eup %2719 }
 0x34e   :  { %v937_v57 = vadd.f32 %v936_v56, %v935_v55  ;;  %v933_v30 = vmul.f32 0.5, %v2720_v29 }
 0x350   :  { %2721 = vtanh.f32 %v937_v57  ;;  %v934_v58 = vadd.f32 0.5, %v933_v30 }
 0x356   :  { %v2722_v59 = vpop.eup %2721 }
 0x357   :  { %v939_v60 = vmul.f32 %v2722_v59, %v934_v58  ;;  %v1291_v58 = vld [vmem:[%s3606_s4 + $0x18] sm:$0xff] }
 0x358   :  { %v2596_v59 = vld [vmem:[%s3606_s4 + $0x38] sm:$0xff] }
 0x359   :  { %2580 = vmatmul.msk.f32.vlgmr.msra.gmra.mxu0 %vm162_vm1, %v939_v60  ;;  %2581 = vmatmul.msk.f32.vlgmr.msra.gmra.mxu1 %vm162_vm1, %v939_v60 }
 0x35a   :  { %2582 = vmatmul.msk.f32.vlgmr.msra.gmra.mxu2 %vm162_vm1, %v939_v60  ;;  %2583 = vmatmul.msk.f32.vlgmr.msra.gmra.mxu3 %vm162_vm1, %v939_v60  ;;  %v2602_v60 = vld [vmem:[%s3606_s4 + $0x58] sm:$0xff] }
 0x35b   :  { %1189 = vmatpush.msra.mxu0 %v3014_v5  ;;  %1213 = vmatpush.msra.mxu1 %v3019_v6  ;;  %v941_v5 = vld [vmem:[#allocation2 + $0x28] sm:$0xff] }
 0x35c   :  { %1237 = vmatpush.msra.mxu2 %v3026_v7  ;;  %1261 = vmatpush.msra.mxu3 %v3031_v8  ;;  %v968_v7 = vld [vmem:[#allocation2 + $0x68] sm:$0xff] }
 0x35d   :  { %1190 = vmatpush.msra.mxu0 %v3038_v9  ;;  %1214 = vmatpush.msra.mxu1 %v3043_v10 }
 0x35e   :  { %1238 = vmatpush.msra.mxu2 %v3050_v11  ;;  %1262 = vmatpush.msra.mxu3 %v3055_v12 }
 0x35f   :  { %1191 = vmatpush.msra.mxu0 %v3065_v14  ;;  %1215 = vmatpush.msra.mxu1 %v3070_v15  ;;  %v992_v14 = vld [vmem:[#allocation2 + $0xa8] sm:$0xff] }
 0x360   :  { %1239 = vmatpush.msra.mxu2 %v3075_v16  ;;  %1263 = vmatpush.msra.mxu3 %v3082_v17  ;;  %v1016_v16 = vld [vmem:[#allocation2 + $0xe8] sm:$0xff] }
 0x361   :  { %1192 = vmatpush.msra.mxu0 %v3104_v19  ;;  %1216 = vmatpush.msra.mxu1 %v3109_v20 }
 0x362   :  { %1240 = vmatpush.msra.mxu2 %v3114_v21  ;;  %1264 = vmatpush.msra.mxu3 %v3121_v22 }
 0x3d6   :  { %v962_v6 = vpop.f32.mrf.mxu0  ;;  %v986_v8 = vpop.f32.mrf.mxu1 }
 0x3d7   :  { %v965_v9 = vadd.f32 %v962_v6, %v941_v5  ;;  %v989_v10 = vadd.f32 %v986_v8, %v968_v7  ;;  %v2608_v5 = vld [vmem:[%s3606_s4 + $0x78] sm:$0xff]  ;;  %v1290_v6 = vld [vmem:[%s3606_s4 + $0x10] sm:$0xff] }
 0x3d8   :  { %v2595_v7 = vld [vmem:[%s3606_s4 + $0x30] sm:$0xff] }
 0x3d9   :  { %v1038_v11 = vmul.f32 0.5, %v965_v9  ;;  %v1042_v12 = vmul.f32 0.5, %v989_v10  ;;  %v2601_v8 = vld [vmem:[%s3606_s4 + $0x50] sm:$0xff]  ;;  %v1289_v10 = vld [vmem:[%s3606_s4 + $0x8] sm:$0xff] }
 0x3da   :  { %v2607_v9 = vld [vmem:[%s3606_s4 + $0x70] sm:$0xff] }
 0x3db   :  { %2723 = vtanh.f32 %v1038_v11  ;;  %v2594_v11 = vld [vmem:[%s3606_s4 + $0x28] sm:$0xff] }
 0x3dc   :  { %2725 = vtanh.f32 %v1042_v12  ;;  %v2600_v12 = vld [vmem:[%s3606_s4 + $0x48] sm:$0xff] }
 0x3dd   :  { %v1010_v15 = vpop.f32.mrf.mxu2  ;;  %v1034_v17 = vpop.f32.mrf.mxu3 }
 0x3de   :  { %v1013_v19 = vadd.f32 %v1010_v15, %v992_v14  ;;  %v1037_v20 = vadd.f32 %v1034_v17, %v1016_v16  ;;  %v2606_v14 = vld [vmem:[%s3606_s4 + $0x68] sm:$0xff]  ;;  %v1288_v15 = vld [vmem:[%s3606_s4] sm:$0xff] }
 0x3df   :  { %v2593_v16 = vld [vmem:[%s3606_s4 + $0x20] sm:$0xff] }
 0x3e0   :  { %2727 = vtanh.f32 %v1013_v19  ;;  %v1047_v21 = vmul.f32 0.5, %v1037_v20  ;;  %v2599_v17 = vld [vmem:[%s3606_s4 + $0x40] sm:$0xff] }
 0x3e1   :  { %v2724_v61 = vpop.eup %2723  ;;  %v2605_v19 = vld [vmem:[%s3606_s4 + $0x60] sm:$0xff]  ;;  %s2483_s4 = sshll.u32 %s2943_s15, 4  ;;  %s2484_s4 = int_to_ptr.vmem [resolvable:$true] %s2483_s4 }
 0x3e2   :  { %v2726_v22 = vpop.eup %2725  ;;  %v1040_v62 = vmul.f32 0.5, %v2724_v61  ;;  %2729 = vtanh.f32 %v1047_v21  ;;  %v3427_v20 = vld [vmem:[#allocation9] sm:$0xff]  ;;  %v3429_v21 = vld [vmem:[#allocation9 + $0x8] sm:$0xff]  ;;  %v3431_v61 = vld [vmem:[#allocation9 + $0x10] sm:$0xff] }
 0x3e3   :  { %v1044_v35 = vmul.f32 0.5, %v2726_v22  ;;  %v1173_v22 = vld [vmem:[#allocation2 + $0x38] sm:$0xff] }
 0x3e4   :  { %v1041_v63 = vadd.f32 0.5, %v1040_v62 }
 0x3e5   :  { %v1045_v36 = vadd.f32 0.5, %v1044_v35  ;;  %v1200_v35 = vld [vmem:[#allocation2 + $0x78] sm:$0xff] }
 0x3e6   :  { %v2728_v0 = vpop.eup %2727 }
 0x3e7   :  { %v1051_v1 = vmul.f32 %v1045_v36, %v937_v57  ;;  %v1052_v2 = vmul.f32 %v2728_v0, %v1041_v63  ;;  %v3435_v36 = vld [vmem:[#allocation9 + $0x18] sm:$0xff] }
 0x3e8   :  { %v2730_v3 = vpop.eup %2729 }
 0x3e9   :  { %v1053_v4 = vadd.f32 %v1052_v2, %v1051_v1  ;;  %v1049_v13 = vmul.f32 0.5, %v2730_v3 }
 0x3eb   :  { %2731 = vtanh.f32 %v1053_v4  ;;  %v1050_v18 = vadd.f32 0.5, %v1049_v13 }
 0x3f1   :  { %v2732_v23 = vpop.eup %2731 }
 0x3f2   :  { %v1055_v24 = vmul.f32 %v2732_v23, %v1050_v18  ;;  %v1248_v18 = vld [vmem:[#allocation2 + $0xf8] sm:$0xff] }
 0x3f4   :  { %2584 = vmatmul.msk.f32.vlgmr.msrb.gmra.mxu0 %vm162_vm1, %v1055_v24  ;;  %2585 = vmatmul.msk.f32.vlgmr.msrb.gmra.mxu1 %vm162_vm1, %v1055_v24 }
 0x3f5   :  { %2586 = vmatmul.msk.f32.vlgmr.msrb.gmra.mxu2 %vm162_vm1, %v1055_v24  ;;  %2587 = vmatmul.msk.f32.vlgmr.msrb.gmra.mxu3 %vm162_vm1, %v1055_v24 }
 0x3f6   :  { %1311 = vmatpush.msrb.mxu0 %v1291_v58  ;;  %1342 = vmatpush.msrb.mxu1 %v2596_v59  ;;  %v1531_v58 = vld [vmem:[%s3609_s7] sm:$0xff] }
 0x3f7   :  { %1374 = vmatpush.msrb.mxu2 %v2602_v60  ;;  %1406 = vmatpush.msrb.mxu3 %v2608_v5 }
 0x3f8   :  { %1312 = vmatpush.msrb.mxu0 %v1290_v6  ;;  %1343 = vmatpush.msrb.mxu1 %v2595_v7 }
 0x3f9   :  { %1375 = vmatpush.msrb.mxu2 %v2601_v8  ;;  %1407 = vmatpush.msrb.mxu3 %v2607_v9 }
 0x3fa   :  { %1313 = vmatpush.msrb.mxu0 %v1289_v10  ;;  %1344 = vmatpush.msrb.mxu1 %v2594_v11 }
 0x3fb   :  { %1376 = vmatpush.msrb.mxu2 %v2600_v12  ;;  %1408 = vmatpush.msrb.mxu3 %v2606_v14 }
 0x3fc   :  { %1314 = vmatpush.msrb.mxu0 %v1288_v15  ;;  %1345 = vmatpush.msrb.mxu1 %v2593_v16 }
 0x3fd   :  { %1377 = vmatpush.msrb.mxu2 %v2599_v17  ;;  %1409 = vmatpush.msrb.mxu3 %v2605_v19 }
 0x471   :  { %v1078_v26 = vpop.f32.mrf.mxu0  ;;  %v1102_v31 = vpop.f32.mrf.mxu1 }
 0x472   :  { %v1081_v32 = vadd.f32 %v1078_v26, %v1057_v25  ;;  %v1105_v33 = vadd.f32 %v1102_v31, %v1084_v27 }
 0x474   :  { %v1154_v34 = vmul.f32 0.5, %v1081_v32  ;;  %v1158_v37 = vmul.f32 0.5, %v1105_v33 }
 0x476   :  { %2733 = vtanh.f32 %v1154_v34 }
 0x477   :  { %2735 = vtanh.f32 %v1158_v37 }
 0x478   :  { %v1126_v39 = vpop.f32.mrf.mxu2  ;;  %v1150_v41 = vpop.f32.mrf.mxu3 }
 0x479   :  { %v1129_v42 = vadd.f32 %v1126_v39, %v1108_v38  ;;  %v1153_v43 = vadd.f32 %v1150_v41, %v1132_v40 }
 0x47b   :  { %2737 = vtanh.f32 %v1129_v42  ;;  %v1163_v44 = vmul.f32 0.5, %v1153_v43 }
 0x47c   :  { %v2734_v45 = vpop.eup %2733 }
 0x47d   :  { %v2736_v46 = vpop.eup %2735  ;;  %v1156_v47 = vmul.f32 0.5, %v2734_v45  ;;  %2739 = vtanh.f32 %v1163_v44 }
 0x47e   :  { %v1160_v48 = vmul.f32 0.5, %v2736_v46 }
 0x47f   :  { %v1157_v49 = vadd.f32 0.5, %v1156_v47  ;;  %v2668_v47 = vld [vmem:[%s3608_s6] ss:$0 sm:$0xff] }
 0x480   :  { %v1161_v50 = vadd.f32 0.5, %v1160_v48  ;;  %v2669_v48 = vld [vmem:[%s3608_s6 + $0x1] ss:$0 sm:$0xff] }
 0x481   :  { %v2738_v51 = vpop.eup %2737 }
 0x482   :  { %v1167_v52 = vmul.f32 %v1161_v50, %v1053_v4  ;;  %v1168_v53 = vmul.f32 %v2738_v51, %v1157_v49  ;;  %v1224_v4 = vld [vmem:[#allocation2 + $0xb8] sm:$0xff] }
 0x483   :  { %v2740_v54 = vpop.eup %2739 }
 0x484   :  { %v3372_v55 = vadd.f32 %v1168_v53, %v1167_v52  ;;  %v1165_v56 = vmul.f32 0.5, %v2740_v54  ;;  %v2671_v53 = vld [vmem:[%s3608_s6 + $0x3] ss:$0 sm:$0xff] }
 0x486   :  { %2741 = vtanh.f32 %v3372_v55  ;;  %v1166_v29 = vadd.f32 0.5, %v1165_v56 }
 0x48c   :  { %v2742_v57 = vpop.eup %2741 }
 0x48d   :  { %v1171_v30 = vmul.f32 %v2742_v57, %v1166_v29 }
 0x48f   :  { %2588 = vmatmul.msk.f32.vlgmr.msra.gmra.mxu0 %vm162_vm1, %v1171_v30  ;;  %2589 = vmatmul.msk.f32.vlgmr.msra.gmra.mxu1 %vm162_vm1, %v1171_v30 }
 0x490   :  { %2590 = vmatmul.msk.f32.vlgmr.msra.gmra.mxu2 %vm162_vm1, %v1171_v30  ;;  %2591 = vmatmul.msk.f32.vlgmr.msra.gmra.mxu3 %vm162_vm1, %v1171_v30 }
 0x491   :  { %1441 = vmatpush.msra.mxu0 %v3427_v20  ;;  %1463 = vmatpush.msra.mxu1 %v3429_v21 }
 0x492   :  { %1485 = vmatpush.msra.mxu2 %v3431_v61  ;;  %1507 = vmatpush.msra.mxu3 %v3435_v36 }
 0x50c   :  { %v1194_v62 = vpop.f32.mrf.mxu0  ;;  %v1218_v63 = vpop.f32.mrf.mxu1 }
 0x50d   :  { %v1197_v0 = vadd.f32 %v1194_v62, %v1173_v22  ;;  %v1221_v1 = vadd.f32 %v1218_v63, %v1200_v35 }
 0x50f   :  { %v1270_v2 = vmul.f32 0.5, %v1197_v0  ;;  %v1274_v3 = vmul.f32 0.5, %v1221_v1 }
 0x511   :  { %2743 = vtanh.f32 %v1270_v2 }
 0x512   :  { %2745 = vtanh.f32 %v1274_v3 }
 0x513   :  { %v1242_v13 = vpop.f32.mrf.mxu2  ;;  %v1266_v23 = vpop.f32.mrf.mxu3 }
 0x514   :  { %v1245_v24 = vadd.f32 %v1242_v13, %v1224_v4  ;;  %v1269_v25 = vadd.f32 %v1266_v23, %v1248_v18 }
 0x516   :  { %2747 = vtanh.f32 %v1245_v24  ;;  %v1279_v26 = vmul.f32 0.5, %v1269_v25  ;;  %v2615_v25 = vld [vmem:[%s3609_s7 + $0x8] sm:$0xff] }
 0x517   :  { %v2744_v27 = vpop.eup %2743 }
 0x518   :  { %v2746_v31 = vpop.eup %2745  ;;  %v1272_v32 = vmul.f32 0.5, %v2744_v27  ;;  %2749 = vtanh.f32 %v1279_v26 }
 0x519   :  { %v1276_v33 = vmul.f32 0.5, %v2746_v31 }
 0x51a   :  { %v1273_v34 = vadd.f32 0.5, %v1272_v32 }
 0x51b   :  { %v1277_v37 = vadd.f32 0.5, %v1276_v33 }
 0x51c   :  { %v2748_v38 = vpop.eup %2747 }
 0x51d   :  { %v1283_v39 = vmul.f32 %v1277_v37, %v3372_v55  ;;  %v1284_v40 = vmul.f32 %v2748_v38, %v1273_v34 }
 0x51e   :  { %v2750_v41 = vpop.eup %2749 }
 0x51f   :  { %v1285_v42 = vadd.f32 %v1284_v40, %v1283_v39  ;;  %v1281_v43 = vmul.f32 0.5, %v2750_v41 }
 0x521   :  { %2751 = vtanh.f32 %v1285_v42  ;;  %v1282_v44 = vadd.f32 0.5, %v1281_v43 }
 0x527   :  { %v2752_v45 = vpop.eup %2751 }
 0x528   :  { %v1287_v46 = vmul.f32 %v2752_v45, %v1282_v44 }
 0x52a   :  { %2592 = vmatmul.msk.f32.vlgmr.msrb.gmra.mxu0 %vm162_vm1, %v1287_v46  ;;  %2598 = vmatmul.msk.f32.vlgmr.msrb.gmra.mxu1 %vm162_vm1, %v1287_v46 }
 0x52b   :  { %2604 = vmatmul.msk.f32.vlgmr.msrb.gmra.mxu2 %vm162_vm1, %v1287_v46  ;;  %2610 = vmatmul.msk.f32.vlgmr.msrb.gmra.mxu3 %vm162_vm1, %v1287_v46 }
 0x52c   :  { %1550 = vmatpush.msrb.mxu0 %v3427_v20  ;;  %1571 = vmatpush.msrb.mxu1 %v3429_v21 }
 0x52d   :  { %1592 = vmatpush.msrb.mxu2 %v3431_v61  ;;  %1613 = vmatpush.msrb.mxu3 %v3435_v36 }
 0x532   :  { %1442 = vmatmul.f32.vlgmr.msra.gmra.mxu0 %v2942_v28  ;;  %1464 = vmatmul.f32.vlgmr.msra.gmra.mxu1 %v2942_v28 }
 0x533   :  { %1486 = vmatmul.f32.vlgmr.msra.gmra.mxu2 %v2942_v28  ;;  %1508 = vmatmul.f32.vlgmr.msra.gmra.mxu3 %v2942_v28  ;;  %v2670_v28 = vld [vmem:[%s3608_s6 + $0x2] ss:$0 sm:$0xff] }
 0x534   :  { %1697 = vmatpush.msra.mxu2 %v3427_v20  ;;  %1718 = vmatpush.msra.mxu3 %v3429_v21 }
 0x535   :  { %1677 = vmatpush.msra.mxu1 %v1531_v58  ;;  %1657 = vmatpush.msra.mxu0 %v2615_v25 }
 0x5a7   :  { %v1316_v49 = vpop.f32.mrf.mxu0  ;;  %v1347_v50 = vpop.f32.mrf.mxu1 }
 0x5a8   :  { %v1317_v51 = vadd.f32 %v2668_v47, %v1316_v49  ;;  %v1348_v52 = vadd.f32 %v2669_v48, %v1347_v50 }
 0x5aa   :  { %1319 = vst.msk [vmem:[#allocation3] sm:$0xff] %vm96_vm0, %v1317_v51 }
 0x5ab   :  { %1351 = vst.msk [vmem:[#allocation3 + $0x8] sm:$0xff] %vm96_vm0, %v1348_v52 }
 0x5ae   :  { %v1379_v54 = vpop.f32.mrf.mxu2  ;;  %v1411_v55 = vpop.f32.mrf.mxu3 }
 0x5af   :  { %v1380_v56 = vadd.f32 %v2670_v28, %v1379_v54  ;;  %v1412_v29 = vadd.f32 %v2671_v53, %v1411_v55  ;;  %v1443_v57 = vpop.f32.mrf.mxu0  ;;  %v1465_v30 = vpop.f32.mrf.mxu1 }
 0x5b1   :  { %1383 = vst.msk [vmem:[#allocation3 + $0x10] sm:$0xff] %vm96_vm0, %v1380_v56  ;;  %v3472_v59 = vld [vmem:[#allocation3] sm:$0xff]  ;;  %v2622_v56 = vld [vmem:[%s3609_s7 + $0x10] sm:$0xff] }
 0x5b2   :  { %1415 = vst.msk [vmem:[#allocation3 + $0x18] sm:$0xff] %vm96_vm0, %v1412_v29  ;;  %v1446_v60 = vadd.f32 %v1443_v57, %v3472_v59  ;;  %v3476_v5 = vld [vmem:[#allocation3 + $0x8] sm:$0xff] }
 0x5b3   :  { %v1468_v6 = vadd.f32 %v1465_v30, %v3476_v5 }
 0x5b4   :  { %v1513_v7 = vmul.f32 0.5, %v1446_v60 }
 0x5b5   :  { %v1517_v8 = vmul.f32 0.5, %v1468_v6 }
 0x5b6   :  { %2753 = vtanh.f32 %v1513_v7  ;;  %v1487_v9 = vpop.f32.mrf.mxu2  ;;  %v1509_v10 = vpop.f32.mrf.mxu3 }
 0x5b7   :  { %2755 = vtanh.f32 %v1517_v8 }
 0x5b8   :  { %v3479_v11 = vld [vmem:[#allocation3 + $0x10] sm:$0xff] }
 0x5b9   :  { %v1490_v12 = vadd.f32 %v1487_v9, %v3479_v11  ;;  %v3482_v14 = vld [vmem:[#allocation3 + $0x18] sm:$0xff] }
 0x5ba   :  { %v1512_v15 = vadd.f32 %v1509_v10, %v3482_v14 }
 0x5bb   :  { %2757 = vtanh.f32 %v1490_v12 }
 0x5bc   :  { %v2754_v16 = vpop.eup %2753  ;;  %v1522_v17 = vmul.f32 0.5, %v1512_v15 }
 0x5bd   :  { %v2756_v19 = vpop.eup %2755  ;;  %v1515_v22 = vmul.f32 0.5, %v2754_v16 }
 0x5be   :  { %v1519_v62 = vmul.f32 0.5, %v2756_v19  ;;  %2759 = vtanh.f32 %v1522_v17 }
 0x5bf   :  { %v1516_v35 = vadd.f32 0.5, %v1515_v22 }
 0x5c0   :  { %v1520_v63 = vadd.f32 0.5, %v1519_v62 }
 0x5c1   :  { %v2758_v0 = vpop.eup %2757 }
 0x5c2   :  { %v1526_v1 = vmul.f32 0.0, %v1520_v63  ;;  %v1527_v2 = vmul.f32 %v2758_v0, %v1516_v35 }
 0x5c4   :  { %v2760_v3 = vpop.eup %2759  ;;  %v1528_v4 = vadd.f32 %v1527_v2, %v1526_v1 }
 0x5c5   :  { %v1524_v13 = vmul.f32 0.5, %v2760_v3 }
 0x5c6   :  { %2761 = vtanh.f32 %v1528_v4 }
 0x5c7   :  { %v1525_v18 = vadd.f32 0.5, %v1524_v13 }
 0x5cc   :  { %v2762_v23 = vpop.eup %2761 }
 0x5cd   :  { %v1530_v24 = vmul.f32 %v2762_v23, %v1525_v18 }
 0x5cf   :  { %2611 = vmatmul.msk.f32.vlgmr.msrb.gmra.mxu0 %vm96_vm0, %v1530_v24  ;;  %2612 = vmatmul.msk.f32.vlgmr.msrb.gmra.mxu1 %vm96_vm0, %v1530_v24 }
 0x5d0   :  { %2613 = vmatmul.msk.f32.vlgmr.msrb.gmra.mxu2 %vm96_vm0, %v1530_v24  ;;  %2614 = vmatmul.msk.f32.vlgmr.msrb.gmra.mxu3 %vm96_vm0, %v1530_v24 }
 0x5d1   :  { %1760 = vmatpush.msrb.mxu1 %v3435_v36  ;;  %1825 = vmatpush.msrb.mxu3 %v3427_v20 }
 0x5d2   :  { %1739 = vmatpush.msrb.mxu0 %v3431_v61  ;;  %1804 = vmatpush.msrb.mxu2 %v2622_v56 }
 0x5d7   :  { %2617 = vmatmul.msk.f32.vlgmr.msra.gmra.mxu1 %vm96_vm0, %v1530_v24 }
 0x5d8   :  { %1867 = vmatpush.msra.mxu1 %v3431_v61 }
 0x64c   :  { %v1552_v26 = vpop.f32.mrf.mxu0  ;;  %v1573_v27 = vpop.f32.mrf.mxu1 }
 0x64d   :  { %v1555_v31 = vadd.f32 %v1552_v26, %v3472_v59  ;;  %v1576_v32 = vadd.f32 %v1573_v27, %v3476_v5  ;;  %v2628_v27 = vld [vmem:[%s3609_s7 + $0x18] sm:$0xff] }
 0x64f   :  { %v1619_v33 = vmul.f32 0.5, %v1555_v31  ;;  %v1623_v34 = vmul.f32 0.5, %v1576_v32 }
 0x651   :  { %2763 = vtanh.f32 %v1619_v33 }
 0x652   :  { %2765 = vtanh.f32 %v1623_v34 }
 0x653   :  { %v1594_v37 = vpop.f32.mrf.mxu2  ;;  %v1615_v38 = vpop.f32.mrf.mxu3 }
 0x654   :  { %v1597_v39 = vadd.f32 %v1594_v37, %v3479_v11  ;;  %v1618_v40 = vadd.f32 %v1615_v38, %v3482_v14  ;;  %v1679_v29 = vpop.f32.mrf.mxu1 }
 0x656   :  { %2767 = vtanh.f32 %v1597_v39  ;;  %v1628_v41 = vmul.f32 0.5, %v1618_v40 }
 0x657   :  { %v2764_v42 = vpop.eup %2763 }
 0x658   :  { %v2766_v43 = vpop.eup %2765  ;;  %v1621_v44 = vmul.f32 0.5, %v2764_v42  ;;  %2769 = vtanh.f32 %v1628_v41 }
 0x659   :  { %v1625_v45 = vmul.f32 0.5, %v2766_v43 }
 0x65a   :  { %v1622_v46 = vadd.f32 0.5, %v1621_v44 }
 0x65b   :  { %v1626_v47 = vadd.f32 0.5, %v1625_v45 }
 0x65c   :  { %v2768_v48 = vpop.eup %2767 }
 0x65d   :  { %v1632_v49 = vmul.f32 %v1626_v47, %v1528_v4  ;;  %v1633_v50 = vmul.f32 %v2768_v48, %v1622_v46 }
 0x65e   :  { %v2770_v51 = vpop.eup %2769 }
 0x65f   :  { %v1634_v52 = vadd.f32 %v1633_v50, %v1632_v49  ;;  %v1630_v28 = vmul.f32 0.5, %v2770_v51 }
 0x661   :  { %2771 = vtanh.f32 %v1634_v52  ;;  %v1631_v53 = vadd.f32 0.5, %v1630_v28 }
 0x667   :  { %v2772_v54 = vpop.eup %2771 }
 0x668   :  { %v1636_v55 = vmul.f32 %v2772_v54, %v1631_v53 }
 0x66a   :  { %2616 = vmatmul.msk.f32.vlgmr.msra.gmra.mxu0 %vm96_vm0, %v1636_v55  ;;  %2618 = vmatmul.msk.f32.vlgmr.msra.gmra.mxu2 %vm96_vm0, %v1636_v55 }
 0x66b   :  { %2619 = vmatmul.msk.f32.vlgmr.msra.gmra.mxu3 %vm96_vm0, %v1636_v55  ;;  %2621 = vmatmul.msk.f32.vlgmr.msrb.gmra.mxu1 %vm96_vm0, %v1636_v55 }
 0x66c   :  { %1846 = vmatpush.msra.mxu0 %v3429_v21  ;;  %1974 = vmatpush.msrb.mxu1 %v3429_v21 }
 0x66d   :  { %1888 = vmatpush.msra.mxu2 %v3435_v36  ;;  %1932 = vmatpush.msra.mxu3 %v2628_v27 }
 0x672   :  { %2620 = vmatmul.msk.f32.vlgmr.msrb.gmra.mxu0 %vm96_vm0, %v1636_v55 }
 0x673   :  { %1953 = vmatpush.msrb.mxu0 %v3427_v20 }
 0x6e7   :  { %v1659_v57 = vpop.f32.mrf.mxu0 }
 0x6e8   :  { %v1680_v30 = vadd.f32 %v1679_v29, %v1659_v57  ;;  %v1762_v7 = vpop.f32.mrf.mxu1 }
 0x6e9   :  { %v1765_v15 = vadd.f32 %v1762_v7, %v3482_v14 }
 0x6eb   :  { %v1775_v17 = vmul.f32 0.5, %v1765_v15 }
 0x6ed   :  { %v1699_v58 = vpop.f32.mrf.mxu2 }
 0x6ee   :  { %v1702_v60 = vadd.f32 %v1699_v58, %v3472_v59  ;;  %v1720_v6 = vpop.f32.mrf.mxu3 }
 0x6ef   :  { %v1723_v8 = vadd.f32 %v1720_v6, %v3476_v5  ;;  %v1741_v9 = vpop.f32.mrf.mxu0 }
 0x6f0   :  { %v1766_v10 = vmul.f32 0.5, %v1702_v60  ;;  %v1744_v16 = vadd.f32 %v1741_v9, %v3479_v11 }
 0x6f1   :  { %v1770_v12 = vmul.f32 0.5, %v1723_v8 }
 0x6f2   :  { %2773 = vtanh.f32 %v1766_v10 }
 0x6f3   :  { %2775 = vtanh.f32 %v1770_v12 }
 0x6f4   :  { %2777 = vtanh.f32 %v1744_v16 }
 0x6f5   :  { %2779 = vtanh.f32 %v1775_v17 }
 0x6f8   :  { %v2774_v19 = vpop.eup %2773 }
 0x6f9   :  { %v2776_v22 = vpop.eup %2775  ;;  %v1768_v62 = vmul.f32 0.5, %v2774_v19 }
 0x6fa   :  { %v1772_v35 = vmul.f32 0.5, %v2776_v22  ;;  %v2778_v0 = vpop.eup %2777 }
 0x6fb   :  { %v1769_v63 = vadd.f32 0.5, %v1768_v62  ;;  %v2780_v4 = vpop.eup %2779 }
 0x6fc   :  { %v1773_v1 = vadd.f32 0.5, %v1772_v35  ;;  %v1777_v18 = vmul.f32 0.5, %v2780_v4 }
 0x6fd   :  { %v1780_v2 = vmul.f32 %v2778_v0, %v1769_v63 }
 0x6fe   :  { %v1779_v3 = vmul.f32 %v1773_v1, %v1634_v52  ;;  %v1778_v23 = vadd.f32 0.5, %v1777_v18 }
 0x700   :  { %v1781_v13 = vadd.f32 %v1780_v2, %v1779_v3 }
 0x702   :  { %2781 = vtanh.f32 %v1781_v13 }
 0x708   :  { %v2782_v24 = vpop.eup %2781 }
 0x709   :  { %v1783_v25 = vmul.f32 %v2782_v24, %v1778_v23 }
 0x70b   :  { %2623 = vmatmul.msk.f32.vlgmr.msrb.gmra.mxu2 %vm96_vm0, %v1783_v25  ;;  %2624 = vmatmul.msk.f32.vlgmr.msrb.gmra.mxu3 %vm96_vm0, %v1783_v25 }
 0x70c   :  { %2625 = vmatmul.msk.f32.vlgmr.msra.gmra.mxu0 %vm96_vm0, %v1783_v25  ;;  %2626 = vmatmul.msk.f32.vlgmr.msra.gmra.mxu1 %vm96_vm0, %v1783_v25 }
 0x70d   :  { %1995 = vmatpush.msrb.mxu2 %v3431_v61  ;;  %2081 = vmatpush.msra.mxu1 %v3427_v20 }
 0x70e   :  { %2016 = vmatpush.msrb.mxu3 %v3435_v36 }
 0x713   :  { %2627 = vmatmul.msk.f32.vlgmr.msra.gmra.mxu2 %vm96_vm0, %v1783_v25 }
 0x714   :  { %2102 = vmatpush.msra.mxu2 %v3429_v21 }
 0x789   :  { %v1848_v26 = vpop.f32.mrf.mxu0  ;;  %v1869_v39 = vpop.f32.mrf.mxu1 }
 0x78a   :  { %v1851_v31 = vadd.f32 %v1848_v26, %v3476_v5  ;;  %v1872_v41 = vadd.f32 %v1869_v39, %v3479_v11 }
 0x78c   :  { %v1898_v32 = vmul.f32 0.5, %v1851_v31 }
 0x78e   :  { %2783 = vtanh.f32 %v1898_v32  ;;  %v1806_v33 = vpop.f32.mrf.mxu2  ;;  %v1827_v34 = vpop.f32.mrf.mxu3 }
 0x78f   :  { %v1809_v37 = vadd.f32 %v1806_v33, %v1680_v30  ;;  %v1830_v38 = vadd.f32 %v1827_v34, %v3472_v59  ;;  %v2634_v30 = vld [vmem:[%s3609_s7 + $0x20] sm:$0xff] }
 0x790   :  { %2060 = vmatpush.msra.mxu0 %v2634_v30 }
 0x791   :  { %v1894_v40 = vmul.f32 0.5, %v1830_v38 }
 0x793   :  { %2785 = vtanh.f32 %v1894_v40 }
 0x794   :  { %v2784_v42 = vpop.eup %2783  ;;  %2787 = vtanh.f32 %v1872_v41 }
 0x795   :  { %v1900_v43 = vmul.f32 0.5, %v2784_v42 }
 0x796   :  { %v1890_v44 = vpop.f32.mrf.mxu2 }
 0x797   :  { %v1893_v45 = vadd.f32 %v1890_v44, %v3482_v14  ;;  %v1901_v48 = vadd.f32 0.5, %v1900_v43 }
 0x799   :  { %v2786_v46 = vpop.eup %2785  ;;  %v1903_v47 = vmul.f32 0.5, %v1893_v45  ;;  %v1907_v52 = vmul.f32 %v1901_v48, %v1781_v13 }
 0x79a   :  { %v1896_v49 = vmul.f32 0.5, %v2786_v46  ;;  %v2788_v51 = vpop.eup %2787 }
 0x79b   :  { %2789 = vtanh.f32 %v1903_v47 }
 0x79c   :  { %v1897_v50 = vadd.f32 0.5, %v1896_v49 }
 0x79e   :  { %v1908_v28 = vmul.f32 %v2788_v51, %v1897_v50 }
 0x7a0   :  { %v1909_v53 = vadd.f32 %v1908_v28, %v1907_v52 }
 0x7a1   :  { %v2790_v54 = vpop.eup %2789 }
 0x7a2   :  { %2791 = vtanh.f32 %v1909_v53  ;;  %v1905_v55 = vmul.f32 0.5, %v2790_v54 }
 0x7a4   :  { %v1906_v56 = vadd.f32 0.5, %v1905_v55 }
 0x7a8   :  { %v2792_v29 = vpop.eup %2791 }
 0x7a9   :  { %v1911_v57 = vmul.f32 %v2792_v29, %v1906_v56 }
 0x7ab   :  { %2629 = vmatmul.msk.f32.vlgmr.msra.gmra.mxu3 %vm96_vm0, %v1911_v57  ;;  %2630 = vmatmul.msk.f32.vlgmr.msrb.gmra.mxu0 %vm96_vm0, %v1911_v57 }
 0x7ac   :  { %2631 = vmatmul.msk.f32.vlgmr.msrb.gmra.mxu1 %vm96_vm0, %v1911_v57  ;;  %2632 = vmatmul.msk.f32.vlgmr.msrb.gmra.mxu2 %vm96_vm0, %v1911_v57 }
 0x7ad   :  { %2123 = vmatpush.msra.mxu3 %v3431_v61  ;;  %2209 = vmatpush.msrb.mxu2 %v3427_v20 }
 0x7ae   :  { %2144 = vmatpush.msrb.mxu0 %v3435_v36 }
 0x7b3   :  { %2633 = vmatmul.msk.f32.vlgmr.msrb.gmra.mxu3 %vm96_vm0, %v1911_v57 }
 0x7b4   :  { %2230 = vmatpush.msrb.mxu3 %v3429_v21 }
 0x828   :  { %v1955_v58 = vpop.f32.mrf.mxu0 }
 0x829   :  { %v1958_v60 = vadd.f32 %v1955_v58, %v3472_v59  ;;  %v1976_v6 = vpop.f32.mrf.mxu1 }
 0x82a   :  { %v1979_v7 = vadd.f32 %v1976_v6, %v3476_v5 }
 0x82b   :  { %v2022_v8 = vmul.f32 0.5, %v1958_v60  ;;  %v2646_v60 = vld [vmem:[%s3609_s7 + $0x30] sm:$0xff] }
 0x82c   :  { %v2026_v9 = vmul.f32 0.5, %v1979_v7 }
 0x82d   :  { %2793 = vtanh.f32 %v2022_v8 }
 0x82e   :  { %2795 = vtanh.f32 %v2026_v9  ;;  %v1934_v10 = vpop.f32.mrf.mxu3 }
 0x82f   :  { %v1937_v12 = vadd.f32 %v1934_v10, %v1809_v37  ;;  %v1997_v15 = vpop.f32.mrf.mxu2  ;;  %v2640_v37 = vld [vmem:[%s3609_s7 + $0x28] sm:$0xff] }
 0x830   :  { %v2000_v16 = vadd.f32 %v1997_v15, %v3479_v11  ;;  %2188 = vmatpush.msrb.mxu1 %v2640_v37 }
 0x832   :  { %2797 = vtanh.f32 %v2000_v16 }
 0x833   :  { %v2794_v17 = vpop.eup %2793 }
 0x834   :  { %v2796_v19 = vpop.eup %2795  ;;  %v2024_v22 = vmul.f32 0.5, %v2794_v17 }
 0x835   :  { %v2028_v62 = vmul.f32 0.5, %v2796_v19 }
 0x836   :  { %v2025_v35 = vadd.f32 0.5, %v2024_v22  ;;  %v2018_v63 = vpop.f32.mrf.mxu3 }
 0x837   :  { %v2029_v0 = vadd.f32 0.5, %v2028_v62  ;;  %v2021_v1 = vadd.f32 %v2018_v63, %v3482_v14 }
 0x838   :  { %v2798_v2 = vpop.eup %2797 }
 0x839   :  { %v2035_v3 = vmul.f32 %v2029_v0, %v1909_v53  ;;  %v2036_v4 = vmul.f32 %v2798_v2, %v2025_v35  ;;  %v2031_v13 = vmul.f32 0.5, %v2021_v1 }
 0x83b   :  { %v2037_v18 = vadd.f32 %v2036_v4, %v2035_v3  ;;  %2799 = vtanh.f32 %v2031_v13 }
 0x83d   :  { %2801 = vtanh.f32 %v2037_v18 }
 0x841   :  { %v2800_v23 = vpop.eup %2799 }
 0x842   :  { %v2033_v24 = vmul.f32 0.5, %v2800_v23 }
 0x843   :  { %v2802_v26 = vpop.eup %2801 }
 0x844   :  { %v2034_v25 = vadd.f32 0.5, %v2033_v24 }
 0x846   :  { %v2039_v27 = vmul.f32 %v2802_v26, %v2034_v25 }
 0x848   :  { %2635 = vmatmul.msk.f32.vlgmr.msra.gmra.mxu0 %vm96_vm0, %v2039_v27  ;;  %2636 = vmatmul.msk.f32.vlgmr.msra.gmra.mxu1 %vm96_vm0, %v2039_v27 }
 0x849   :  { %2637 = vmatmul.msk.f32.vlgmr.msra.gmra.mxu2 %vm96_vm0, %v2039_v27  ;;  %2638 = vmatmul.msk.f32.vlgmr.msra.gmra.mxu3 %vm96_vm0, %v2039_v27 }
 0x84a   :  { %2251 = vmatpush.msra.mxu0 %v3431_v61  ;;  %2337 = vmatpush.msra.mxu3 %v3427_v20 }
 0x84b   :  { %2272 = vmatpush.msra.mxu1 %v3435_v36  ;;  %2316 = vmatpush.msra.mxu2 %v2646_v60 }
 0x850   :  { %2639 = vmatmul.msk.f32.vlgmr.msrb.gmra.mxu0 %vm96_vm0, %v2039_v27  ;;  %v2652_v27 = vld [vmem:[%s3609_s7 + $0x38] sm:$0xff] }
 0x851   :  { %2358 = vmatpush.msrb.mxu0 %v3429_v21 }
 0x8c5   :  { %v2062_v31 = vpop.f32.mrf.mxu0  ;;  %v2083_v32 = vpop.f32.mrf.mxu1 }
 0x8c6   :  { %v2065_v33 = vadd.f32 %v2062_v31, %v1937_v12  ;;  %v2086_v34 = vadd.f32 %v2083_v32, %v3472_v59  ;;  %v2450_v31 = vld [vmem:[%s3610_s8] sm:$0xff] }
 0x8c8   :  { %v2150_v38 = vmul.f32 0.5, %v2086_v34 }
 0x8ca   :  { %2803 = vtanh.f32 %v2150_v38 }
 0x8cc   :  { %v2104_v39 = vpop.f32.mrf.mxu2  ;;  %v2125_v20 = vpop.f32.mrf.mxu3 }
 0x8cd   :  { %v2107_v40 = vadd.f32 %v2104_v39, %v3476_v5  ;;  %v2146_v41 = vpop.f32.mrf.mxu0  ;;  %v2128_v42 = vadd.f32 %v2125_v20, %v3479_v11 }
 0x8ce   :  { %v2149_v43 = vadd.f32 %v2146_v41, %v3482_v14 }
 0x8cf   :  { %v2154_v21 = vmul.f32 0.5, %v2107_v40 }
 0x8d0   :  { %v2804_v44 = vpop.eup %2803  ;;  %v2159_v46 = vmul.f32 0.5, %v2149_v43 }
 0x8d1   :  { %2805 = vtanh.f32 %v2154_v21  ;;  %v2152_v45 = vmul.f32 0.5, %v2804_v44 }
 0x8d2   :  { %2807 = vtanh.f32 %v2128_v42 }
 0x8d3   :  { %v2153_v48 = vadd.f32 0.5, %v2152_v45  ;;  %2809 = vtanh.f32 %v2159_v46 }
 0x8d7   :  { %v2806_v47 = vpop.eup %2805 }
 0x8d8   :  { %v2156_v49 = vmul.f32 0.5, %v2806_v47  ;;  %v2808_v50 = vpop.eup %2807 }
 0x8d9   :  { %v2164_v28 = vmul.f32 %v2808_v50, %v2153_v48  ;;  %v2810_v53 = vpop.eup %2809 }
 0x8da   :  { %v2157_v51 = vadd.f32 0.5, %v2156_v49  ;;  %v2161_v55 = vmul.f32 0.5, %v2810_v53 }
 0x8dc   :  { %v2163_v52 = vmul.f32 %v2157_v51, %v2037_v18  ;;  %v2162_v56 = vadd.f32 0.5, %v2161_v55 }
 0x8de   :  { %v2165_v54 = vadd.f32 %v2164_v28, %v2163_v52 }
 0x8e0   :  { %2811 = vtanh.f32 %v2165_v54 }
 0x8e6   :  { %v2812_v29 = vpop.eup %2811 }
 0x8e7   :  { %v2167_v57 = vmul.f32 %v2812_v29, %v2162_v56  ;;  %v2672_v56 = vld [vmem:[%s3611_s9] ss:$0 sm:$0xff] }
 0x8e9   :  { %2641 = vmatmul.msk.f32.vlgmr.msrb.gmra.mxu1 %vm96_vm0, %v2167_v57  ;;  %2642 = vmatmul.msk.f32.vlgmr.msrb.gmra.mxu2 %vm96_vm0, %v2167_v57 }
 0x8ea   :  { %2643 = vmatmul.msk.f32.vlgmr.msrb.gmra.mxu3 %vm96_vm0, %v2167_v57  ;;  %2644 = vmatmul.msk.f32.vlgmr.msra.gmra.mxu0 %vm96_vm0, %v2167_v57 }
 0x8eb   :  { %2379 = vmatpush.msrb.mxu1 %v3431_v61  ;;  %2400 = vmatpush.msrb.mxu2 %v3435_v36 }
 0x8ec   :  { %2444 = vmatpush.msrb.mxu3 %v2652_v27  ;;  %2466 = vmatpush.msra.mxu0 %v2450_v31 }
 0x8f1   :  { %2645 = vmatmul.msk.f32.vlgmr.msra.gmra.mxu1 %vm96_vm0, %v2167_v57 }
 0x966   :  { %v2190_v30 = vpop.f32.mrf.mxu1 }
 0x967   :  { %v2193_v58 = vadd.f32 %v2190_v30, %v2065_v33  ;;  %v2253_v9 = vpop.f32.mrf.mxu0 }
 0x968   :  { %v2256_v16 = vadd.f32 %v2253_v9, %v3479_v11 }
 0x96c   :  { %v2211_v6 = vpop.f32.mrf.mxu2 }
 0x96d   :  { %v2214_v7 = vadd.f32 %v2211_v6, %v3472_v59  ;;  %v2232_v8 = vpop.f32.mrf.mxu3 }
 0x96e   :  { %v2235_v10 = vadd.f32 %v2232_v8, %v3476_v5  ;;  %v2274_v12 = vpop.f32.mrf.mxu1 }
 0x96f   :  { %v2278_v61 = vmul.f32 0.5, %v2214_v7  ;;  %v2277_v17 = vadd.f32 %v2274_v12, %v3482_v14 }
 0x970   :  { %v2282_v15 = vmul.f32 0.5, %v2235_v10 }
 0x971   :  { %2813 = vtanh.f32 %v2278_v61  ;;  %v2287_v19 = vmul.f32 0.5, %v2277_v17 }
 0x972   :  { %2815 = vtanh.f32 %v2282_v15 }
 0x973   :  { %2817 = vtanh.f32 %v2256_v16 }
 0x974   :  { %2819 = vtanh.f32 %v2287_v19 }
 0x977   :  { %v2814_v22 = vpop.eup %2813 }
 0x978   :  { %v2816_v36 = vpop.eup %2815  ;;  %v2280_v62 = vmul.f32 0.5, %v2814_v22 }
 0x979   :  { %v2284_v35 = vmul.f32 0.5, %v2816_v36  ;;  %v2818_v0 = vpop.eup %2817 }
 0x97a   :  { %v2281_v63 = vadd.f32 0.5, %v2280_v62  ;;  %v2820_v4 = vpop.eup %2819 }
 0x97b   :  { %v2285_v1 = vadd.f32 0.5, %v2284_v35  ;;  %v2289_v18 = vmul.f32 0.5, %v2820_v4 }
 0x97c   :  { %v2292_v2 = vmul.f32 %v2818_v0, %v2281_v63 }
 0x97d   :  { %v2291_v3 = vmul.f32 %v2285_v1, %v2165_v54  ;;  %v2290_v23 = vadd.f32 0.5, %v2289_v18 }
 0x97f   :  { %v2293_v13 = vadd.f32 %v2292_v2, %v2291_v3 }
 0x981   :  { %2821 = vtanh.f32 %v2293_v13 }
 0x987   :  { %v2822_v24 = vpop.eup %2821 }
 0x988   :  { %v2295_v25 = vmul.f32 %v2822_v24, %v2290_v23 }
 0x98a   :  { %2647 = vmatmul.msk.f32.vlgmr.msra.gmra.mxu2 %vm96_vm0, %v2295_v25  ;;  %2648 = vmatmul.msk.f32.vlgmr.msra.gmra.mxu3 %vm96_vm0, %v2295_v25 }
 0x98b   :  { %2649 = vmatmul.msk.f32.vlgmr.msrb.gmra.mxu0 %vm96_vm0, %v2295_v25  ;;  %2650 = vmatmul.msk.f32.vlgmr.msrb.gmra.mxu1 %vm96_vm0, %v2295_v25 }
 0x992   :  { %2651 = vmatmul.msk.f32.vlgmr.msrb.gmra.mxu2 %vm96_vm0, %v2295_v25 }
 0xa08   :  { %v2360_v26 = vpop.f32.mrf.mxu0  ;;  %v2381_v20 = vpop.f32.mrf.mxu1 }
 0xa09   :  { %v2363_v32 = vadd.f32 %v2360_v26, %v3476_v5  ;;  %v2384_v41 = vadd.f32 %v2381_v20, %v3479_v11 }
 0xa0b   :  { %v2410_v33 = vmul.f32 0.5, %v2363_v32 }
 0xa0d   :  { %2823 = vtanh.f32 %v2410_v33  ;;  %v2318_v34 = vpop.f32.mrf.mxu2  ;;  %v2339_v37 = vpop.f32.mrf.mxu3 }
 0xa0e   :  { %v2321_v38 = vadd.f32 %v2318_v34, %v2193_v58  ;;  %v2342_v39 = vadd.f32 %v2339_v37, %v3472_v59 }
 0xa10   :  { %v2406_v40 = vmul.f32 0.5, %v2342_v39 }
 0xa12   :  { %2825 = vtanh.f32 %v2406_v40 }
 0xa13   :  { %v2824_v21 = vpop.eup %2823  ;;  %2827 = vtanh.f32 %v2384_v41 }
 0xa14   :  { %v2412_v42 = vmul.f32 0.5, %v2824_v21 }
 0xa15   :  { %v2402_v43 = vpop.f32.mrf.mxu2 }
 0xa16   :  { %v2405_v5 = vadd.f32 %v2402_v43, %v3482_v14  ;;  %v2413_v46 = vadd.f32 0.5, %v2412_v42 }
 0xa18   :  { %v2826_v44 = vpop.eup %2825  ;;  %v2415_v45 = vmul.f32 0.5, %v2405_v5  ;;  %v2419_v50 = vmul.f32 %v2413_v46, %v2293_v13 }
 0xa19   :  { %v2408_v47 = vmul.f32 0.5, %v2826_v44  ;;  %v2828_v49 = vpop.eup %2827 }
 0xa1a   :  { %2829 = vtanh.f32 %v2415_v45 }
 0xa1b   :  { %v2409_v48 = vadd.f32 0.5, %v2408_v47 }
 0xa1d   :  { %v2420_v59 = vmul.f32 %v2828_v49, %v2409_v48 }
 0xa1f   :  { %v2421_v51 = vadd.f32 %v2420_v59, %v2419_v50 }
 0xa20   :  { %v2830_v52 = vpop.eup %2829 }
 0xa21   :  { %2831 = vtanh.f32 %v2421_v51  ;;  %v2417_v11 = vmul.f32 0.5, %v2830_v52 }
 0xa23   :  { %v2418_v28 = vadd.f32 0.5, %v2417_v11 }
 0xa27   :  { %v2832_v53 = vpop.eup %2831 }
 0xa28   :  { %v2423_v54 = vmul.f32 %v2832_v53, %v2418_v28 }
 0xa2a   :  { %2653 = vmatmul.msk.f32.vlgmr.msrb.gmra.mxu3 %vm96_vm0, %v2423_v54  ;;  %2654 = vmatmul.msk.f32.vlgmr.msra.gmra.mxu0 %vm96_vm0, %v2423_v54 }
 0xaa7   :  { %v2468_v29 = vpop.f32.mrf.mxu0 }
 0xaad   :  { %v2446_v14 = vpop.f32.mrf.mxu3 }
 0xaae   :  { %v2449_v55 = vadd.f32 %v2446_v14, %v2321_v38 }
 0xab0   :  { %v2471_v57 = vadd.f32 %v2468_v29, %v2449_v55 }
 0xab2   :  { %v2476_v30 = vadd.f32 %v2672_v56, %v2471_v57 }
 0xab4   :  { %2477 = vst [vmem:[#allocation10] sm:$0xff] %v2476_v30 }
 0xab5   :  { %2488 = dma.vmem_to_hbm [thread:$0]  %s2484_s4, 128, %s2486_s18, [#allocation6]  }
 0xab6   :  { %2933 = dma.done.wait [#allocation6], 128  }
 0xab7   :  { %2934 = vsyncadd [#allocation6], 4294967168 }
 0xab8   :  { %2493 = vsyncpa [#allocation5], 1 }
 0xab9   :  { %2494 = vsyncpa [#allocation8], 1 }
 0xaba   :  { %2495 = vsyncpa [#allocation6], 1 }

</bundles_post_ra>
